<compile_context>
chip_gen: v6e
topology: v6e:2x2x1
jax: 0.10.0
libtpu: 0.0.40
codegen_flags: <defaults>
</compile_context>

<pallas_src>
import functools
import math
import warnings

import jax
import jax.numpy as jnp
from jax.experimental import pallas as pl
from jax.experimental.pallas import tpu as pltpu


# ----------------------------- fused whole-encoder Pallas kernel -----------------------------

def _te_encoder_kernel(
    zc0_ref, zt0_ref, xc_ref, xt_ref,
    wqT_ref, bqT_ref, wkvT_ref, bkvT_ref, wo_ref, bo_ref,
    kw1_ref, kb1_ref, kw2t_ref,
    ffw1_ref, ffb1_ref, ffw2_ref, ffb2_ref,
    ln1g_ref, ln1b_ref, ln2g_ref, ln2b_ref,
    zt_out_ref,
    zc_st, zt_st,
    *, num_heads, head_dim, eps, mxu_dtype):
  f32 = jnp.float32
  inner = num_heads * head_dim
  scale = 1.0 / math.sqrt(head_dim)
  layer = pl.program_id(1)
  cast = lambda a: a.astype(mxu_dtype)

  # Layer 0 of each batch element: load the carried state into VMEM scratch.
  @pl.when(layer == 0)
  def _():
    zc_st[...] = zc0_ref[0].astype(f32)
    zt_st[...] = zt0_ref[0].astype(f32)

  xc = xc_ref[0].astype(f32)          # (NC, DX)
  xt = xt_ref[0].astype(f32)          # (NT, DX)

  wqT = wqT_ref[0]; bqT = bqT_ref[0]          # (inner, DZ), (inner, 1)
  wkvT = wkvT_ref[0]; bkvT = bkvT_ref[0]      # (2*inner, DZ), (2*inner, 1)
  wo = wo_ref[0]; bo = bo_ref[0]              # (inner, DZ), (1, DZ)
  kw1 = kw1_ref[0]; kb1 = kb1_ref[0]          # (DX, KH), (1, KH)
  kw2t = kw2t_ref[0]                          # (H, KH)
  ffw1 = ffw1_ref[0]; ffb1 = ffb1_ref[0]
  ffw2 = ffw2_ref[0]; ffb2 = ffb2_ref[0]
  ln1g = ln1g_ref[0]; ln1b = ln1b_ref[0]
  ln2g = ln2g_ref[0]; ln2b = ln2b_ref[0]
  dz = wo.shape[1]

  # xkv == xc for BOTH the self (zc) and cross (zt) updates, so the key-side term of the
  # TE bias MLP is computed once and shared.  The first bias-MLP layer is affine, so it
  # distributes over the diff: relu((xq-xk)@kw1 + kb1) = relu((xq@kw1 + kb1) - xk@kw1).
  ak_c = jnp.dot(cast(xc), cast(kw1), preferred_element_type=f32)        # (NC, KH)
  aq_c = ak_c + kb1                                                      # (NC, KH)
  aq_t = jnp.dot(cast(xt), cast(kw1), preferred_element_type=f32) + kb1  # (NT, KH)

  def attention(zq, zkv, aq, ak):
    nq = zq.shape[0]
    tb = (((1,), (1,)), ((), ()))   # contract lhs dim1 with rhs dim1 ("trans_b" form)
    # Transposed projections: per-head views become aligned SUBLANE slices.
    qT = jax.lax.dot_general(cast(wqT), cast(zq), tb,
                             preferred_element_type=f32) + bqT           # (inner, NQ)
    kvT = jax.lax.dot_general(cast(wkvT), cast(zkv), tb,
                              preferred_element_type=f32) + bkvT         # (2*inner, NK)
    h1 = jnp.maximum(aq[:, None, :] - ak[None, :, :], 0.0)               # (NQ, NK, KH)
    # TODO(synk): MXU-side KH reduction of h1 (see module-level TODO).
    acc = jnp.zeros((nq, dz), f32)
    for h in range(num_heads):                 # static unroll; H is small
      lo = h * head_dim
      qTh = qT[lo:lo + head_dim, :]                        # (HD, NQ)  sublane slice
      kTh = kvT[lo:lo + head_dim, :]                       # (HD, NK)
      vTh = kvT[inner + lo:inner + lo + head_dim, :]       # (HD, NK)
      w2_h = kw2t[h:h + 1, :]                              # (1, KH)
      # kb2[h] is constant along the key axis -> cancels in the softmax (dropped here;
      # the pure-JAX reference keeps it; results are mathematically identical).
      bias_h = jnp.sum(h1 * w2_h[None, :, :], axis=-1)     # (NQ, NK)
      logits = jax.lax.dot_general(                        # qTh^T @ kTh  -> (NQ, NK)
          cast(qTh), cast(kTh), (((0,), (0,)), ((), ())),
          preferred_element_type=f32) * scale + bias_h
      m = jnp.max(logits, axis=-1, keepdims=True)
      p = jnp.exp(logits - m)
      s = jnp.sum(p, axis=-1, keepdims=True)
      r = pl.reciprocal(s, approx=True)                    # EUP seed (free slot)
      r = r * (2.0 - s * r)                                # one Newton step -> ~f32 accuracy
      p = p * r
      out_h = jax.lax.dot_general(                         # p @ vTh^T -> (NQ, HD)
          cast(p), cast(vTh), (((1,), (1,)), ((), ())),
          preferred_element_type=f32)
      # Output projection folded into the head loop:
      #   concat_h(out_h) @ wo == sum_h out_h @ wo[h*HD:(h+1)*HD, :]
      acc = acc + jnp.dot(cast(out_h), cast(wo[lo:lo + head_dim, :]),
                          preferred_element_type=f32)
    return acc + bo

  def ff_ln(zq, attn_out):
    # residual + LayerNorm 1 (post-norm)
    z = zq + attn_out
    mu = jnp.mean(z, axis=-1, keepdims=True)
    var = jnp.mean((z - mu) ** 2, axis=-1, keepdims=True)
    z = (z - mu) * jax.lax.rsqrt(var + eps) * ln1g + ln1b
    # feed-forward + residual + LayerNorm 2
    ff = jnp.maximum(
        jnp.dot(cast(z), cast(ffw1), preferred_element_type=f32) + ffb1, 0.0)
    ff = jnp.dot(cast(ff), cast(ffw2), preferred_element_type=f32) + ffb2
    z2 = z + ff
    mu2 = jnp.mean(z2, axis=-1, keepdims=True)
    var2 = jnp.mean((z2 - mu2) ** 2, axis=-1, keepdims=True)
    return (z2 - mu2) * jax.lax.rsqrt(var2 + eps) * ln2g + ln2b

  zc = zc_st[...]
  zt = zt_st[...]
  # mhsa_layer=None -> the shared cross layer is applied as self-attention on the context.
  zc_new = ff_ln(zc, attention(zc, zc, aq_c, ak_c))
  # Cross attention: targets attend to the freshly updated context.
  zt_new = ff_ln(zt, attention(zt, zc_new, aq_t, ak_c))
  zc_st[...] = zc_new
  zt_st[...] = zt_new

  @pl.when(layer == pl.num_programs(1) - 1)
  def _():
    zt_out_ref[0] = zt_new.astype(zt_out_ref.dtype)


_WEIGHT_ORDER = ("wqT", "bqT", "wkvT", "bkvT", "wo", "bo",
                 "kw1", "kb1", "kw2t",
                 "ffw1", "ffb1", "ffw2", "ffb2",
                 "ln1g", "ln1b", "ln2g", "ln2b")


def tetnp_transformer_encoder(params, zc, zt, xc, xt, mask=None, *,
                              num_heads, head_dim, mxu_dtype=jnp.float32):
  """Whole TETNPTransformerEncoder forward in a single fused pallas_call."""
  if mask is not None:
    warnings.warn("mask is not currently being used.")  # mirrors the PyTorch module
  M, NC, DZ = zc.shape
  NT = zt.shape[1]
  DX = xc.shape[2]
  L = len(params)

  # Stack the per-layer parameter dicts along a leading layer axis.
  stacked = jax.tree_util.tree_map(lambda *xs: jnp.stack(xs, 0), *params)
  weights = [stacked[n] for n in _WEIGHT_ORDER]

  def data_spec(n, d):
    return pl.BlockSpec((1, n, d), lambda m, l: (m, 0, 0))   # constant across l -> fetched once per m

  def w_spec(w):
    a, b = w.shape[1], w.shape[2]
    return pl.BlockSpec((1, a, b), lambda m, l: (l, 0, 0))   # next layer's weights prefetched

  kern = functools.partial(_te_encoder_kernel, num_heads=num_heads,
                           head_dim=head_dim, eps=1e-5, mxu_dtype=mxu_dtype)

  zt_out = pl.pallas_call(
      kern,
      out_shape=jax.ShapeDtypeStruct((M, NT, DZ), zt.dtype),
      grid=(M, L),
      in_specs=[data_spec(NC, DZ), data_spec(NT, DZ),
                data_spec(NC, DX), data_spec(NT, DX)]
               + [w_spec(w) for w in weights],
      out_specs=pl.BlockSpec((1, NT, DZ), lambda m, l: (m, 0, 0)),
      scratch_shapes=[pltpu.VMEM((NC, DZ), jnp.float32),   # carried zc across layers
                      pltpu.VMEM((NT, DZ), jnp.float32)],  # carried zt across layers
      compiler_params=pltpu.CompilerParams(
          dimension_semantics=("parallel", "arbitrary"),
          vmem_limit_bytes=32 * 1024 * 1024,
      ),
  )(zc, zt, xc, xt, *weights)
  return zt_out


# ----------------------------- parameters -----------------------------

def init_layer_params(key, dz, dx, num_heads, head_dim, kh, ff_dim):
  inner = num_heads * head_dim
  ks = jax.random.split(key, 12)

  def dense(k, fan_in, shape, scl=1.0):
    return scl * jax.random.normal(k, shape, jnp.float32) / math.sqrt(fan_in)

  zeros = lambda s: jnp.zeros(s, jnp.float32)
  return {
      # q / fused K|V projection weights stored TRANSPOSED (out_features, in_features)
      # so the kernel's per-head views are aligned sublane (row) slices.
      "wqT": dense(ks[0], dz, (inner, dz)),
      "bqT": dense(ks[1], 1, (inner, 1), 0.05),
      "wkvT": dense(ks[2], dz, (2 * inner, dz)),
      "bkvT": dense(ks[3], 1, (2 * inner, 1), 0.05),
      "wo": dense(ks[4], inner, (inner, dz)),
      "bo": dense(ks[5], 1, (1, dz), 0.05),
      "kw1": dense(ks[6], dx, (dx, kh)),
      "kb1": dense(ks[7], 1, (1, kh), 0.1),
      "kw2t": dense(ks[8], kh, (num_heads, kh)),       # stored transposed (H, KH)
      "kb2": dense(ks[9], 1, (1, num_heads), 0.1),     # reference-only (cancels in softmax)
      "ffw1": dense(ks[10], dz, (dz, ff_dim)), "ffb1": zeros((1, ff_dim)),
      "ffw2": dense(ks[11], ff_dim, (ff_dim, dz)), "ffb2": zeros((1, dz)),
      "ln1g": jnp.ones((1, dz), jnp.float32), "ln1b": zeros((1, dz)),
      "ln2g": jnp.ones((1, dz), jnp.float32), "ln2b": zeros((1, dz)),
  }


# ----------------------------- pure-JAX reference -----------------------------

def _ref_add_ln(x, y, g, b, eps=1e-5):
  z = x + y
  mu = z.mean(-1, keepdims=True)
  var = ((z - mu) ** 2).mean(-1, keepdims=True)
  return (z - mu) / jnp.sqrt(var + eps) * g + b


def _ref_layer(p, zq, zkv, xq, xkv, num_heads, head_dim):
  M, NQ, DZ = zq.shape
  NK = zkv.shape[1]
  inner = num_heads * head_dim
  q = (zq @ p["wqT"].T + p["bqT"].T).reshape(M, NQ, num_heads, head_dim).transpose(0, 2, 1, 3)
  kv = zkv @ p["wkvT"].T + p["bkvT"].T
  k = kv[..., :inner].reshape(M, NK, num_heads, head_dim).transpose(0, 2, 1, 3)
  v = kv[..., inner:].reshape(M, NK, num_heads, head_dim).transpose(0, 2, 1, 3)
  diff = xq[:, :, None, :] - xkv[:, None, :, :]                     # (M,NQ,NK,DX)
  h1 = jnp.maximum(diff @ p["kw1"] + p["kb1"], 0.0)                 # (M,NQ,NK,KH)
  bias = (h1 @ p["kw2t"].T + p["kb2"]).transpose(0, 3, 1, 2)        # (M,H,NQ,NK)
  logits = jnp.einsum("mhqd,mhkd->mhqk", q, k) / math.sqrt(head_dim) + bias
  attn = jax.nn.softmax(logits, axis=-1)
  out = jnp.einsum("mhqk,mhkd->mhqd", attn, v)
  out = out.transpose(0, 2, 1, 3).reshape(M, NQ, inner)
  attn_out = out @ p["wo"] + p["bo"]
  z = _ref_add_ln(zq, attn_out, p["ln1g"], p["ln1b"])
  ff = jnp.maximum(z @ p["ffw1"] + p["ffb1"], 0.0) @ p["ffw2"] + p["ffb2"]
  z = _ref_add_ln(z, ff, p["ln2g"], p["ln2b"])
  return z, xq


def _ref_encoder(params, zc, zt, xc, xt, *, num_heads, head_dim):
  for p in params:
    zc, xc = _ref_layer(p, zc, zc, xc, xc, num_heads, head_dim)
    zt, xt = _ref_layer(p, zt, zc, xt, xc, num_heads, head_dim)
  return zt


# ----------------------------- main -----------------------------

if __name__ == "__main__":
  key = jax.random.PRNGKey(0)
  M, NC, NT, DZ, DX = 2, 16, 8, 32, 2
  NUM_HEADS, HEAD_DIM, KH, FF = 4, 8, 16, 64
  NUM_LAYERS = 2

  k_param, k_zc, k_zt, k_xc, k_xt = jax.random.split(key, 5)
  params = [init_layer_params(jax.random.fold_in(k_param, l),
                              DZ, DX, NUM_HEADS, HEAD_DIM, KH, FF)
            for l in range(NUM_LAYERS)]

  zc = jax.random.normal(k_zc, (M, NC, DZ), jnp.float32)
  zt = jax.random.normal(k_zt, (M, NT, DZ), jnp.float32)
  xc = jax.random.normal(k_xc, (M, NC, DX), jnp.float32)
  xt = jax.random.normal(k_xt, (M, NT, DX), jnp.float32)

  encoder = jax.jit(functools.partial(tetnp_transformer_encoder,
                                      num_heads=NUM_HEADS, head_dim=HEAD_DIM))
  out = jax.block_until_ready(encoder(params, zc, zt, xc, xt))
  assert out.shape == (M, NT, DZ)

  ref = _ref_encoder(params, zc, zt, xc, xt, num_heads=NUM_HEADS, head_dim=HEAD_DIM)
  max_err = float(jnp.max(jnp.abs(out - ref)))
  assert jnp.allclose(out, ref, rtol=1e-3, atol=1e-3), f"max_err={max_err}"

  print("KERNEL_OK")
</pallas_src>

<mosaic_0001>
module attributes {stable_mosaic.version = 11 : i64} {
  func.func @_te_encoder_kernel(%arg0: i32, %arg1: i32, %arg2: memref<1x16x32xf32, #tpu.memory_space<vmem>>, %arg3: memref<1x8x32xf32, #tpu.memory_space<vmem>>, %arg4: memref<1x16x2xf32, #tpu.memory_space<vmem>>, %arg5: memref<1x8x2xf32, #tpu.memory_space<vmem>>, %arg6: memref<1x32x32xf32, #tpu.memory_space<vmem>>, %arg7: memref<1x32x1xf32, #tpu.memory_space<vmem>>, %arg8: memref<1x64x32xf32, #tpu.memory_space<vmem>>, %arg9: memref<1x64x1xf32, #tpu.memory_space<vmem>>, %arg10: memref<1x32x32xf32, #tpu.memory_space<vmem>>, %arg11: memref<1x1x32xf32, #tpu.memory_space<vmem>>, %arg12: memref<1x2x16xf32, #tpu.memory_space<vmem>>, %arg13: memref<1x1x16xf32, #tpu.memory_space<vmem>>, %arg14: memref<1x4x16xf32, #tpu.memory_space<vmem>>, %arg15: memref<1x32x64xf32, #tpu.memory_space<vmem>>, %arg16: memref<1x1x64xf32, #tpu.memory_space<vmem>>, %arg17: memref<1x64x32xf32, #tpu.memory_space<vmem>>, %arg18: memref<1x1x32xf32, #tpu.memory_space<vmem>>, %arg19: memref<1x1x32xf32, #tpu.memory_space<vmem>>, %arg20: memref<1x1x32xf32, #tpu.memory_space<vmem>>, %arg21: memref<1x1x32xf32, #tpu.memory_space<vmem>>, %arg22: memref<1x1x32xf32, #tpu.memory_space<vmem>>, %arg23: memref<1x8x32xf32, #tpu.memory_space<vmem>>, %arg24: memref<16x32xf32, #tpu.memory_space<vmem>>, %arg25: memref<8x32xf32, #tpu.memory_space<vmem>>) attributes {dimension_semantics = [#tpu.dimension_semantics<parallel>, #tpu.dimension_semantics<arbitrary>], iteration_bounds = array<i64: 2, 2>, scalar_prefetch = 0 : i64, scratch_operands = 2 : i64, tpu.core_type = #tpu.core_type<tc>, window_params = [{transform_indices = @transform_0, window_bounds = array<i64: 1, 16, 32>}, {transform_indices = @transform_1, window_bounds = array<i64: 1, 8, 32>}, {transform_indices = @transform_2, window_bounds = array<i64: 1, 16, 2>}, {transform_indices = @transform_3, window_bounds = array<i64: 1, 8, 2>}, {transform_indices = @transform_4, window_bounds = array<i64: 1, 32, 32>}, {transform_indices = @transform_5, window_bounds = array<i64: 1, 32, 1>}, {transform_indices = @transform_6, window_bounds = array<i64: 1, 64, 32>}, {transform_indices = @transform_7, window_bounds = array<i64: 1, 64, 1>}, {transform_indices = @transform_8, window_bounds = array<i64: 1, 32, 32>}, {transform_indices = @transform_9, window_bounds = array<i64: 1, 1, 32>}, {transform_indices = @transform_10, window_bounds = array<i64: 1, 2, 16>}, {transform_indices = @transform_11, window_bounds = array<i64: 1, 1, 16>}, {transform_indices = @transform_12, window_bounds = array<i64: 1, 4, 16>}, {transform_indices = @transform_13, window_bounds = array<i64: 1, 32, 64>}, {transform_indices = @transform_14, window_bounds = array<i64: 1, 1, 64>}, {transform_indices = @transform_15, window_bounds = array<i64: 1, 64, 32>}, {transform_indices = @transform_16, window_bounds = array<i64: 1, 1, 32>}, {transform_indices = @transform_17, window_bounds = array<i64: 1, 1, 32>}, {transform_indices = @transform_18, window_bounds = array<i64: 1, 1, 32>}, {transform_indices = @transform_19, window_bounds = array<i64: 1, 1, 32>}, {transform_indices = @transform_20, window_bounds = array<i64: 1, 1, 32>}, {transform_indices = @transform_21, window_bounds = array<i64: 1, 8, 32>}]} {
    %c0_i32 = arith.constant 0 : i32
    %0 = arith.cmpi eq, %arg1, %c0_i32 : i32
    %1 = arith.extui %0 : i1 to i32
    %c0_i32_0 = arith.constant 0 : i32
    %2 = arith.cmpi ne, %1, %c0_i32_0 : i32
    scf.if %2 {
      %c0_165 = arith.constant 0 : index
      %c0_166 = arith.constant 0 : index
      %c0_167 = arith.constant 0 : index
      %434 = vector.load %arg2[%c0_165, %c0_166, %c0_167] : memref<1x16x32xf32, #tpu.memory_space<vmem>>, vector<1x16x32xf32>
      %435 = vector.shape_cast %434 : vector<1x16x32xf32> to vector<16x32xf32>
      %c0_168 = arith.constant 0 : index
      %c0_169 = arith.constant 0 : index
      %436 = vector.load %arg24[%c0_168, %c0_169] : memref<16x32xf32, #tpu.memory_space<vmem>>, vector<16x32xf32>
      tpu.vector_store %arg24[%c0_168, %c0_169], %435 {strides = array<i32>} : memref<16x32xf32, #tpu.memory_space<vmem>>, vector<16x32xf32>,
      %c0_170 = arith.constant 0 : index
      %c0_171 = arith.constant 0 : index
      %c0_172 = arith.constant 0 : index
      %437 = vector.load %arg3[%c0_170, %c0_171, %c0_172] : memref<1x8x32xf32, #tpu.memory_space<vmem>>, vector<1x8x32xf32>
      %438 = vector.shape_cast %437 : vector<1x8x32xf32> to vector<8x32xf32>
      %c0_173 = arith.constant 0 : index
      %c0_174 = arith.constant 0 : index
      %439 = vector.load %arg25[%c0_173, %c0_174] : memref<8x32xf32, #tpu.memory_space<vmem>>, vector<8x32xf32>
      tpu.vector_store %arg25[%c0_173, %c0_174], %438 {strides = array<i32>} : memref<8x32xf32, #tpu.memory_space<vmem>>, vector<8x32xf32>,
    } else {
    }
    %c0 = arith.constant 0 : index
    %c0_1 = arith.constant 0 : index
    %c0_2 = arith.constant 0 : index
    %3 = vector.load %arg4[%c0, %c0_1, %c0_2] : memref<1x16x2xf32, #tpu.memory_space<vmem>>, vector<1x16x2xf32>
    %4 = vector.shape_cast %3 : vector<1x16x2xf32> to vector<16x2xf32>
    %c0_3 = arith.constant 0 : index
    %c0_4 = arith.constant 0 : index
    %c0_5 = arith.constant 0 : index
    %5 = vector.load %arg5[%c0_3, %c0_4, %c0_5] : memref<1x8x2xf32, #tpu.memory_space<vmem>>, vector<1x8x2xf32>
    %6 = vector.shape_cast %5 : vector<1x8x2xf32> to vector<8x2xf32>
    %c0_6 = arith.constant 0 : index
    %c0_7 = arith.constant 0 : index
    %c0_8 = arith.constant 0 : index
    %7 = vector.load %arg6[%c0_6, %c0_7, %c0_8] : memref<1x32x32xf32, #tpu.memory_space<vmem>>, vector<1x32x32xf32>
    %8 = vector.shape_cast %7 : vector<1x32x32xf32> to vector<32x32xf32>
    %c0_9 = arith.constant 0 : index
    %c0_10 = arith.constant 0 : index
    %c0_11 = arith.constant 0 : index
    %9 = vector.load %arg7[%c0_9, %c0_10, %c0_11] : memref<1x32x1xf32, #tpu.memory_space<vmem>>, vector<1x32x1xf32>
    %10 = vector.shape_cast %9 : vector<1x32x1xf32> to vector<32x1xf32>
    %c0_12 = arith.constant 0 : index
    %c0_13 = arith.constant 0 : index
    %c0_14 = arith.constant 0 : index
    %11 = vector.load %arg8[%c0_12, %c0_13, %c0_14] : memref<1x64x32xf32, #tpu.memory_space<vmem>>, vector<1x64x32xf32>
    %12 = vector.shape_cast %11 : vector<1x64x32xf32> to vector<64x32xf32>
    %c0_15 = arith.constant 0 : index
    %c0_16 = arith.constant 0 : index
    %c0_17 = arith.constant 0 : index
    %13 = vector.load %arg9[%c0_15, %c0_16, %c0_17] : memref<1x64x1xf32, #tpu.memory_space<vmem>>, vector<1x64x1xf32>
    %14 = vector.shape_cast %13 : vector<1x64x1xf32> to vector<64x1xf32>
    %c0_18 = arith.constant 0 : index
    %c0_19 = arith.constant 0 : index
    %c0_20 = arith.constant 0 : index
    %15 = vector.load %arg10[%c0_18, %c0_19, %c0_20] : memref<1x32x32xf32, #tpu.memory_space<vmem>>, vector<1x32x32xf32>
    %16 = vector.shape_cast %15 : vector<1x32x32xf32> to vector<32x32xf32>
    %c0_21 = arith.constant 0 : index
    %c0_22 = arith.constant 0 : index
    %c0_23 = arith.constant 0 : index
    %17 = vector.load %arg11[%c0_21, %c0_22, %c0_23] : memref<1x1x32xf32, #tpu.memory_space<vmem>>, vector<1x1x32xf32>
    %18 = vector.shape_cast %17 : vector<1x1x32xf32> to vector<1x32xf32>
    %c0_24 = arith.constant 0 : index
    %c0_25 = arith.constant 0 : index
    %c0_26 = arith.constant 0 : index
    %19 = vector.load %arg12[%c0_24, %c0_25, %c0_26] : memref<1x2x16xf32, #tpu.memory_space<vmem>>, vector<1x2x16xf32>
    %20 = vector.shape_cast %19 : vector<1x2x16xf32> to vector<2x16xf32>
    %c0_27 = arith.constant 0 : index
    %c0_28 = arith.constant 0 : index
    %c0_29 = arith.constant 0 : index
    %21 = vector.load %arg13[%c0_27, %c0_28, %c0_29] : memref<1x1x16xf32, #tpu.memory_space<vmem>>, vector<1x1x16xf32>
    %22 = vector.shape_cast %21 : vector<1x1x16xf32> to vector<1x16xf32>
    %c0_30 = arith.constant 0 : index
    %c0_31 = arith.constant 0 : index
    %c0_32 = arith.constant 0 : index
    %23 = vector.load %arg14[%c0_30, %c0_31, %c0_32] : memref<1x4x16xf32, #tpu.memory_space<vmem>>, vector<1x4x16xf32>
    %24 = vector.shape_cast %23 : vector<1x4x16xf32> to vector<4x16xf32>
    %c0_33 = arith.constant 0 : index
    %c0_34 = arith.constant 0 : index
    %c0_35 = arith.constant 0 : index
    %25 = vector.load %arg15[%c0_33, %c0_34, %c0_35] : memref<1x32x64xf32, #tpu.memory_space<vmem>>, vector<1x32x64xf32>
    %26 = vector.shape_cast %25 : vector<1x32x64xf32> to vector<32x64xf32>
    %c0_36 = arith.constant 0 : index
    %c0_37 = arith.constant 0 : index
    %c0_38 = arith.constant 0 : index
    %27 = vector.load %arg16[%c0_36, %c0_37, %c0_38] : memref<1x1x64xf32, #tpu.memory_space<vmem>>, vector<1x1x64xf32>
    %28 = vector.shape_cast %27 : vector<1x1x64xf32> to vector<1x64xf32>
    %c0_39 = arith.constant 0 : index
    %c0_40 = arith.constant 0 : index
    %c0_41 = arith.constant 0 : index
    %29 = vector.load %arg17[%c0_39, %c0_40, %c0_41] : memref<1x64x32xf32, #tpu.memory_space<vmem>>, vector<1x64x32xf32>
    %30 = vector.shape_cast %29 : vector<1x64x32xf32> to vector<64x32xf32>
    %c0_42 = arith.constant 0 : index
    %c0_43 = arith.constant 0 : index
    %c0_44 = arith.constant 0 : index
    %31 = vector.load %arg18[%c0_42, %c0_43, %c0_44] : memref<1x1x32xf32, #tpu.memory_space<vmem>>, vector<1x1x32xf32>
    %32 = vector.shape_cast %31 : vector<1x1x32xf32> to vector<1x32xf32>
    %c0_45 = arith.constant 0 : index
    %c0_46 = arith.constant 0 : index
    %c0_47 = arith.constant 0 : index
    %33 = vector.load %arg19[%c0_45, %c0_46, %c0_47] : memref<1x1x32xf32, #tpu.memory_space<vmem>>, vector<1x1x32xf32>
    %34 = vector.shape_cast %33 : vector<1x1x32xf32> to vector<1x32xf32>
    %c0_48 = arith.constant 0 : index
    %c0_49 = arith.constant 0 : index
    %c0_50 = arith.constant 0 : index
    %35 = vector.load %arg20[%c0_48, %c0_49, %c0_50] : memref<1x1x32xf32, #tpu.memory_space<vmem>>, vector<1x1x32xf32>
    %36 = vector.shape_cast %35 : vector<1x1x32xf32> to vector<1x32xf32>
    %c0_51 = arith.constant 0 : index
    %c0_52 = arith.constant 0 : index
    %c0_53 = arith.constant 0 : index
    %37 = vector.load %arg21[%c0_51, %c0_52, %c0_53] : memref<1x1x32xf32, #tpu.memory_space<vmem>>, vector<1x1x32xf32>
    %38 = vector.shape_cast %37 : vector<1x1x32xf32> to vector<1x32xf32>
    %c0_54 = arith.constant 0 : index
    %c0_55 = arith.constant 0 : index
    %c0_56 = arith.constant 0 : index
    %39 = vector.load %arg22[%c0_54, %c0_55, %c0_56] : memref<1x1x32xf32, #tpu.memory_space<vmem>>, vector<1x1x32xf32>
    %40 = vector.shape_cast %39 : vector<1x1x32xf32> to vector<1x32xf32>
    %cst = arith.constant dense<0.000000e+00> : vector<16x16xf32>
    %41 = tpu.matmul %4, %20, %cst {dimension_numbers = #tpu.dot_dimension_numbers<[1], [0], [0], [1], [0, 0, 1, 1], [], []>} : vector<16x2xf32>, vector<2x16xf32>, vector<16x16xf32> -> vector<16x16xf32>
    %42 = vector.broadcast %22 : vector<1x16xf32> to vector<16x16xf32>
    %43 = arith.addf %41, %42 : vector<16x16xf32>
    %cst_57 = arith.constant dense<0.000000e+00> : vector<8x16xf32>
    %44 = tpu.matmul %6, %20, %cst_57 {dimension_numbers = #tpu.dot_dimension_numbers<[1], [0], [0], [1], [0, 0, 1, 1], [], []>} : vector<8x2xf32>, vector<2x16xf32>, vector<8x16xf32> -> vector<8x16xf32>
    %45 = vector.broadcast %22 : vector<1x16xf32> to vector<8x16xf32>
    %46 = arith.addf %44, %45 : vector<8x16xf32>
    %c0_58 = arith.constant 0 : index
    %c0_59 = arith.constant 0 : index
    %47 = vector.load %arg24[%c0_58, %c0_59] : memref<16x32xf32, #tpu.memory_space<vmem>>, vector<16x32xf32>
    %c0_60 = arith.constant 0 : index
    %c0_61 = arith.constant 0 : index
    %48 = vector.load %arg25[%c0_60, %c0_61] : memref<8x32xf32, #tpu.memory_space<vmem>>, vector<8x32xf32>
    %cst_62 = arith.constant dense<0.000000e+00> : vector<32x16xf32>
    %49 = tpu.matmul %8, %47, %cst_62 {dimension_numbers = #tpu.dot_dimension_numbers<[1], [1], [0], [0], [0, 0, 1, 0], [], []>} : vector<32x32xf32>, vector<16x32xf32>, vector<32x16xf32> -> vector<32x16xf32>
    %50 = vector.broadcast %10 : vector<32x1xf32> to vector<32x16xf32>
    %51 = arith.addf %49, %50 : vector<32x16xf32>
    %cst_63 = arith.constant dense<0.000000e+00> : vector<64x16xf32>
    %52 = tpu.matmul %12, %47, %cst_63 {dimension_numbers = #tpu.dot_dimension_numbers<[1], [1], [0], [0], [0, 0, 1, 0], [], []>} : vector<64x32xf32>, vector<16x32xf32>, vector<64x16xf32> -> vector<64x16xf32>
    %53 = vector.broadcast %14 : vector<64x1xf32> to vector<64x16xf32>
    %54 = arith.addf %52, %53 : vector<64x16xf32>
    %55 = vector.shape_cast %43 : vector<16x16xf32> to vector<16x1x16xf32>
    %56 = vector.shape_cast %41 : vector<16x16xf32> to vector<1x16x16xf32>
    %57 = vector.broadcast %55 : vector<16x1x16xf32> to vector<16x16x16xf32>
    %58 = vector.broadcast %56 : vector<1x16x16xf32> to vector<16x16x16xf32>
    %59 = arith.subf %57, %58 : vector<16x16x16xf32>
    %cst_64 = arith.constant 0.000000e+00 : f32
    %60 = vector.broadcast %cst_64 : f32 to vector<16x16x16xf32>
    %61 = arith.maximumf %59, %60 : vector<16x16x16xf32>
    %cst_65 = arith.constant 0.000000e+00 : f32
    %62 = vector.broadcast %cst_65 : f32 to vector<16x32xf32>
    %63 = vector.extract_strided_slice %51 {offsets = [0, 0], sizes = [8, 16], strides = [1, 1]} : vector<32x16xf32> to vector<8x16xf32>
    %64 = vector.extract_strided_slice %54 {offsets = [0, 0], sizes = [8, 16], strides = [1, 1]} : vector<64x16xf32> to vector<8x16xf32>
    %65 = vector.extract_strided_slice %54 {offsets = [32, 0], sizes = [8, 16], strides = [1, 1]} : vector<64x16xf32> to vector<8x16xf32>
    %66 = vector.extract_strided_slice %24 {offsets = [0, 0], sizes = [1, 16], strides = [1, 1]} : vector<4x16xf32> to vector<1x16xf32>
    %67 = vector.shape_cast %66 : vector<1x16xf32> to vector<1x1x16xf32>
    %68 = vector.broadcast %67 : vector<1x1x16xf32> to vector<16x16x16xf32>
    %69 = arith.mulf %61, %68 : vector<16x16x16xf32>
    %cst_66 = arith.constant dense<0.000000e+00> : vector<16x16xf32>
    %70 = vector.multi_reduction <add>, %69, %cst_66 [2] : vector<16x16x16xf32> to vector<16x16xf32>
    %cst_67 = arith.constant dense<0.000000e+00> : vector<16x16xf32>
    %71 = tpu.matmul %63, %64, %cst_67 {dimension_numbers = #tpu.dot_dimension_numbers<[0], [0], [1], [1], [0, 1, 1, 1], [], []>} : vector<8x16xf32>, vector<8x16xf32>, vector<16x16xf32> -> vector<16x16xf32>
    %cst_68 = arith.constant 0.353553385 : f32
    %72 = vector.broadcast %cst_68 : f32 to vector<16x16xf32>
    %73 = arith.mulf %71, %72 : vector<16x16xf32>
    %74 = arith.addf %73, %70 : vector<16x16xf32>
    %cst_69 = arith.constant dense<0xFF800000> : vector<16xf32>
    %75 = vector.multi_reduction <maximumf>, %74, %cst_69 [1] : vector<16x16xf32> to vector<16xf32>
    %76 = vector.shape_cast %75 : vector<16xf32> to vector<16x1xf32>
    %77 = vector.broadcast %76 : vector<16x1xf32> to vector<16x16xf32>
    %78 = arith.subf %74, %77 : vector<16x16xf32>
    %79 = math.exp %78 : vector<16x16xf32>
    %cst_70 = arith.constant dense<0.000000e+00> : vector<16xf32>
    %80 = vector.multi_reduction <add>, %79, %cst_70 [1] : vector<16x16xf32> to vector<16xf32>
    %81 = vector.shape_cast %80 : vector<16xf32> to vector<16x1xf32>
    %82 = tpu.reciprocal %81 {approx = true} : vector<16x1xf32> -> vector<16x1xf32>
    %83 = arith.mulf %81, %82 : vector<16x1xf32>
    %cst_71 = arith.constant 2.000000e+00 : f32
    %84 = vector.broadcast %cst_71 : f32 to vector<16x1xf32>
    %85 = arith.subf %84, %83 : vector<16x1xf32>
    %86 = arith.mulf %82, %85 : vector<16x1xf32>
    %87 = vector.broadcast %86 : vector<16x1xf32> to vector<16x16xf32>
    %88 = arith.mulf %79, %87 : vector<16x16xf32>
    %cst_72 = arith.constant dense<0.000000e+00> : vector<16x8xf32>
    %89 = tpu.matmul %88, %65, %cst_72 {dimension_numbers = #tpu.dot_dimension_numbers<[1], [1], [0], [0], [0, 0, 1, 0], [], []>} : vector<16x16xf32>, vector<8x16xf32>, vector<16x8xf32> -> vector<16x8xf32>
    %90 = vector.extract_strided_slice %16 {offsets = [0, 0], sizes = [8, 32], strides = [1, 1]} : vector<32x32xf32> to vector<8x32xf32>
    %cst_73 = arith.constant dense<0.000000e+00> : vector<16x32xf32>
    %91 = tpu.matmul %89, %90, %cst_73 {dimension_numbers = #tpu.dot_dimension_numbers<[1], [0], [0], [1], [0, 0, 1, 1], [], []>} : vector<16x8xf32>, vector<8x32xf32>, vector<16x32xf32> -> vector<16x32xf32>
    %92 = arith.addf %62, %91 : vector<16x32xf32>
    %93 = vector.extract_strided_slice %51 {offsets = [8, 0], sizes = [8, 16], strides = [1, 1]} : vector<32x16xf32> to vector<8x16xf32>
    %94 = vector.extract_strided_slice %54 {offsets = [8, 0], sizes = [8, 16], strides = [1, 1]} : vector<64x16xf32> to vector<8x16xf32>
    %95 = vector.extract_strided_slice %54 {offsets = [40, 0], sizes = [8, 16], strides = [1, 1]} : vector<64x16xf32> to vector<8x16xf32>
    %96 = vector.extract_strided_slice %24 {offsets = [1, 0], sizes = [1, 16], strides = [1, 1]} : vector<4x16xf32> to vector<1x16xf32>
    %97 = vector.shape_cast %96 : vector<1x16xf32> to vector<1x1x16xf32>
    %98 = vector.broadcast %97 : vector<1x1x16xf32> to vector<16x16x16xf32>
    %99 = arith.mulf %61, %98 : vector<16x16x16xf32>
    %cst_74 = arith.constant dense<0.000000e+00> : vector<16x16xf32>
    %100 = vector.multi_reduction <add>, %99, %cst_74 [2] : vector<16x16x16xf32> to vector<16x16xf32>
    %cst_75 = arith.constant dense<0.000000e+00> : vector<16x16xf32>
    %101 = tpu.matmul %93, %94, %cst_75 {dimension_numbers = #tpu.dot_dimension_numbers<[0], [0], [1], [1], [0, 1, 1, 1], [], []>} : vector<8x16xf32>, vector<8x16xf32>, vector<16x16xf32> -> vector<16x16xf32>
    %cst_76 = arith.constant 0.353553385 : f32
    %102 = vector.broadcast %cst_76 : f32 to vector<16x16xf32>
    %103 = arith.mulf %101, %102 : vector<16x16xf32>
    %104 = arith.addf %103, %100 : vector<16x16xf32>
    %cst_77 = arith.constant dense<0xFF800000> : vector<16xf32>
    %105 = vector.multi_reduction <maximumf>, %104, %cst_77 [1] : vector<16x16xf32> to vector<16xf32>
    %106 = vector.shape_cast %105 : vector<16xf32> to vector<16x1xf32>
    %107 = vector.broadcast %106 : vector<16x1xf32> to vector<16x16xf32>
    %108 = arith.subf %104, %107 : vector<16x16xf32>
    %109 = math.exp %108 : vector<16x16xf32>
    %cst_78 = arith.constant dense<0.000000e+00> : vector<16xf32>
    %110 = vector.multi_reduction <add>, %109, %cst_78 [1] : vector<16x16xf32> to vector<16xf32>
    %111 = vector.shape_cast %110 : vector<16xf32> to vector<16x1xf32>
    %112 = tpu.reciprocal %111 {approx = true} : vector<16x1xf32> -> vector<16x1xf32>
    %113 = arith.mulf %111, %112 : vector<16x1xf32>
    %cst_79 = arith.constant 2.000000e+00 : f32
    %114 = vector.broadcast %cst_79 : f32 to vector<16x1xf32>
    %115 = arith.subf %114, %113 : vector<16x1xf32>
    %116 = arith.mulf %112, %115 : vector<16x1xf32>
    %117 = vector.broadcast %116 : vector<16x1xf32> to vector<16x16xf32>
    %118 = arith.mulf %109, %117 : vector<16x16xf32>
    %cst_80 = arith.constant dense<0.000000e+00> : vector<16x8xf32>
    %119 = tpu.matmul %118, %95, %cst_80 {dimension_numbers = #tpu.dot_dimension_numbers<[1], [1], [0], [0], [0, 0, 1, 0], [], []>} : vector<16x16xf32>, vector<8x16xf32>, vector<16x8xf32> -> vector<16x8xf32>
    %120 = vector.extract_strided_slice %16 {offsets = [8, 0], sizes = [8, 32], strides = [1, 1]} : vector<32x32xf32> to vector<8x32xf32>
    %cst_81 = arith.constant dense<0.000000e+00> : vector<16x32xf32>
    %121 = tpu.matmul %119, %120, %cst_81 {dimension_numbers = #tpu.dot_dimension_numbers<[1], [0], [0], [1], [0, 0, 1, 1], [], []>} : vector<16x8xf32>, vector<8x32xf32>, vector<16x32xf32> -> vector<16x32xf32>
    %122 = arith.addf %92, %121 : vector<16x32xf32>
    %123 = vector.extract_strided_slice %51 {offsets = [16, 0], sizes = [8, 16], strides = [1, 1]} : vector<32x16xf32> to vector<8x16xf32>
    %124 = vector.extract_strided_slice %54 {offsets = [16, 0], sizes = [8, 16], strides = [1, 1]} : vector<64x16xf32> to vector<8x16xf32>
    %125 = vector.extract_strided_slice %54 {offsets = [48, 0], sizes = [8, 16], strides = [1, 1]} : vector<64x16xf32> to vector<8x16xf32>
    %126 = vector.extract_strided_slice %24 {offsets = [2, 0], sizes = [1, 16], strides = [1, 1]} : vector<4x16xf32> to vector<1x16xf32>
    %127 = vector.shape_cast %126 : vector<1x16xf32> to vector<1x1x16xf32>
    %128 = vector.broadcast %127 : vector<1x1x16xf32> to vector<16x16x16xf32>
    %129 = arith.mulf %61, %128 : vector<16x16x16xf32>
    %cst_82 = arith.constant dense<0.000000e+00> : vector<16x16xf32>
    %130 = vector.multi_reduction <add>, %129, %cst_82 [2] : vector<16x16x16xf32> to vector<16x16xf32>
    %cst_83 = arith.constant dense<0.000000e+00> : vector<16x16xf32>
    %131 = tpu.matmul %123, %124, %cst_83 {dimension_numbers = #tpu.dot_dimension_numbers<[0], [0], [1], [1], [0, 1, 1, 1], [], []>} : vector<8x16xf32>, vector<8x16xf32>, vector<16x16xf32> -> vector<16x16xf32>
    %cst_84 = arith.constant 0.353553385 : f32
    %132 = vector.broadcast %cst_84 : f32 to vector<16x16xf32>
    %133 = arith.mulf %131, %132 : vector<16x16xf32>
    %134 = arith.addf %133, %130 : vector<16x16xf32>
    %cst_85 = arith.constant dense<0xFF800000> : vector<16xf32>
    %135 = vector.multi_reduction <maximumf>, %134, %cst_85 [1] : vector<16x16xf32> to vector<16xf32>
    %136 = vector.shape_cast %135 : vector<16xf32> to vector<16x1xf32>
    %137 = vector.broadcast %136 : vector<16x1xf32> to vector<16x16xf32>
    %138 = arith.subf %134, %137 : vector<16x16xf32>
    %139 = math.exp %138 : vector<16x16xf32>
    %cst_86 = arith.constant dense<0.000000e+00> : vector<16xf32>
    %140 = vector.multi_reduction <add>, %139, %cst_86 [1] : vector<16x16xf32> to vector<16xf32>
    %141 = vector.shape_cast %140 : vector<16xf32> to vector<16x1xf32>
    %142 = tpu.reciprocal %141 {approx = true} : vector<16x1xf32> -> vector<16x1xf32>
    %143 = arith.mulf %141, %142 : vector<16x1xf32>
    %cst_87 = arith.constant 2.000000e+00 : f32
    %144 = vector.broadcast %cst_87 : f32 to vector<16x1xf32>
    %145 = arith.subf %144, %143 : vector<16x1xf32>
    %146 = arith.mulf %142, %145 : vector<16x1xf32>
    %147 = vector.broadcast %146 : vector<16x1xf32> to vector<16x16xf32>
    %148 = arith.mulf %139, %147 : vector<16x16xf32>
    %cst_88 = arith.constant dense<0.000000e+00> : vector<16x8xf32>
    %149 = tpu.matmul %148, %125, %cst_88 {dimension_numbers = #tpu.dot_dimension_numbers<[1], [1], [0], [0], [0, 0, 1, 0], [], []>} : vector<16x16xf32>, vector<8x16xf32>, vector<16x8xf32> -> vector<16x8xf32>
    %150 = vector.extract_strided_slice %16 {offsets = [16, 0], sizes = [8, 32], strides = [1, 1]} : vector<32x32xf32> to vector<8x32xf32>
    %cst_89 = arith.constant dense<0.000000e+00> : vector<16x32xf32>
    %151 = tpu.matmul %149, %150, %cst_89 {dimension_numbers = #tpu.dot_dimension_numbers<[1], [0], [0], [1], [0, 0, 1, 1], [], []>} : vector<16x8xf32>, vector<8x32xf32>, vector<16x32xf32> -> vector<16x32xf32>
    %152 = arith.addf %122, %151 : vector<16x32xf32>
    %153 = vector.extract_strided_slice %51 {offsets = [24, 0], sizes = [8, 16], strides = [1, 1]} : vector<32x16xf32> to vector<8x16xf32>
    %154 = vector.extract_strided_slice %54 {offsets = [24, 0], sizes = [8, 16], strides = [1, 1]} : vector<64x16xf32> to vector<8x16xf32>
    %155 = vector.extract_strided_slice %54 {offsets = [56, 0], sizes = [8, 16], strides = [1, 1]} : vector<64x16xf32> to vector<8x16xf32>
    %156 = vector.extract_strided_slice %24 {offsets = [3, 0], sizes = [1, 16], strides = [1, 1]} : vector<4x16xf32> to vector<1x16xf32>
    %157 = vector.shape_cast %156 : vector<1x16xf32> to vector<1x1x16xf32>
    %158 = vector.broadcast %157 : vector<1x1x16xf32> to vector<16x16x16xf32>
    %159 = arith.mulf %61, %158 : vector<16x16x16xf32>
    %cst_90 = arith.constant dense<0.000000e+00> : vector<16x16xf32>
    %160 = vector.multi_reduction <add>, %159, %cst_90 [2] : vector<16x16x16xf32> to vector<16x16xf32>
    %cst_91 = arith.constant dense<0.000000e+00> : vector<16x16xf32>
    %161 = tpu.matmul %153, %154, %cst_91 {dimension_numbers = #tpu.dot_dimension_numbers<[0], [0], [1], [1], [0, 1, 1, 1], [], []>} : vector<8x16xf32>, vector<8x16xf32>, vector<16x16xf32> -> vector<16x16xf32>
    %cst_92 = arith.constant 0.353553385 : f32
    %162 = vector.broadcast %cst_92 : f32 to vector<16x16xf32>
    %163 = arith.mulf %161, %162 : vector<16x16xf32>
    %164 = arith.addf %163, %160 : vector<16x16xf32>
    %cst_93 = arith.constant dense<0xFF800000> : vector<16xf32>
    %165 = vector.multi_reduction <maximumf>, %164, %cst_93 [1] : vector<16x16xf32> to vector<16xf32>
    %166 = vector.shape_cast %165 : vector<16xf32> to vector<16x1xf32>
    %167 = vector.broadcast %166 : vector<16x1xf32> to vector<16x16xf32>
    %168 = arith.subf %164, %167 : vector<16x16xf32>
    %169 = math.exp %168 : vector<16x16xf32>
    %cst_94 = arith.constant dense<0.000000e+00> : vector<16xf32>
    %170 = vector.multi_reduction <add>, %169, %cst_94 [1] : vector<16x16xf32> to vector<16xf32>
    %171 = vector.shape_cast %170 : vector<16xf32> to vector<16x1xf32>
    %172 = tpu.reciprocal %171 {approx = true} : vector<16x1xf32> -> vector<16x1xf32>
    %173 = arith.mulf %171, %172 : vector<16x1xf32>
    %cst_95 = arith.constant 2.000000e+00 : f32
    %174 = vector.broadcast %cst_95 : f32 to vector<16x1xf32>
    %175 = arith.subf %174, %173 : vector<16x1xf32>
    %176 = arith.mulf %172, %175 : vector<16x1xf32>
    %177 = vector.broadcast %176 : vector<16x1xf32> to vector<16x16xf32>
    %178 = arith.mulf %169, %177 : vector<16x16xf32>
    %cst_96 = arith.constant dense<0.000000e+00> : vector<16x8xf32>
    %179 = tpu.matmul %178, %155, %cst_96 {dimension_numbers = #tpu.dot_dimension_numbers<[1], [1], [0], [0], [0, 0, 1, 0], [], []>} : vector<16x16xf32>, vector<8x16xf32>, vector<16x8xf32> -> vector<16x8xf32>
    %180 = vector.extract_strided_slice %16 {offsets = [24, 0], sizes = [8, 32], strides = [1, 1]} : vector<32x32xf32> to vector<8x32xf32>
    %cst_97 = arith.constant dense<0.000000e+00> : vector<16x32xf32>
    %181 = tpu.matmul %179, %180, %cst_97 {dimension_numbers = #tpu.dot_dimension_numbers<[1], [0], [0], [1], [0, 0, 1, 1], [], []>} : vector<16x8xf32>, vector<8x32xf32>, vector<16x32xf32> -> vector<16x32xf32>
    %182 = arith.addf %152, %181 : vector<16x32xf32>
    %183 = vector.broadcast %18 : vector<1x32xf32> to vector<16x32xf32>
    %184 = arith.addf %182, %183 : vector<16x32xf32>
    %185 = arith.addf %47, %184 : vector<16x32xf32>
    %cst_98 = arith.constant dense<0.000000e+00> : vector<16xf32>
    %186 = vector.multi_reduction <add>, %185, %cst_98 [1] : vector<16x32xf32> to vector<16xf32>
    %187 = vector.shape_cast %186 : vector<16xf32> to vector<16x1xf32>
    %cst_99 = arith.constant 3.200000e+01 : f32
    %188 = vector.broadcast %cst_99 : f32 to vector<16x1xf32>
    %189 = arith.divf %187, %188 : vector<16x1xf32>
    %190 = vector.broadcast %189 : vector<16x1xf32> to vector<16x32xf32>
    %191 = arith.subf %185, %190 : vector<16x32xf32>
    %192 = arith.mulf %191, %191 : vector<16x32xf32>
    %cst_100 = arith.constant dense<0.000000e+00> : vector<16xf32>
    %193 = vector.multi_reduction <add>, %192, %cst_100 [1] : vector<16x32xf32> to vector<16xf32>
    %194 = vector.shape_cast %193 : vector<16xf32> to vector<16x1xf32>
    %cst_101 = arith.constant 3.200000e+01 : f32
    %195 = vector.broadcast %cst_101 : f32 to vector<16x1xf32>
    %196 = arith.divf %194, %195 : vector<16x1xf32>
    %197 = vector.broadcast %189 : vector<16x1xf32> to vector<16x32xf32>
    %198 = arith.subf %185, %197 : vector<16x32xf32>
    %cst_102 = arith.constant 9.99999974E-6 : f32
    %199 = vector.broadcast %cst_102 : f32 to vector<16x1xf32>
    %200 = arith.addf %196, %199 : vector<16x1xf32>
    %201 = math.rsqrt %200 : vector<16x1xf32>
    %202 = vector.broadcast %201 : vector<16x1xf32> to vector<16x32xf32>
    %203 = arith.mulf %198, %202 : vector<16x32xf32>
    %204 = vector.broadcast %34 : vector<1x32xf32> to vector<16x32xf32>
    %205 = arith.mulf %203, %204 : vector<16x32xf32>
    %206 = vector.broadcast %36 : vector<1x32xf32> to vector<16x32xf32>
    %207 = arith.addf %205, %206 : vector<16x32xf32>
    %cst_103 = arith.constant dense<0.000000e+00> : vector<16x64xf32>
    %208 = tpu.matmul %207, %26, %cst_103 {dimension_numbers = #tpu.dot_dimension_numbers<[1], [0], [0], [1], [0, 0, 1, 1], [], []>} : vector<16x32xf32>, vector<32x64xf32>, vector<16x64xf32> -> vector<16x64xf32>
    %209 = vector.broadcast %28 : vector<1x64xf32> to vector<16x64xf32>
    %210 = arith.addf %208, %209 : vector<16x64xf32>
    %cst_104 = arith.constant 0.000000e+00 : f32
    %211 = vector.broadcast %cst_104 : f32 to vector<16x64xf32>
    %212 = arith.maximumf %210, %211 : vector<16x64xf32>
    %cst_105 = arith.constant dense<0.000000e+00> : vector<16x32xf32>
    %213 = tpu.matmul %212, %30, %cst_105 {dimension_numbers = #tpu.dot_dimension_numbers<[1], [0], [0], [1], [0, 0, 1, 1], [], []>} : vector<16x64xf32>, vector<64x32xf32>, vector<16x32xf32> -> vector<16x32xf32>
    %214 = vector.broadcast %32 : vector<1x32xf32> to vector<16x32xf32>
    %215 = arith.addf %213, %214 : vector<16x32xf32>
    %216 = arith.addf %207, %215 : vector<16x32xf32>
    %cst_106 = arith.constant dense<0.000000e+00> : vector<16xf32>
    %217 = vector.multi_reduction <add>, %216, %cst_106 [1] : vector<16x32xf32> to vector<16xf32>
    %218 = vector.shape_cast %217 : vector<16xf32> to vector<16x1xf32>
    %cst_107 = arith.constant 3.200000e+01 : f32
    %219 = vector.broadcast %cst_107 : f32 to vector<16x1xf32>
    %220 = arith.divf %218, %219 : vector<16x1xf32>
    %221 = vector.broadcast %220 : vector<16x1xf32> to vector<16x32xf32>
    %222 = arith.subf %216, %221 : vector<16x32xf32>
    %223 = arith.mulf %222, %222 : vector<16x32xf32>
    %cst_108 = arith.constant dense<0.000000e+00> : vector<16xf32>
    %224 = vector.multi_reduction <add>, %223, %cst_108 [1] : vector<16x32xf32> to vector<16xf32>
    %225 = vector.shape_cast %224 : vector<16xf32> to vector<16x1xf32>
    %cst_109 = arith.constant 3.200000e+01 : f32
    %226 = vector.broadcast %cst_109 : f32 to vector<16x1xf32>
    %227 = arith.divf %225, %226 : vector<16x1xf32>
    %228 = vector.broadcast %220 : vector<16x1xf32> to vector<16x32xf32>
    %229 = arith.subf %216, %228 : vector<16x32xf32>
    %cst_110 = arith.constant 9.99999974E-6 : f32
    %230 = vector.broadcast %cst_110 : f32 to vector<16x1xf32>
    %231 = arith.addf %227, %230 : vector<16x1xf32>
    %232 = math.rsqrt %231 : vector<16x1xf32>
    %233 = vector.broadcast %232 : vector<16x1xf32> to vector<16x32xf32>
    %234 = arith.mulf %229, %233 : vector<16x32xf32>
    %235 = vector.broadcast %38 : vector<1x32xf32> to vector<16x32xf32>
    %236 = arith.mulf %234, %235 : vector<16x32xf32>
    %237 = vector.broadcast %40 : vector<1x32xf32> to vector<16x32xf32>
    %238 = arith.addf %236, %237 : vector<16x32xf32>
    %cst_111 = arith.constant dense<0.000000e+00> : vector<32x8xf32>
    %239 = tpu.matmul %8, %48, %cst_111 {dimension_numbers = #tpu.dot_dimension_numbers<[1], [1], [0], [0], [0, 0, 1, 0], [], []>} : vector<32x32xf32>, vector<8x32xf32>, vector<32x8xf32> -> vector<32x8xf32>
    %240 = vector.broadcast %10 : vector<32x1xf32> to vector<32x8xf32>
    %241 = arith.addf %239, %240 : vector<32x8xf32>
    %cst_112 = arith.constant dense<0.000000e+00> : vector<64x16xf32>
    %242 = tpu.matmul %12, %238, %cst_112 {dimension_numbers = #tpu.dot_dimension_numbers<[1], [1], [0], [0], [0, 0, 1, 0], [], []>} : vector<64x32xf32>, vector<16x32xf32>, vector<64x16xf32> -> vector<64x16xf32>
    %243 = vector.broadcast %14 : vector<64x1xf32> to vector<64x16xf32>
    %244 = arith.addf %242, %243 : vector<64x16xf32>
    %245 = vector.shape_cast %46 : vector<8x16xf32> to vector<8x1x16xf32>
    %246 = vector.shape_cast %41 : vector<16x16xf32> to vector<1x16x16xf32>
    %247 = vector.broadcast %245 : vector<8x1x16xf32> to vector<8x16x16xf32>
    %248 = vector.broadcast %246 : vector<1x16x16xf32> to vector<8x16x16xf32>
    %249 = arith.subf %247, %248 : vector<8x16x16xf32>
    %cst_113 = arith.constant 0.000000e+00 : f32
    %250 = vector.broadcast %cst_113 : f32 to vector<8x16x16xf32>
    %251 = arith.maximumf %249, %250 : vector<8x16x16xf32>
    %cst_114 = arith.constant 0.000000e+00 : f32
    %252 = vector.broadcast %cst_114 : f32 to vector<8x32xf32>
    %253 = vector.extract_strided_slice %241 {offsets = [0, 0], sizes = [8, 8], strides = [1, 1]} : vector<32x8xf32> to vector<8x8xf32>
    %254 = vector.extract_strided_slice %244 {offsets = [0, 0], sizes = [8, 16], strides = [1, 1]} : vector<64x16xf32> to vector<8x16xf32>
    %255 = vector.extract_strided_slice %244 {offsets = [32, 0], sizes = [8, 16], strides = [1, 1]} : vector<64x16xf32> to vector<8x16xf32>
    %256 = vector.extract_strided_slice %24 {offsets = [0, 0], sizes = [1, 16], strides = [1, 1]} : vector<4x16xf32> to vector<1x16xf32>
    %257 = vector.shape_cast %256 : vector<1x16xf32> to vector<1x1x16xf32>
    %258 = vector.broadcast %257 : vector<1x1x16xf32> to vector<8x16x16xf32>
    %259 = arith.mulf %251, %258 : vector<8x16x16xf32>
    %cst_115 = arith.constant dense<0.000000e+00> : vector<8x16xf32>
    %260 = vector.multi_reduction <add>, %259, %cst_115 [2] : vector<8x16x16xf32> to vector<8x16xf32>
    %cst_116 = arith.constant dense<0.000000e+00> : vector<8x16xf32>
    %261 = tpu.matmul %253, %254, %cst_116 {dimension_numbers = #tpu.dot_dimension_numbers<[0], [0], [1], [1], [0, 1, 1, 1], [], []>} : vector<8x8xf32>, vector<8x16xf32>, vector<8x16xf32> -> vector<8x16xf32>
    %cst_117 = arith.constant 0.353553385 : f32
    %262 = vector.broadcast %cst_117 : f32 to vector<8x16xf32>
    %263 = arith.mulf %261, %262 : vector<8x16xf32>
    %264 = arith.addf %263, %260 : vector<8x16xf32>
    %cst_118 = arith.constant dense<0xFF800000> : vector<8xf32>
    %265 = vector.multi_reduction <maximumf>, %264, %cst_118 [1] : vector<8x16xf32> to vector<8xf32>
    %266 = vector.shape_cast %265 : vector<8xf32> to vector<8x1xf32>
    %267 = vector.broadcast %266 : vector<8x1xf32> to vector<8x16xf32>
    %268 = arith.subf %264, %267 : vector<8x16xf32>
    %269 = math.exp %268 : vector<8x16xf32>
    %cst_119 = arith.constant dense<0.000000e+00> : vector<8xf32>
    %270 = vector.multi_reduction <add>, %269, %cst_119 [1] : vector<8x16xf32> to vector<8xf32>
    %271 = vector.shape_cast %270 : vector<8xf32> to vector<8x1xf32>
    %272 = tpu.reciprocal %271 {approx = true} : vector<8x1xf32> -> vector<8x1xf32>
    %273 = arith.mulf %271, %272 : vector<8x1xf32>
    %cst_120 = arith.constant 2.000000e+00 : f32
    %274 = vector.broadcast %cst_120 : f32 to vector<8x1xf32>
    %275 = arith.subf %274, %273 : vector<8x1xf32>
    %276 = arith.mulf %272, %275 : vector<8x1xf32>
    %277 = vector.broadcast %276 : vector<8x1xf32> to vector<8x16xf32>
    %278 = arith.mulf %269, %277 : vector<8x16xf32>
    %cst_121 = arith.constant dense<0.000000e+00> : vector<8x8xf32>
    %279 = tpu.matmul %278, %255, %cst_121 {dimension_numbers = #tpu.dot_dimension_numbers<[1], [1], [0], [0], [0, 0, 1, 0], [], []>} : vector<8x16xf32>, vector<8x16xf32>, vector<8x8xf32> -> vector<8x8xf32>
    %280 = vector.extract_strided_slice %16 {offsets = [0, 0], sizes = [8, 32], strides = [1, 1]} : vector<32x32xf32> to vector<8x32xf32>
    %cst_122 = arith.constant dense<0.000000e+00> : vector<8x32xf32>
    %281 = tpu.matmul %279, %280, %cst_122 {dimension_numbers = #tpu.dot_dimension_numbers<[1], [0], [0], [1], [0, 0, 1, 1], [], []>} : vector<8x8xf32>, vector<8x32xf32>, vector<8x32xf32> -> vector<8x32xf32>
    %282 = arith.addf %252, %281 : vector<8x32xf32>
    %283 = vector.extract_strided_slice %241 {offsets = [8, 0], sizes = [8, 8], strides = [1, 1]} : vector<32x8xf32> to vector<8x8xf32>
    %284 = vector.extract_strided_slice %244 {offsets = [8, 0], sizes = [8, 16], strides = [1, 1]} : vector<64x16xf32> to vector<8x16xf32>
    %285 = vector.extract_strided_slice %244 {offsets = [40, 0], sizes = [8, 16], strides = [1, 1]} : vector<64x16xf32> to vector<8x16xf32>
    %286 = vector.extract_strided_slice %24 {offsets = [1, 0], sizes = [1, 16], strides = [1, 1]} : vector<4x16xf32> to vector<1x16xf32>
    %287 = vector.shape_cast %286 : vector<1x16xf32> to vector<1x1x16xf32>
    %288 = vector.broadcast %287 : vector<1x1x16xf32> to vector<8x16x16xf32>
    %289 = arith.mulf %251, %288 : vector<8x16x16xf32>
    %cst_123 = arith.constant dense<0.000000e+00> : vector<8x16xf32>
    %290 = vector.multi_reduction <add>, %289, %cst_123 [2] : vector<8x16x16xf32> to vector<8x16xf32>
    %cst_124 = arith.constant dense<0.000000e+00> : vector<8x16xf32>
    %291 = tpu.matmul %283, %284, %cst_124 {dimension_numbers = #tpu.dot_dimension_numbers<[0], [0], [1], [1], [0, 1, 1, 1], [], []>} : vector<8x8xf32>, vector<8x16xf32>, vector<8x16xf32> -> vector<8x16xf32>
    %cst_125 = arith.constant 0.353553385 : f32
    %292 = vector.broadcast %cst_125 : f32 to vector<8x16xf32>
    %293 = arith.mulf %291, %292 : vector<8x16xf32>
    %294 = arith.addf %293, %290 : vector<8x16xf32>
    %cst_126 = arith.constant dense<0xFF800000> : vector<8xf32>
    %295 = vector.multi_reduction <maximumf>, %294, %cst_126 [1] : vector<8x16xf32> to vector<8xf32>
    %296 = vector.shape_cast %295 : vector<8xf32> to vector<8x1xf32>
    %297 = vector.broadcast %296 : vector<8x1xf32> to vector<8x16xf32>
    %298 = arith.subf %294, %297 : vector<8x16xf32>
    %299 = math.exp %298 : vector<8x16xf32>
    %cst_127 = arith.constant dense<0.000000e+00> : vector<8xf32>
    %300 = vector.multi_reduction <add>, %299, %cst_127 [1] : vector<8x16xf32> to vector<8xf32>
    %301 = vector.shape_cast %300 : vector<8xf32> to vector<8x1xf32>
    %302 = tpu.reciprocal %301 {approx = true} : vector<8x1xf32> -> vector<8x1xf32>
    %303 = arith.mulf %301, %302 : vector<8x1xf32>
    %cst_128 = arith.constant 2.000000e+00 : f32
    %304 = vector.broadcast %cst_128 : f32 to vector<8x1xf32>
    %305 = arith.subf %304, %303 : vector<8x1xf32>
    %306 = arith.mulf %302, %305 : vector<8x1xf32>
    %307 = vector.broadcast %306 : vector<8x1xf32> to vector<8x16xf32>
    %308 = arith.mulf %299, %307 : vector<8x16xf32>
    %cst_129 = arith.constant dense<0.000000e+00> : vector<8x8xf32>
    %309 = tpu.matmul %308, %285, %cst_129 {dimension_numbers = #tpu.dot_dimension_numbers<[1], [1], [0], [0], [0, 0, 1, 0], [], []>} : vector<8x16xf32>, vector<8x16xf32>, vector<8x8xf32> -> vector<8x8xf32>
    %310 = vector.extract_strided_slice %16 {offsets = [8, 0], sizes = [8, 32], strides = [1, 1]} : vector<32x32xf32> to vector<8x32xf32>
    %cst_130 = arith.constant dense<0.000000e+00> : vector<8x32xf32>
    %311 = tpu.matmul %309, %310, %cst_130 {dimension_numbers = #tpu.dot_dimension_numbers<[1], [0], [0], [1], [0, 0, 1, 1], [], []>} : vector<8x8xf32>, vector<8x32xf32>, vector<8x32xf32> -> vector<8x32xf32>
    %312 = arith.addf %282, %311 : vector<8x32xf32>
    %313 = vector.extract_strided_slice %241 {offsets = [16, 0], sizes = [8, 8], strides = [1, 1]} : vector<32x8xf32> to vector<8x8xf32>
    %314 = vector.extract_strided_slice %244 {offsets = [16, 0], sizes = [8, 16], strides = [1, 1]} : vector<64x16xf32> to vector<8x16xf32>
    %315 = vector.extract_strided_slice %244 {offsets = [48, 0], sizes = [8, 16], strides = [1, 1]} : vector<64x16xf32> to vector<8x16xf32>
    %316 = vector.extract_strided_slice %24 {offsets = [2, 0], sizes = [1, 16], strides = [1, 1]} : vector<4x16xf32> to vector<1x16xf32>
    %317 = vector.shape_cast %316 : vector<1x16xf32> to vector<1x1x16xf32>
    %318 = vector.broadcast %317 : vector<1x1x16xf32> to vector<8x16x16xf32>
    %319 = arith.mulf %251, %318 : vector<8x16x16xf32>
    %cst_131 = arith.constant dense<0.000000e+00> : vector<8x16xf32>
    %320 = vector.multi_reduction <add>, %319, %cst_131 [2] : vector<8x16x16xf32> to vector<8x16xf32>
    %cst_132 = arith.constant dense<0.000000e+00> : vector<8x16xf32>
    %321 = tpu.matmul %313, %314, %cst_132 {dimension_numbers = #tpu.dot_dimension_numbers<[0], [0], [1], [1], [0, 1, 1, 1], [], []>} : vector<8x8xf32>, vector<8x16xf32>, vector<8x16xf32> -> vector<8x16xf32>
    %cst_133 = arith.constant 0.353553385 : f32
    %322 = vector.broadcast %cst_133 : f32 to vector<8x16xf32>
    %323 = arith.mulf %321, %322 : vector<8x16xf32>
    %324 = arith.addf %323, %320 : vector<8x16xf32>
    %cst_134 = arith.constant dense<0xFF800000> : vector<8xf32>
    %325 = vector.multi_reduction <maximumf>, %324, %cst_134 [1] : vector<8x16xf32> to vector<8xf32>
    %326 = vector.shape_cast %325 : vector<8xf32> to vector<8x1xf32>
    %327 = vector.broadcast %326 : vector<8x1xf32> to vector<8x16xf32>
    %328 = arith.subf %324, %327 : vector<8x16xf32>
    %329 = math.exp %328 : vector<8x16xf32>
    %cst_135 = arith.constant dense<0.000000e+00> : vector<8xf32>
    %330 = vector.multi_reduction <add>, %329, %cst_135 [1] : vector<8x16xf32> to vector<8xf32>
    %331 = vector.shape_cast %330 : vector<8xf32> to vector<8x1xf32>
    %332 = tpu.reciprocal %331 {approx = true} : vector<8x1xf32> -> vector<8x1xf32>
    %333 = arith.mulf %331, %332 : vector<8x1xf32>
    %cst_136 = arith.constant 2.000000e+00 : f32
    %334 = vector.broadcast %cst_136 : f32 to vector<8x1xf32>
    %335 = arith.subf %334, %333 : vector<8x1xf32>
    %336 = arith.mulf %332, %335 : vector<8x1xf32>
    %337 = vector.broadcast %336 : vector<8x1xf32> to vector<8x16xf32>
    %338 = arith.mulf %329, %337 : vector<8x16xf32>
    %cst_137 = arith.constant dense<0.000000e+00> : vector<8x8xf32>
    %339 = tpu.matmul %338, %315, %cst_137 {dimension_numbers = #tpu.dot_dimension_numbers<[1], [1], [0], [0], [0, 0, 1, 0], [], []>} : vector<8x16xf32>, vector<8x16xf32>, vector<8x8xf32> -> vector<8x8xf32>
    %340 = vector.extract_strided_slice %16 {offsets = [16, 0], sizes = [8, 32], strides = [1, 1]} : vector<32x32xf32> to vector<8x32xf32>
    %cst_138 = arith.constant dense<0.000000e+00> : vector<8x32xf32>
    %341 = tpu.matmul %339, %340, %cst_138 {dimension_numbers = #tpu.dot_dimension_numbers<[1], [0], [0], [1], [0, 0, 1, 1], [], []>} : vector<8x8xf32>, vector<8x32xf32>, vector<8x32xf32> -> vector<8x32xf32>
    %342 = arith.addf %312, %341 : vector<8x32xf32>
    %343 = vector.extract_strided_slice %241 {offsets = [24, 0], sizes = [8, 8], strides = [1, 1]} : vector<32x8xf32> to vector<8x8xf32>
    %344 = vector.extract_strided_slice %244 {offsets = [24, 0], sizes = [8, 16], strides = [1, 1]} : vector<64x16xf32> to vector<8x16xf32>
    %345 = vector.extract_strided_slice %244 {offsets = [56, 0], sizes = [8, 16], strides = [1, 1]} : vector<64x16xf32> to vector<8x16xf32>
    %346 = vector.extract_strided_slice %24 {offsets = [3, 0], sizes = [1, 16], strides = [1, 1]} : vector<4x16xf32> to vector<1x16xf32>
    %347 = vector.shape_cast %346 : vector<1x16xf32> to vector<1x1x16xf32>
    %348 = vector.broadcast %347 : vector<1x1x16xf32> to vector<8x16x16xf32>
    %349 = arith.mulf %251, %348 : vector<8x16x16xf32>
    %cst_139 = arith.constant dense<0.000000e+00> : vector<8x16xf32>
    %350 = vector.multi_reduction <add>, %349, %cst_139 [2] : vector<8x16x16xf32> to vector<8x16xf32>
    %cst_140 = arith.constant dense<0.000000e+00> : vector<8x16xf32>
    %351 = tpu.matmul %343, %344, %cst_140 {dimension_numbers = #tpu.dot_dimension_numbers<[0], [0], [1], [1], [0, 1, 1, 1], [], []>} : vector<8x8xf32>, vector<8x16xf32>, vector<8x16xf32> -> vector<8x16xf32>
    %cst_141 = arith.constant 0.353553385 : f32
    %352 = vector.broadcast %cst_141 : f32 to vector<8x16xf32>
    %353 = arith.mulf %351, %352 : vector<8x16xf32>
    %354 = arith.addf %353, %350 : vector<8x16xf32>
    %cst_142 = arith.constant dense<0xFF800000> : vector<8xf32>
    %355 = vector.multi_reduction <maximumf>, %354, %cst_142 [1] : vector<8x16xf32> to vector<8xf32>
    %356 = vector.shape_cast %355 : vector<8xf32> to vector<8x1xf32>
    %357 = vector.broadcast %356 : vector<8x1xf32> to vector<8x16xf32>
    %358 = arith.subf %354, %357 : vector<8x16xf32>
    %359 = math.exp %358 : vector<8x16xf32>
    %cst_143 = arith.constant dense<0.000000e+00> : vector<8xf32>
    %360 = vector.multi_reduction <add>, %359, %cst_143 [1] : vector<8x16xf32> to vector<8xf32>
    %361 = vector.shape_cast %360 : vector<8xf32> to vector<8x1xf32>
    %362 = tpu.reciprocal %361 {approx = true} : vector<8x1xf32> -> vector<8x1xf32>
    %363 = arith.mulf %361, %362 : vector<8x1xf32>
    %cst_144 = arith.constant 2.000000e+00 : f32
    %364 = vector.broadcast %cst_144 : f32 to vector<8x1xf32>
    %365 = arith.subf %364, %363 : vector<8x1xf32>
    %366 = arith.mulf %362, %365 : vector<8x1xf32>
    %367 = vector.broadcast %366 : vector<8x1xf32> to vector<8x16xf32>
    %368 = arith.mulf %359, %367 : vector<8x16xf32>
    %cst_145 = arith.constant dense<0.000000e+00> : vector<8x8xf32>
    %369 = tpu.matmul %368, %345, %cst_145 {dimension_numbers = #tpu.dot_dimension_numbers<[1], [1], [0], [0], [0, 0, 1, 0], [], []>} : vector<8x16xf32>, vector<8x16xf32>, vector<8x8xf32> -> vector<8x8xf32>
    %370 = vector.extract_strided_slice %16 {offsets = [24, 0], sizes = [8, 32], strides = [1, 1]} : vector<32x32xf32> to vector<8x32xf32>
    %cst_146 = arith.constant dense<0.000000e+00> : vector<8x32xf32>
    %371 = tpu.matmul %369, %370, %cst_146 {dimension_numbers = #tpu.dot_dimension_numbers<[1], [0], [0], [1], [0, 0, 1, 1], [], []>} : vector<8x8xf32>, vector<8x32xf32>, vector<8x32xf32> -> vector<8x32xf32>
    %372 = arith.addf %342, %371 : vector<8x32xf32>
    %373 = vector.broadcast %18 : vector<1x32xf32> to vector<8x32xf32>
    %374 = arith.addf %372, %373 : vector<8x32xf32>
    %375 = arith.addf %48, %374 : vector<8x32xf32>
    %cst_147 = arith.constant dense<0.000000e+00> : vector<8xf32>
    %376 = vector.multi_reduction <add>, %375, %cst_147 [1] : vector<8x32xf32> to vector<8xf32>
    %377 = vector.shape_cast %376 : vector<8xf32> to vector<8x1xf32>
    %cst_148 = arith.constant 3.200000e+01 : f32
    %378 = vector.broadcast %cst_148 : f32 to vector<8x1xf32>
    %379 = arith.divf %377, %378 : vector<8x1xf32>
    %380 = vector.broadcast %379 : vector<8x1xf32> to vector<8x32xf32>
    %381 = arith.subf %375, %380 : vector<8x32xf32>
    %382 = arith.mulf %381, %381 : vector<8x32xf32>
    %cst_149 = arith.constant dense<0.000000e+00> : vector<8xf32>
    %383 = vector.multi_reduction <add>, %382, %cst_149 [1] : vector<8x32xf32> to vector<8xf32>
    %384 = vector.shape_cast %383 : vector<8xf32> to vector<8x1xf32>
    %cst_150 = arith.constant 3.200000e+01 : f32
    %385 = vector.broadcast %cst_150 : f32 to vector<8x1xf32>
    %386 = arith.divf %384, %385 : vector<8x1xf32>
    %387 = vector.broadcast %379 : vector<8x1xf32> to vector<8x32xf32>
    %388 = arith.subf %375, %387 : vector<8x32xf32>
    %cst_151 = arith.constant 9.99999974E-6 : f32
    %389 = vector.broadcast %cst_151 : f32 to vector<8x1xf32>
    %390 = arith.addf %386, %389 : vector<8x1xf32>
    %391 = math.rsqrt %390 : vector<8x1xf32>
    %392 = vector.broadcast %391 : vector<8x1xf32> to vector<8x32xf32>
    %393 = arith.mulf %388, %392 : vector<8x32xf32>
    %394 = vector.broadcast %34 : vector<1x32xf32> to vector<8x32xf32>
    %395 = arith.mulf %393, %394 : vector<8x32xf32>
    %396 = vector.broadcast %36 : vector<1x32xf32> to vector<8x32xf32>
    %397 = arith.addf %395, %396 : vector<8x32xf32>
    %cst_152 = arith.constant dense<0.000000e+00> : vector<8x64xf32>
    %398 = tpu.matmul %397, %26, %cst_152 {dimension_numbers = #tpu.dot_dimension_numbers<[1], [0], [0], [1], [0, 0, 1, 1], [], []>} : vector<8x32xf32>, vector<32x64xf32>, vector<8x64xf32> -> vector<8x64xf32>
    %399 = vector.broadcast %28 : vector<1x64xf32> to vector<8x64xf32>
    %400 = arith.addf %398, %399 : vector<8x64xf32>
    %cst_153 = arith.constant 0.000000e+00 : f32
    %401 = vector.broadcast %cst_153 : f32 to vector<8x64xf32>
    %402 = arith.maximumf %400, %401 : vector<8x64xf32>
    %cst_154 = arith.constant dense<0.000000e+00> : vector<8x32xf32>
    %403 = tpu.matmul %402, %30, %cst_154 {dimension_numbers = #tpu.dot_dimension_numbers<[1], [0], [0], [1], [0, 0, 1, 1], [], []>} : vector<8x64xf32>, vector<64x32xf32>, vector<8x32xf32> -> vector<8x32xf32>
    %404 = vector.broadcast %32 : vector<1x32xf32> to vector<8x32xf32>
    %405 = arith.addf %403, %404 : vector<8x32xf32>
    %406 = arith.addf %397, %405 : vector<8x32xf32>
    %cst_155 = arith.constant dense<0.000000e+00> : vector<8xf32>
    %407 = vector.multi_reduction <add>, %406, %cst_155 [1] : vector<8x32xf32> to vector<8xf32>
    %408 = vector.shape_cast %407 : vector<8xf32> to vector<8x1xf32>
    %cst_156 = arith.constant 3.200000e+01 : f32
    %409 = vector.broadcast %cst_156 : f32 to vector<8x1xf32>
    %410 = arith.divf %408, %409 : vector<8x1xf32>
    %411 = vector.broadcast %410 : vector<8x1xf32> to vector<8x32xf32>
    %412 = arith.subf %406, %411 : vector<8x32xf32>
    %413 = arith.mulf %412, %412 : vector<8x32xf32>
    %cst_157 = arith.constant dense<0.000000e+00> : vector<8xf32>
    %414 = vector.multi_reduction <add>, %413, %cst_157 [1] : vector<8x32xf32> to vector<8xf32>
    %415 = vector.shape_cast %414 : vector<8xf32> to vector<8x1xf32>
    %cst_158 = arith.constant 3.200000e+01 : f32
    %416 = vector.broadcast %cst_158 : f32 to vector<8x1xf32>
    %417 = arith.divf %415, %416 : vector<8x1xf32>
    %418 = vector.broadcast %410 : vector<8x1xf32> to vector<8x32xf32>
    %419 = arith.subf %406, %418 : vector<8x32xf32>
    %cst_159 = arith.constant 9.99999974E-6 : f32
    %420 = vector.broadcast %cst_159 : f32 to vector<8x1xf32>
    %421 = arith.addf %417, %420 : vector<8x1xf32>
    %422 = math.rsqrt %421 : vector<8x1xf32>
    %423 = vector.broadcast %422 : vector<8x1xf32> to vector<8x32xf32>
    %424 = arith.mulf %419, %423 : vector<8x32xf32>
    %425 = vector.broadcast %38 : vector<1x32xf32> to vector<8x32xf32>
    %426 = arith.mulf %424, %425 : vector<8x32xf32>
    %427 = vector.broadcast %40 : vector<1x32xf32> to vector<8x32xf32>
    %428 = arith.addf %426, %427 : vector<8x32xf32>
    %c0_160 = arith.constant 0 : index
    %c0_161 = arith.constant 0 : index
    %429 = vector.load %arg24[%c0_160, %c0_161] : memref<16x32xf32, #tpu.memory_space<vmem>>, vector<16x32xf32>
    tpu.vector_store %arg24[%c0_160, %c0_161], %238 {strides = array<i32>} : memref<16x32xf32, #tpu.memory_space<vmem>>, vector<16x32xf32>,
    %c0_162 = arith.constant 0 : index
    %c0_163 = arith.constant 0 : index
    %430 = vector.load %arg25[%c0_162, %c0_163] : memref<8x32xf32, #tpu.memory_space<vmem>>, vector<8x32xf32>
    tpu.vector_store %arg25[%c0_162, %c0_163], %428 {strides = array<i32>} : memref<8x32xf32, #tpu.memory_space<vmem>>, vector<8x32xf32>,
    %c1_i32 = arith.constant 1 : i32
    %431 = arith.cmpi eq, %arg1, %c1_i32 : i32
    %432 = arith.extui %431 : i1 to i32
    %c0_i32_164 = arith.constant 0 : i32
    %433 = arith.cmpi ne, %432, %c0_i32_164 : i32
    scf.if %433 {
      %c0_165 = arith.constant 0 : index
      %c0_166 = arith.constant 0 : index
      %c0_167 = arith.constant 0 : index
      %434 = vector.load %arg23[%c0_165, %c0_166, %c0_167] : memref<1x8x32xf32, #tpu.memory_space<vmem>>, vector<1x8x32xf32>
      %435 = vector.shape_cast %434 : vector<1x8x32xf32> to vector<8x32xf32>
      %436 = vector.shape_cast %428 : vector<8x32xf32> to vector<1x8x32xf32>
      tpu.vector_store %arg23[%c0_165, %c0_166, %c0_167], %436 {strides = array<i32>} : memref<1x8x32xf32, #tpu.memory_space<vmem>>, vector<1x8x32xf32>,
    } else {
    }
    return
  }
  func.func @transform_0(%arg0: i32, %arg1: i32) -> (i32, i32, i32) {
    %c0_i32 = arith.constant 0 : i32
    %c0_i32_0 = arith.constant 0 : i32
    %c0_i32_1 = arith.constant 0 : i32
    return %arg0, %c0_i32, %c0_i32_0 : i32, i32, i32
  }
  func.func @transform_1(%arg0: i32, %arg1: i32) -> (i32, i32, i32) {
    %c0_i32 = arith.constant 0 : i32
    %c0_i32_0 = arith.constant 0 : i32
    %c0_i32_1 = arith.constant 0 : i32
    return %arg0, %c0_i32, %c0_i32_0 : i32, i32, i32
  }
  func.func @transform_2(%arg0: i32, %arg1: i32) -> (i32, i32, i32) {
    %c0_i32 = arith.constant 0 : i32
    %c0_i32_0 = arith.constant 0 : i32
    %c0_i32_1 = arith.constant 0 : i32
    return %arg0, %c0_i32, %c0_i32_0 : i32, i32, i32
  }
  func.func @transform_3(%arg0: i32, %arg1: i32) -> (i32, i32, i32) {
    %c0_i32 = arith.constant 0 : i32
    %c0_i32_0 = arith.constant 0 : i32
    %c0_i32_1 = arith.constant 0 : i32
    return %arg0, %c0_i32, %c0_i32_0 : i32, i32, i32
  }
  func.func @transform_4(%arg0: i32, %arg1: i32) -> (i32, i32, i32) {
    %c0_i32 = arith.constant 0 : i32
    %c0_i32_0 = arith.constant 0 : i32
    %c0_i32_1 = arith.constant 0 : i32
    return %arg1, %c0_i32, %c0_i32_0 : i32, i32, i32
  }
  func.func @transform_5(%arg0: i32, %arg1: i32) -> (i32, i32, i32) {
    %c0_i32 = arith.constant 0 : i32
    %c0_i32_0 = arith.constant 0 : i32
    %c0_i32_1 = arith.constant 0 : i32
    return %arg1, %c0_i32, %c0_i32_0 : i32, i32, i32
  }
  func.func @transform_6(%arg0: i32, %arg1: i32) -> (i32, i32, i32) {
    %c0_i32 = arith.constant 0 : i32
    %c0_i32_0 = arith.constant 0 : i32
    %c0_i32_1 = arith.constant 0 : i32
    return %arg1, %c0_i32, %c0_i32_0 : i32, i32, i32
  }
  func.func @transform_7(%arg0: i32, %arg1: i32) -> (i32, i32, i32) {
    %c0_i32 = arith.constant 0 : i32
    %c0_i32_0 = arith.constant 0 : i32
    %c0_i32_1 = arith.constant 0 : i32
    return %arg1, %c0_i32, %c0_i32_0 : i32, i32, i32
  }
  func.func @transform_8(%arg0: i32, %arg1: i32) -> (i32, i32, i32) {
    %c0_i32 = arith.constant 0 : i32
    %c0_i32_0 = arith.constant 0 : i32
    %c0_i32_1 = arith.constant 0 : i32
    return %arg1, %c0_i32, %c0_i32_0 : i32, i32, i32
  }
  func.func @transform_9(%arg0: i32, %arg1: i32) -> (i32, i32, i32) {
    %c0_i32 = arith.constant 0 : i32
    %c0_i32_0 = arith.constant 0 : i32
    %c0_i32_1 = arith.constant 0 : i32
    return %arg1, %c0_i32, %c0_i32_0 : i32, i32, i32
  }
  func.func @transform_10(%arg0: i32, %arg1: i32) -> (i32, i32, i32) {
    %c0_i32 = arith.constant 0 : i32
    %c0_i32_0 = arith.constant 0 : i32
    %c0_i32_1 = arith.constant 0 : i32
    return %arg1, %c0_i32, %c0_i32_0 : i32, i32, i32
  }
  func.func @transform_11(%arg0: i32, %arg1: i32) -> (i32, i32, i32) {
    %c0_i32 = arith.constant 0 : i32
    %c0_i32_0 = arith.constant 0 : i32
    %c0_i32_1 = arith.constant 0 : i32
    return %arg1, %c0_i32, %c0_i32_0 : i32, i32, i32
  }
  func.func @transform_12(%arg0: i32, %arg1: i32) -> (i32, i32, i32) {
    %c0_i32 = arith.constant 0 : i32
    %c0_i32_0 = arith.constant 0 : i32
    %c0_i32_1 = arith.constant 0 : i32
    return %arg1, %c0_i32, %c0_i32_0 : i32, i32, i32
  }
  func.func @transform_13(%arg0: i32, %arg1: i32) -> (i32, i32, i32) {
    %c0_i32 = arith.constant 0 : i32
    %c0_i32_0 = arith.constant 0 : i32
    %c0_i32_1 = arith.constant 0 : i32
    return %arg1, %c0_i32, %c0_i32_0 : i32, i32, i32
  }
  func.func @transform_14(%arg0: i32, %arg1: i32) -> (i32, i32, i32) {
    %c0_i32 = arith.constant 0 : i32
    %c0_i32_0 = arith.constant 0 : i32
    %c0_i32_1 = arith.constant 0 : i32
    return %arg1, %c0_i32, %c0_i32_0 : i32, i32, i32
  }
  func.func @transform_15(%arg0: i32, %arg1: i32) -> (i32, i32, i32) {
    %c0_i32 = arith.constant 0 : i32
    %c0_i32_0 = arith.constant 0 : i32
    %c0_i32_1 = arith.constant 0 : i32
    return %arg1, %c0_i32, %c0_i32_0 : i32, i32, i32
  }
  func.func @transform_16(%arg0: i32, %arg1: i32) -> (i32, i32, i32) {
    %c0_i32 = arith.constant 0 : i32
    %c0_i32_0 = arith.constant 0 : i32
    %c0_i32_1 = arith.constant 0 : i32
    return %arg1, %c0_i32, %c0_i32_0 : i32, i32, i32
  }
  func.func @transform_17(%arg0: i32, %arg1: i32) -> (i32, i32, i32) {
    %c0_i32 = arith.constant 0 : i32
    %c0_i32_0 = arith.constant 0 : i32
    %c0_i32_1 = arith.constant 0 : i32
    return %arg1, %c0_i32, %c0_i32_0 : i32, i32, i32
  }
  func.func @transform_18(%arg0: i32, %arg1: i32) -> (i32, i32, i32) {
    %c0_i32 = arith.constant 0 : i32
    %c0_i32_0 = arith.constant 0 : i32
    %c0_i32_1 = arith.constant 0 : i32
    return %arg1, %c0_i32, %c0_i32_0 : i32, i32, i32
  }
  func.func @transform_19(%arg0: i32, %arg1: i32) -> (i32, i32, i32) {
    %c0_i32 = arith.constant 0 : i32
    %c0_i32_0 = arith.constant 0 : i32
    %c0_i32_1 = arith.constant 0 : i32
    return %arg1, %c0_i32, %c0_i32_0 : i32, i32, i32
  }
  func.func @transform_20(%arg0: i32, %arg1: i32) -> (i32, i32, i32) {
    %c0_i32 = arith.constant 0 : i32
    %c0_i32_0 = arith.constant 0 : i32
    %c0_i32_1 = arith.constant 0 : i32
    return %arg1, %c0_i32, %c0_i32_0 : i32, i32, i32
  }
  func.func @transform_21(%arg0: i32, %arg1: i32) -> (i32, i32, i32) {
    %c0_i32 = arith.constant 0 : i32
    %c0_i32_0 = arith.constant 0 : i32
    %c0_i32_1 = arith.constant 0 : i32
    return %arg0, %c0_i32, %c0_i32_0 : i32, i32, i32
  }
}

</mosaic_0001>

<bundles_post_ra>
// kernel: tetnp_transformer_encoder.1
= control target key start
LH: loop header
LB: loop body
LE: loop exit
PB: predicated region body
PF: predicated region fallthrough
CT: control target
= control target key end

     0   :  { %s10324_s0 = inlined_call_operand.vmem [shape: f32[2,16,32], index: 0, kind: input, shape index: {}]   ;;  %s10325_s1 = inlined_call_operand.vmem [shape: f32[2,8,32], index: 1, kind: input, shape index: {}]   ;;  %s10326_s2 = inlined_call_operand.vmem [shape: f32[2,16,2], index: 2, kind: input, shape index: {}]   ;;  %s10327_s3 = inlined_call_operand.vmem [shape: f32[2,8,2], index: 3, kind: input, shape index: {}]   ;;  %s10328_s4 = inlined_call_operand.vmem [shape: f32[2,32,32], index: 4, kind: input, shape index: {}]   ;;  %s10329_s5 = inlined_call_operand.vmem [shape: f32[2,32,1], index: 5, kind: input, shape index: {}]   ;;  %s10330_s6 = inlined_call_operand.vmem [shape: f32[2,64,32], index: 6, kind: input, shape index: {}]   ;;  %s10331_s7 = inlined_call_operand.vmem [shape: f32[2,64,1], index: 7, kind: input, shape index: {}]   ;;  %s10332_s8 = inlined_call_operand.vmem [shape: f32[2,32,32], index: 8, kind: input, shape index: {}]   ;;  %s10333_s9 = inlined_call_operand.vmem [shape: f32[2,1,32], index: 9, kind: input, shape index: {}]   ;;  %s10334_s10 = inlined_call_operand.vmem [shape: f32[2,2,16], index: 10, kind: input, shape index: {}]   ;;  %s10335_s11 = inlined_call_operand.vmem [shape: f32[2,1,16], index: 11, kind: input, shape index: {}]   ;;  %s10336_s12 = inlined_call_operand.vmem [shape: f32[2,4,16], index: 12, kind: input, shape index: {}]   ;;  %s10337_s13 = inlined_call_operand.vmem [shape: f32[2,32,64], index: 13, kind: input, shape index: {}]   ;;  %s10338_s14 = inlined_call_operand.vmem [shape: f32[2,1,64], index: 14, kind: input, shape index: {}]   ;;  %s10339_s15 = inlined_call_operand.vmem [shape: f32[2,64,32], index: 15, kind: input, shape index: {}]   ;;  %s10340_s16 = inlined_call_operand.vmem [shape: f32[2,1,32], index: 16, kind: input, shape index: {}]   ;;  %s10341_s17 = inlined_call_operand.vmem [shape: f32[2,1,32], index: 17, kind: input, shape index: {}]   ;;  %s10342_s18 = inlined_call_operand.vmem [shape: f32[2,1,32], index: 18, kind: input, shape index: {}]   ;;  %s10343_s19 = inlined_call_operand.vmem [shape: f32[2,1,32], index: 19, kind: input, shape index: {}]   ;;  %s10344_s20 = inlined_call_operand.vmem [shape: f32[2,1,32], index: 20, kind: input, shape index: {}]   ;;  %s10345_s21 = inlined_call_operand.hbm [shape: f32[2,8,32], index: 21, kind: output, shape index: {}]  }
   0x1   :  { %10423 = sst [smem:[#allocation138_spill]] %s10324_s0 }
   0x2   :  { %10424 = sst [smem:[#allocation139_spill]] %s10325_s1 }
   0x3   :  { %10425 = sst [smem:[#allocation140_spill]] %s10326_s2 }
   0x4   :  { %10426 = sst [smem:[#allocation141_spill]] %s10327_s3 }
   0x5   :  { %10427 = sst [smem:[#allocation142_spill]] %s10328_s4 }
   0x6   :  { %10428 = sst [smem:[#allocation143_spill]] %s10329_s5 }
   0x7   :  { %10429 = sst [smem:[#allocation144_spill]] %s10330_s6 }
   0x8   :  { %10430 = sst [smem:[#allocation145_spill]] %s10331_s7 }
   0x9   :  { %10431 = sst [smem:[#allocation146_spill]] %s10332_s8 }
   0xa   :  { %10432 = sst [smem:[#allocation147_spill]] %s10333_s9 }
   0xb   :  { %10433 = sst [smem:[#allocation148_spill]] %s10334_s10 }
   0xc   :  { %10434 = sst [smem:[#allocation149_spill]] %s10336_s12 }
   0xd   :  { %10435 = sst [smem:[#allocation150_spill]] %s10337_s13 }
   0xe   :  { %10436 = sst [smem:[#allocation151_spill]] %s10338_s14 }
   0xf   :  { %10437 = sst [smem:[#allocation152_spill]] %s10339_s15 }
  0x10   :  { %10438 = sst [smem:[#allocation153_spill]] %s10340_s16 }
  0x11   :  { %10439 = sst [smem:[#allocation154_spill]] %s10341_s17 }
  0x12   :  { %10440 = sst [smem:[#allocation155_spill]] %s10342_s18 }
  0x13   :  { %10441 = sst [smem:[#allocation156_spill]] %s10343_s19 }
  0x14   :  { %10442 = sst [smem:[#allocation157_spill]] %s10344_s20 }
  0x15   :  { %10443 = sst [smem:[#allocation158_spill]] %s10345_s21 }
  0x16   :  { %26 = vsyncpa [#allocation5], 0 }
  0x17   :  { %28 = vsyncpa [#allocation5 + $0x1], 0  ;;  %s8027_s2 = smov 0   ;;  %s8029_s25 = smov 0  }
  0x18   :  { %s8031_s26 = smov 0   ;;  %s8033_s27 = smov 0  }
  0x19   :  { %s8035_s3 = smov 0   ;;  %s8037_s28 = smov 0  }
  0x1a   :  { %s8039_s29 = smov 0   ;;  %s8041_s0 = smov 0  }
  0x1b LB: > { %10444 = sst [smem:[#allocation7_spill]] %s7882_s2  ;;  %s7136_s4 = sadd.s32 4294967295, %s7910_s0   ;;  %s7910_s0 = sphi %s8041_s0, %s34_s0   ;;  %s7906_s29 = sphi %s8039_s29, %s10733_s29   ;;  %s7902_s28 = sphi %s8037_s28, %s10732_s28   ;;  %s7898_s3 = sphi %s8035_s3, %s10731_s3   ;;  %s7894_s27 = sphi %s8033_s27, %s10730_s27   ;;  %s7890_s26 = sphi %s8031_s26, %s10729_s26   ;;  %s7886_s25 = sphi %s8029_s25, %s10728_s25   ;;  %s7882_s2 = sphi %s8027_s2, %s10727_s2  }
  0x1c   : > { %10445 = sst [smem:[#allocation8_spill]] %s7886_s25  ;;  %s7137_s30 = sadd.s32 4294967294, %s7910_s0  }
  0x1d   : > { %10446 = sst [smem:[#allocation9_spill]] %s7890_s26  ;;  %s43_s5 = sadd.s32 1, %s7902_s28 }
  0x1e   : > { %10447 = sst [smem:[#allocation10_spill]] %s7894_s27  ;;  %p44_p0 = scmp.ge.s32.totalorder %s43_s5, 2 }
  0x1f   : > { %10448 = sst [smem:[#allocation11_spill]] %s7898_s3  ;;  %s46_s22 = sadd.s32 1, %s7906_s29 }
  0x20   : > { %10449 = sst [smem:[#allocation12_spill]] %s7902_s28  ;;  %p609_p1 = scmp.ne.s32.totalorder %s7890_s26, %s7886_s25 }
  0x21   : > { %10450 = sst [smem:[#allocation13_spill]] %s7906_s29  ;;  %p610_p2 = scmp.eq.s32.totalorder %s7136_s4, 3 }
  0x22   : > { %10451 = sst [smem:[#allocation14_spill]] %s7910_s0  ;;  %s10735_s5 = smov (%p44_p0, %s43_s5), 0 }
  0x23   : > { %10452 = sst [smem:[#allocation15_spill]] %s10735_s5  ;;  %s10737_s22 = smov (!%p44_p0, %s46_s22), %s7906_s29 }
  0x24   : > { %p8076_p3 = por %p610_p2, %p609_p1  ;;  %p615_p4 = scmp.ne.s32.totalorder %s7886_s25, %s7882_s2 }
  0x25   : > { %p48_p5 = scmp.ge.s32.totalorder %s10737_s22, 2  ;;  %p616_p6 = scmp.eq.s32.totalorder %s7137_s30, 3 }
  0x26   : > { %s10453_s23 = scalar_select %p8076_p3, 1, 0 }
  0x27   : > { %p7140_p7 = scmp.ge.s32.totalorder %s7910_s0, 1  ;;  %p782_p8 = scmp.lt.s32.totalorder %s7910_s0, 5 }
  0x28   : > { %10454 = sst [smem:[#allocation16_spill]] %s10453_s23  ;;  %s10739_s22 = smov (%p48_p5, %s10737_s22), 0 }
  0x29   : > { %10455 = sst [smem:[#allocation17_spill]] %s10739_s22  ;;  %p8086_p9 = por %p616_p6, %p615_p4 }
  0x2a   : > { %p783_p10 = pnand %p7140_p7, %p782_p8  ;;  %s596_s24 = ssub.s32 %s7906_s29, %s10739_s22 }
  0x2b   : > { %s10456_s1 = scalar_select %p8086_p9, 1, 0 }
  0x2c   : > { %s599_s4 = sadd.s32 1, %s7890_s26  ;;  %p597_p11 = scmp.eq.s32.totalorder %s596_s24, 0 }
  0x2d   : > { %10457 = sst [smem:[#allocation18_spill]] %s10456_s1  ;;  %786 = sbr.rel (%p783_p10) target bundleno = 8105 (0x1fa9), region = 104 }
  0x2e   : > { %s8094_s5 = scalar_select %p597_p11, %s7890_s26, %s599_s4  }
  0x30   : > { %10458 = sst [smem:[#allocation19_spill]] %s8094_s5 }
  0x32   : > { %s10355_s30 = sand.u32 1, %s7886_s25   ;;  %p922_p12 = scmp.lt.s32.totalorder %s7898_s3, 1 }
  0x33   : > { %s8100_s28 = sshll.u32 %s10355_s30, 3  ;;  %p940_p13 = scmp.lt.s32.totalorder %s7894_s27, 1 }
  0x34   : > { %s923_s1 = scalar_select %p922_p12, %s7898_s3, 1 }
  0x35   : > { %s8105_s2 = scalar_select %p940_p13, %s7894_s27, 1 }
  0x36   : > { %s7264_s24 = sshll.u32 %s923_s1, 4  ;;  %s7144_s4 = sshll.u32 %s923_s1, 3 }
  0x37   : > { %s10459_s5 = sld [smem:[#allocation138_spill]]  ;;  %s7266_s1 = sshll.u32 %s8105_s2, 5 }
  0x38   : > { %s10460_s30 = sld [smem:[#allocation139_spill]]  ;;  %s7268_s29 = sshll.u32 %s8105_s2, 6 }
  0x39   : > { %s10461_s27 = sld [smem:[#allocation140_spill]]  ;;  %s7158_s3 = sshll.u32 %s8105_s2, 1 }
  0x3a   : > { %s10462_s17 = sld [smem:[#allocation141_spill]] }
  0x3b   : > { %s10463_s15 = sld [smem:[#allocation142_spill]] }
  0x3c   : > { %s10464_s25 = sld [smem:[#allocation143_spill]] }
  0x3d   : > { %s926_s26 = scalar_lea.vmem %s10459_s5, %s7264_s24  ;;  %s10466_s6 = sld [smem:[#allocation144_spill]] }
  0x3e   : > { %s930_s23 = scalar_lea.vmem %s10460_s30, %s7144_s4  ;;  %s10468_s7 = sld [smem:[#allocation145_spill]] }
  0x3f   : > { %s8116_s20 = scalar_lea.vmem %s10461_s27, %s7264_s24  ;;  %s10470_s8 = sld [smem:[#allocation146_spill]] }
  0x40   : > { %s8121_s16 = scalar_lea.vmem %s10462_s17, %s7144_s4  ;;  %s10472_s9 = sld [smem:[#allocation147_spill]] }
  0x41   : > { %s8128_s21 = scalar_lea.vmem %s10463_s15, %s7266_s1  ;;  %s10473_s10 = sld [smem:[#allocation148_spill]] }
  0x42   : > { %s8133_s27 = scalar_lea.vmem %s10464_s25, %s7266_s1  ;;  %s10474_s12 = sld [smem:[#allocation149_spill]] }
  0x43   : > { %10465 = sst [smem:[#allocation20_spill]] %s8133_s27  ;;  %s8138_s17 = scalar_lea.vmem %s10466_s6, %s7268_s29 }
  0x44   : > { %10467 = sst [smem:[#allocation21_spill]] %s8138_s17  ;;  %s8143_s4 = scalar_lea.vmem %s10468_s7, %s7268_s29 }
  0x45   : > { %10469 = sst [smem:[#allocation22_spill]] %s8143_s4  ;;  %s8148_s5 = scalar_lea.vmem %s10470_s8, %s7266_s1 }
  0x46   : > { %10471 = sst [smem:[#allocation23_spill]] %s8148_s5  ;;  %s8154_s25 = scalar_lea.vmem %s10472_s9, %s8105_s2 }
  0x47   : > { %s971_s7 = scalar_lea.vmem %s10473_s10, %s7158_s3  ;;  %s7159_s4 = sshll.u32 %s8105_s2, 2 }
  0x48   : > { %s8168_s22 = scalar_lea.vmem %s10474_s12, %s7159_s4  ;;  %s10475_s13 = sld [smem:[#allocation150_spill]] }
  0x49   : > { %s10476_s14 = sld [smem:[#allocation151_spill]] }
  0x4a   : > { %s10478_s19 = sld [smem:[#allocation152_spill]] }
  0x4b   : > { %s10479_s27 = sld [smem:[#allocation153_spill]] }
  0x4c   : > { %s10481_s8 = sld [smem:[#allocation154_spill]] }
  0x4d   : > { %s10482_s9 = sld [smem:[#allocation155_spill]] }
  0x4e   : > { %s8173_s0 = scalar_lea.vmem %s10475_s13, %s7266_s1  ;;  %s10483_s17 = sld [smem:[#allocation156_spill]] }
  0x4f   : > { %s8179_s6 = scalar_lea.vmem %s10476_s14, %s8105_s2  ;;  %s10484_s10 = sld [smem:[#allocation157_spill]] }
  0x50   : > { %10477 = sst [smem:[#allocation24_spill]] %s8179_s6  ;;  %s8184_s3 = scalar_lea.vmem %s10478_s19, %s7268_s29 }
  0x51   : > { %s8190_s4 = scalar_lea.vmem %s10479_s27, %s8105_s2  ;;  %s921_s27 = scalar_lea.vmem [#allocation4], %s8100_s28 }
  0x52   : > { %10480 = sst [smem:[#allocation25_spill]] %s8190_s4  ;;  %s8196_s1 = scalar_lea.vmem %s10481_s8, %s8105_s2 }
  0x53   : > { %s8202_s30 = scalar_lea.vmem %s10482_s9, %s8105_s2  ;;  %s10485_s4 = sld [smem:[#allocation10_spill]] }
  0x54   : > { %s8208_s29 = scalar_lea.vmem %s10483_s17, %s8105_s2 }
  0x55   : > { %s8214_s24 = scalar_lea.vmem %s10484_s10, %s8105_s2 }
  0x59   : > { %p7164_p0 = scmp.ne.s32.totalorder %s10485_s4, 0 }
  0x5b   : > { %1010 = sbr.rel (%p7164_p0) target bundleno = 99 (0x63), region = 108 }
  0x60   : > { %v1011_v0 = vld [vmem:[%s926_s26] sm:$0xff]  ;;  %vm1013_vm0 = vcmask 261120   ;;  %v1012_v1 = vld [vmem:[%s926_s26 + $0x8] sm:$0xff] }
  0x61   : > { %v1016_v2 = vld [vmem:[%s930_s23] sm:$0xff]  ;;  %1014 = vst.msk [vmem:[#allocation2] sm:$0xff] %vm1013_vm0, %v1011_v0  ;;  %1015 = vst.msk [vmem:[#allocation2 + $0x8] sm:$0xff] %vm1013_vm0, %v1012_v1 }
  0x62   : > { %1017 = vst.msk [vmem:[#allocation3] sm:$0xff] %vm1013_vm0, %v1016_v2 }
  0x63 PF: > { %v1050_v3 = vld [vmem:[%s971_s7] sm:$0x3]  ;;  %vm1078_vm1 = vcmask 1041408   ;;  %vm1071_vm2 = vcmask 15360   ;;  %s10486_s12 = sld [smem:[#allocation20_spill]]  ;;  %v10367_v5 = vmov 0.0   ;;  %v1540_v19 = vlaneseq }
  0x64   : > { %v1018_v4 = vld [vmem:[%s8116_s20] sm:$0xff]  ;;  %7399 = vmatprep.subr.msk.mxu0 %vm1078_vm1, %v1050_v3  ;;  %7404 = vmatprep.subr.mxu1 %v10367_v5  ;;  %v1019_v6 = vld [vmem:[%s8116_s20 + $0x8] sm:$0xff]  ;;  %vm1261_vm3 = vcmask 261120   ;;  %s10487_s13 = sld [smem:[#allocation22_spill]]  ;;  %vm7913_vm4 = vmmov 0   ;;  %v7914_v12 = vmov 0   ;;  %s10491_s20 = scalar_lea.vmem %s10335_s11, %s8105_s2 }
  0x65   : > { %v1020_v7 = vld [vmem:[%s8121_s16] sm:$0xff]  ;;  %7400 = vmatpush3.msk.msra.mxu0 %vm1078_vm1, %v1050_v3  ;;  %7401 = vmatprep.mubr.msk.f32.mxu0 %vm1071_vm2, %v1018_v4  ;;  %s10488_s7 = sld [smem:[#allocation21_spill]]  ;;  %v1022_v14 = vld [vmem:[%s8128_s21 + $0x8] sm:$0xff]  ;;  %v1023_v15 = vld [vmem:[%s8128_s21 + $0x10] sm:$0xff]  ;;  %v1541_v20 = vshrl.u32 %v1540_v19, 7  ;;  %v2060_v22 = vand.u32 127, %v1540_v19 }
  0x66   : > { %v1021_v9 = vld [vmem:[%s8128_s21] sm:$0xff]  ;;  %7405 = vmatpush3.msk.msra.mxu1 %vm1078_vm1, %v1050_v3  ;;  %7406 = vmatprep.mubr.msk.f32.mxu1 %vm7913_vm4, %v10367_v5  ;;  %v1024_v16 = vld [vmem:[%s8128_s21 + $0x18] sm:$0xff]  ;;  %v7915_v32 = vmov 1966171168   ;;  %vm1814_vm5 = vcmask 130048   ;;  %vm1943_vm6 = vcmask 64512  }
  0x67   : > { %7402 = vmatmul.mubr.msk.f32.vlgmr.msra.gmra.mxu0 %vm1071_vm2, %v1019_v6  ;;  %7407 = vmatmul.mubr.msk.f32.vlgmr.msra.gmra.mxu1 %vm1071_vm2, %v1020_v7  ;;  %v1052_v21 = vld [vmem:[%s8168_s22] sm:$0xf]  ;;  %v2346_v23 = vsub.s32 1, %v1541_v20  ;;  %v3061_v24 = vsub.s32 2, %v1541_v20  ;;  %v3697_v25 = vsub.s32 3, %v1541_v20  ;;  %v8252_v26 = vsub.s32 %v2060_v22, %v1541_v20  ;;  %s10613_s2 = sld [smem:[#allocation23_spill]] }
  0x68   : > { %v1239_v8 = vld [vmem:[#allocation2 + $0x8] sm:$0xff]  ;;  %v1238_v10 = vld [vmem:[#allocation2] sm:$0xff]  ;;  %7413 = vmatprep.mubr.msk.f32.mxu0 %vm1261_vm3, %v1021_v9  ;;  %7718 = vset.pattern.permute.xlu0 %v7914_v12  ;;  %v2065_v27 = vadd.s32 4294967288, %v2060_v22  ;;  %v1538_v33 = vunpack.c.l.s4 %v7915_v32  ;;  %v8276_v46 = vsub.s32 0, %v1541_v20  ;;  %vm2070_vm7 = vcmask 130112   ;;  %s10664_s26 = sld [smem:[#allocation24_spill]] }
  0x69   : > { %v1025_v11 = vld [vmem:[%s10486_s12] sm:$0xff]  ;;  %7409 = vmatprep.subr.msk.mxu0 %vm1261_vm3, %v1239_v8  ;;  %7639 = vmatprep.subr.msk.mxu1 %vm1261_vm3, %v1239_v8  ;;  %v8254_v28 = vrot.slane %v1052_v21, %v2346_v23  ;;  %v8256_v29 = vrot.slane %v1052_v21, %v3061_v24  ;;  %v8258_v30 = vrot.slane %v1052_v21, %v3697_v25  ;;  %vm2207_vm8 = vcmask 1041409   ;;  %s10665_s23 = sld [smem:[#allocation25_spill]] }
  0x6a   : > { %7410 = vmatpush3.xpose.msk.msra.mxu0 %vm1261_vm3, %v1239_v8  ;;  %1243 = vperm.xlu0 %7718, %v1025_v11   ;;  %v1037_v13 = vld [vmem:[%s10487_s13] sm:$0xff]  ;;  %v8260_v31 = vsub.s32 %v2065_v27, %v1541_v20  ;;  %v1539_v34 = vunpack.c.0.s8 %v1538_v33  ;;  %v8308_v2 = vrot.slane %v1052_v21, %v8276_v46  ;;  %vm2209_vm9 = vcmask 1042434  }
  0x6b   : > { %7411 = vmatprep.subr.msk.mxu0 %vm1261_vm3, %v1238_v10  ;;  %7641 = vmatpush3.xpose.msk.msra.mxu1 %vm1261_vm3, %v1239_v8  ;;  %v1029_v17 = vld [vmem:[%s10488_s7] sm:$0xff]  ;;  %v1030_v18 = vld [vmem:[%s10488_s7 + $0x8] sm:$0xff]  ;;  %10489 = vst [vmem:[#allocation26_spill] sm:$0xff] %v8256_v29  ;;  %10490 = vst [vmem:[#allocation27_spill] sm:$0xff] %v8258_v30  ;;  %vm2211_vm10 = vcmask 1043459   ;;  %vm2213_vm11 = vcmask 1044484  }
  0x6c   : > { %7640 = vmatprep.subr.msk.mxu1 %vm1261_vm3, %v1238_v10  ;;  %v7168_v35 = vld [vmem:[%s10491_s20] ss:$0 sm:$0xff]  ;;  %v8267_v36 = vsub.s32 %v1539_v34, %v1541_v20  ;;  %10493 = vst [vmem:[#allocation29_spill] sm:$0xff] %v8308_v2  ;;  %vm2215_vm12 = vcmask 1045509   ;;  %vm2217_vm13 = vcmask 1046534   ;;  %vm2219_vm14 = vcmask 1047559  }
  0x6d   : > { %vm4479_vm15 = vcmask 523264  }
  0x6e   : > { %7412 = vmatpush3.xpose.msk.msra.mxu0 %vm1261_vm3, %v1238_v10  ;;  %1367 = vperm.xlu0 %7718, %v1037_v13  }
  0x6f   : > { %7419 = vmatprep.subr.msk.mxu0 %vm1261_vm3, %v1239_v8  ;;  %7642 = vmatpush3.xpose.msk.msra.mxu1 %vm1261_vm3, %v1238_v10 }
  0x71   : > { %7414 = vmatmul.mubr.msk.f32.vlgmr.msra.gmra.mxu0 %vm1261_vm3, %v1022_v14 }
  0x72   : > { %7420 = vmatpush3.xpose.msk.msra.mxu0 %vm1261_vm3, %v1239_v8  ;;  %7416 = vmatprep.mubr.msk.f32.mxu0 %vm1261_vm3, %v1023_v15 }
  0x73   : > { %7421 = vmatprep.subr.msk.mxu0 %vm1261_vm3, %v1238_v10 }
  0x75   : > { %7417 = vmatmul.mubr.msk.f32.gmra.mxu0 %vm1261_vm3, %v1024_v16 }
  0x76   : > { %7422 = vmatpush3.xpose.msk.msra.mxu0 %vm1261_vm3, %v1238_v10  ;;  %7423 = vmatprep.mubr.msk.f32.mxu0 %vm1261_vm3, %v1029_v17 }
  0x79   : > { %7424 = vmatmul.mubr.msk.f32.vlgmr.msra.gmra.mxu0 %vm1261_vm3, %v1030_v18 }
  0xe5   : > { %v8310_v3 = vpop.permute.xlu0 %1243 }
  0xe6   : > { %10494 = vst [vmem:[#allocation30_spill] sm:$0xff] %v8310_v3 }
  0xe9   : > { %v8343_v21 = vpop.permute.xlu0 %1367 }
  0xea   : > { %10498 = vst [vmem:[#allocation34_spill] sm:$0xff] %v8343_v21 }
 0x127   : > { %v8269_v37 = vpop.f32.mrf.mxu0  ;;  %v1234_v38 = vpop.f32.mrf.mxu1 }
 0x128   : > { %v1164_v39 = vadd.f32 %v8269_v37, %v7168_v35  ;;  %v1235_v40 = vadd.f32 %v7168_v35, %v1234_v38 }
 0x129   : > { %v7408_v41 = vpop.f32.mrf.mxu1  ;;  %v8274_v45 = vpop.f32.mrf.mxu0 }
 0x12a   : > { %v1592_v42 = vrot.slane %v1164_v39, %v8267_v36  ;;  %v4805_v43 = vcombine.high %v1235_v40, %v1235_v40  ;;  %v4812_v44 = vrot.slane %v1235_v40, %v8267_v36  ;;  %v1163_v51 = vadd.f32 %v7168_v35, %v8274_v45 }
 0x12b   : > { %v1585_v52 = vcombine.high %v1164_v39, %v1164_v39 }
 0x12c   : > { %v1608_v47 = vrot.slane %v1592_v42, %v8267_v36  ;;  %v4819_v48 = vrot.slane %v4805_v43, %v8267_v36  ;;  %v4820_v49 = vcombine.high %v4812_v44, %v4812_v44  ;;  %v8281_v50 = vrot.slane %v4812_v44, %v8267_v36 }
 0x12d   : > { %v1600_v53 = vcombine.high %v1592_v42, %v1592_v42  ;;  %v1543_v60 = vrot.slane %v1163_v51, %v8267_v36  ;;  %v8300_v61 = vrot.slane %v1585_v52, %v8267_v36  ;;  %v1536_v38 = vcombine.high %v1163_v51, %v1163_v51 }
 0x12e   : > { %v8285_v54 = vrot.slane %v1608_v47, %v8276_v46  ;;  %v4821_v55 = vcombine.high %v4819_v48, %v4819_v48  ;;  %v8288_v56 = vrot.slane %v4819_v48, %v8267_v36  ;;  %v8291_v57 = vrot.slane %v4820_v49, %v8267_v36 }
 0x12f   : > { %v8305_v0 = vrot.slane %v1600_v53, %v8267_v36  ;;  %v1630_v1 = vcombine.high %v1608_v47, %v1608_v47  ;;  %v1559_v8 = vrot.slane %v1543_v60, %v8267_v36  ;;  %v8320_v9 = vrot.slane %v8300_v61, %v8267_v36 }
 0x130   : > { %v8296_v59 = vrot.slane %v4821_v55, %v8267_v36  ;;  %v1730_v63 = vsub.f32 %v8285_v54, %v8274_v45  ;;  %v1551_v17 = vcombine.high %v1543_v60, %v1543_v60  ;;  %v1550_v44 = vrot.slane %v1536_v38, %v8267_v36 }
 0x131   : > { %v8293_v58 = vpop.f32.mrf.mxu0  ;;  %v8327_v13 = vrot.slane %v1559_v8, %v8276_v46  ;;  %v8331_v14 = vrot.slane %v8305_v0, %v8276_v46  ;;  %v8334_v15 = vrot.slane %v1630_v1, %v8276_v46  ;;  %v8349_v24 = vrot.slane %v8320_v9, %v8276_v46 }
 0x132   : > { %10492 = vst [vmem:[#allocation28_spill] sm:$0xff] %v8293_v58  ;;  %v8315_v7 = vmax.f32 %v1730_v63, 0.0  ;;  %v8357_v33 = vrot.slane %v1551_v17, %v8267_v36  ;;  %v1581_v43 = vcombine.high %v1559_v8, %v1559_v8  ;;  %v8381_v53 = vrot.slane %v1550_v44, %v8267_v36 }
 0x133   : > { %v1346_v62 = vpop.f32.mrf.mxu0  ;;  %v1715_v19 = vsub.f32 %v8327_v13, %v8269_v37  ;;  %v1732_v20 = vsub.f32 %v8331_v14, %v8274_v45  ;;  %v1734_v23 = vsub.f32 %v8334_v15, %v8274_v45  ;;  %v1738_v35 = vsub.f32 %v8349_v24, %v8274_v45 }
 0x134   : > { %v1347_v6 = vadd.f32 %v1346_v62, %v8310_v3  ;;  %v1798_v11 = vmul.f32 %v8308_v2, %v8315_v7  ;;  %v1641_v42 = vrot.slane %v8357_v33, %v8276_v46  ;;  %v8378_v52 = vrot.slane %v1581_v43, %v8276_v46 }
 0x135   : > { %v8312_v4 = vpop.f32.mrf.mxu0  ;;  %v8352_v27 = vmax.f32 %v1715_v19, 0.0  ;;  %v8354_v32 = vmax.f32 %v1732_v20, 0.0  ;;  %v8366_v41 = vmax.f32 %v1734_v23, 0.0  ;;  %v8374_v49 = vmax.f32 %v1738_v35, 0.0 }
 0x136   : > { %10495 = vst [vmem:[#allocation31_spill] sm:$0xff] %v8312_v4  ;;  %1911 = vxpose.xlu1.b32.start.end [1/1] (short) (narrow) %v1347_v6, 16  ;;  %v1863_v18 = vsel %vm1814_vm5, %v1798_v11, 0.0  ;;  %v1716_v51 = vsub.f32 %v1641_v42, %v8274_v45  ;;  %v1717_v63 = vsub.f32 %v1641_v42, %v8269_v37  ;;  %v1601_v1 = vcombine.high %v8300_v61, %v8300_v61 }
 0x137   : > { %v8322_v10 = vpop.f32.mrf.mxu0  ;;  %1864 = vadd.xlane.f32.xlu0 %v1863_v18  ;;  %v1783_v34 = vmul.f32 %v8308_v2, %v8352_v27  ;;  %v1800_v40 = vmul.f32 %v8308_v2, %v8354_v32  ;;  %v1802_v48 = vmul.f32 %v8308_v2, %v8366_v41  ;;  %10499 = vst [vmem:[#allocation35_spill] sm:$0xff] %v8374_v49 }
 0x138   : > { %10496 = vst [vmem:[#allocation32_spill] sm:$0xff] %v8322_v10  ;;  %v1806_v60 = vmul.f32 %v8308_v2, %v8374_v49  ;;  %v8386_v62 = vmax.f32 %v1716_v51, 0.0  ;;  %v1718_v6 = vsub.f32 %v8378_v52, %v8274_v45  ;;  %v8395_v8 = vrot.slane %v8381_v53, %v8276_v46 }
 0x139   : > { %v8336_v16 = vpop.f32.mrf.mxu0  ;;  %v1818_v39 = vsel %vm1814_vm5, %v1783_v34, 0.0  ;;  %v1869_v47 = vsel %vm1814_vm5, %v1800_v40, 0.0  ;;  %v1875_v55 = vsel %vm1814_vm5, %v1802_v48, 0.0  ;;  %v1632_v11 = vcombine.high %v8305_v0, %v8305_v0 }
 0x13a   : > { %10497 = vst [vmem:[#allocation33_spill] sm:$0xff] %v8336_v16  ;;  %v1887_v17 = vsel %vm1814_vm5, %v1806_v60, 0.0  ;;  %v1784_v18 = vmul.f32 %v8308_v2, %v8386_v62  ;;  %v8402_v19 = vmax.f32 %v1717_v63, 0.0  ;;  %v8404_v20 = vmax.f32 %v1718_v6, 0.0 }
 0x13b   : > { %v1495_v22 = vpop.f32.mrf.mxu0  ;;  %1819 = vadd.xlane.f32.xlu0 %v1818_v39  ;;  %v1722_v61 = vsub.f32 %v8395_v8, %v8274_v45  ;;  %v1631_v34 = vcombine.high %v8320_v9, %v8320_v9  ;;  %v1731_v43 = vsub.f32 %v8285_v54, %v8269_v37  ;;  %v1583_v60 = vcombine.high %v8357_v33, %v8357_v33 }
 0x13c   : > { %v1496_v25 = vadd.f32 %v1495_v22, %v8343_v21  ;;  %10500 = vst [vmem:[#allocation36_spill] sm:$0xff] %v8404_v20  ;;  %v8409_v22 = vrot.slane %v1601_v1, %v8267_v36  ;;  %v1821_v23 = vsel %vm1814_vm5, %v1784_v18, 0.0  ;;  %v1785_v0 = vmul.f32 %v8308_v2, %v8402_v19 }
 0x13d   : > { %v1786_v35 = vmul.f32 %v8308_v2, %v8404_v20  ;;  %v8421_v38 = vmax.f32 %v1722_v61, 0.0  ;;  %v8437_v48 = vrot.slane %v1631_v34, %v8276_v46  ;;  %v1552_v63 = vcombine.high %v1550_v44, %v1550_v44 }
 0x13e   : > { %7435 = vmatprep.subr.mxu0 %v1496_v25  ;;  %v1824_v39 = vsel %vm1814_vm5, %v1785_v0, 0.0  ;;  %v8428_v42 = vrot.slane %v8409_v22, %v8276_v46  ;;  %v8445_v54 = vmax.f32 %v1731_v43, 0.0  ;;  %v1649_v18 = vrot.slane %v1583_v60, %v8276_v46 }
 0x13f   : > { %7436 = vmatpush3.msra.mxu0 %v1496_v25  ;;  %1870 = vadd.xlane.f32.xlu0 %v1869_v47  ;;  %v8415_v25 = vrot.slane %v1632_v11, %v8276_v46  ;;  %v1827_v9 = vsel %vm1814_vm5, %v1786_v35, 0.0  ;;  %v1790_v47 = vmul.f32 %v8308_v2, %v8421_v38  ;;  %v1742_v6 = vsub.f32 %v8437_v48, %v8274_v45 }
 0x140   : > { %v1580_v33 = vrot.slane %v1552_v63, %v8267_v36  ;;  %v1799_v44 = vmul.f32 %v8308_v2, %v8445_v54  ;;  %v1582_v0 = vcombine.high %v8381_v53, %v8381_v53  ;;  %v1720_v36 = vsub.f32 %v1649_v18, %v8274_v45 }
 0x141   : > { %v1736_v40 = vsub.f32 %v8415_v25, %v8274_v45  ;;  %v1839_v1 = vsel %vm1814_vm5, %v1790_v47, 0.0  ;;  %v1735_v53 = vsub.f32 %v8334_v15, %v8269_v37  ;;  %v1741_v21 = vsub.f32 %v8428_v42, %v8269_v37 }
 0x142   : > { %v8485_v47 = vrot.slane %v1582_v0, %v8276_v46  ;;  %v8488_v60 = vmax.f32 %v1720_v36, 0.0 }
 0x143   : > { %1876 = vadd.xlane.f32.xlu0 %v1875_v55  ;;  %v8439_v51 = vmax.f32 %v1736_v40, 0.0  ;;  %v1740_v55 = vsub.f32 %v8428_v42, %v8274_v45  ;;  %v1866_v40 = vsel %vm1814_vm5, %v1799_v44, 0.0  ;;  %v1743_v42 = vsub.f32 %v8437_v48, %v8269_v37 }
 0x144   : > { %v1788_v0 = vmul.f32 %v8308_v2, %v8488_v60  ;;  %v1727_v3 = vsub.f32 %v8485_v47, %v8269_v37 }
 0x145   : > { %10501 = vst [vmem:[#allocation37_spill] sm:$0xff] %v8439_v51  ;;  %v1804_v11 = vmul.f32 %v8308_v2, %v8439_v51 }
 0x146   : > { %v8617_v48 = vmax.f32 %v1727_v3, 0.0 }
 0x147   : > { %1888 = vadd.xlane.f32.xlu0 %v1887_v17  ;;  %v8454_v17 = vmax.f32 %v1740_v55, 0.0  ;;  %v1881_v34 = vsel %vm1814_vm5, %v1804_v11, 0.0  ;;  %v8497_v11 = vmax.f32 %v1735_v53, 0.0 }
 0x149   : > { %10502 = vst [vmem:[#allocation38_spill] sm:$0xff] %v8454_v17  ;;  %v1808_v35 = vmul.f32 %v8308_v2, %v8454_v17  ;;  %v1034_v17 = vld [vmem:[%s10488_s7 + $0x28] sm:$0xff] }
 0x14b   : > { %1822 = vadd.xlane.f32.xlu0 %v1821_v23  ;;  %v8464_v23 = vmax.f32 %v1742_v6, 0.0  ;;  %v1893_v55 = vsel %vm1814_vm5, %v1808_v35, 0.0  ;;  %v1633_v35 = vcombine.high %v8409_v22, %v8409_v22  ;;  %v1833_v22 = vsel %vm1814_vm5, %v1788_v0, 0.0 }
 0x14d   : > { %10503 = vst [vmem:[#allocation39_spill] sm:$0xff] %v8464_v23 }
 0x14f   : > { %1825 = vadd.xlane.f32.xlu0 %v1824_v39  ;;  %v8473_v39 = vrot.slane %v1580_v33, %v8276_v46 }
 0x151   : > { %v1724_v63 = vsub.f32 %v8473_v39, %v8274_v45 }
 0x153   : > { %1828 = vadd.xlane.f32.xlu0 %v1827_v9  ;;  %v1810_v9 = vmul.f32 %v8308_v2, %v8464_v23 }
 0x154   : > { %7719 = vset.pattern.permute.xlu1 %v7914_v12  ;;  %v1714_v12 = vsub.f32 %v8327_v13, %v8274_v45  ;;  %v1733_v13 = vsub.f32 %v8331_v14, %v8269_v37 }
 0x155   : > { %v1899_v44 = vsel %vm1814_vm5, %v1810_v9, 0.0 }
 0x156   : > { %v8460_v61 = vmax.f32 %v1714_v12, 0.0  ;;  %v8478_v43 = vmax.f32 %v1733_v13, 0.0  ;;  %v1584_v12 = vcombine.high %v1580_v33, %v1580_v33  ;;  %v1726_v13 = vsub.f32 %v8485_v47, %v8274_v45 }
 0x157   : > { %1840 = vadd.xlane.f32.xlu0 %v1839_v1  ;;  %v1739_v1 = vsub.f32 %v8349_v24, %v8269_v37  ;;  %v1719_v33 = vsub.f32 %v8378_v52, %v8269_v37  ;;  %v8506_v24 = vmax.f32 %v1724_v63, 0.0  ;;  %v1723_v52 = vsub.f32 %v8395_v8, %v8269_v37 }
 0x158   : > { %v1782_v14 = vmul.f32 %v8308_v2, %v8460_v61  ;;  %v1801_v6 = vmul.f32 %v8308_v2, %v8478_v43  ;;  %v8520_v53 = vmax.f32 %v1726_v13, 0.0  ;;  %v8575_v5 = vmul.f32 %v8256_v29, %v8478_v43 }
 0x159   : > { %10504 = vst [vmem:[#allocation40_spill] sm:$0xff] %v8506_v24  ;;  %v8513_v36 = vmax.f32 %v1739_v1, 0.0  ;;  %v8522_v9 = vmax.f32 %v1719_v33, 0.0  ;;  %v1792_v63 = vmul.f32 %v8308_v2, %v8506_v24  ;;  %v1697_v1 = vrot.slane %v1633_v35, %v8276_v46 }
 0x15a   : > { %v1815_v15 = vsel %vm1814_vm5, %v1782_v14, 0.0  ;;  %v1803_v14 = vmul.f32 %v8308_v2, %v8497_v11  ;;  %10505 = vst [vmem:[#allocation41_spill] sm:$0xff] %v8520_v53  ;;  %v1794_v13 = vmul.f32 %v8308_v2, %v8520_v53  ;;  %v1737_v33 = vsub.f32 %v8415_v25, %v8269_v37  ;;  %10512 = vst [vmem:[#allocation48_spill] sm:$0xff] %v8575_v5 }
 0x15b   : > { %1882 = vadd.xlane.f32.xlu0 %v1881_v34  ;;  %v8509_v34 = vrot.slane %v1584_v12, %v8276_v46  ;;  %v1807_v8 = vmul.f32 %v8308_v2, %v8513_v36  ;;  %v8552_v35 = vmul.f32 %v8256_v29, %v8386_v62  ;;  %v1787_v25 = vmul.f32 %v8308_v2, %v8522_v9 }
 0x15c   : > { %v1851_v4 = vsel %vm1814_vm5, %v1794_v13, 0.0 }
 0x15d   : > { %v1728_v12 = vsub.f32 %v8509_v34, %v8274_v45  ;;  %10508 = vst [vmem:[#allocation44_spill] sm:$0xff] %v8552_v35  ;;  %v1729_v47 = vsub.f32 %v8509_v34, %v8269_v37  ;;  %v1830_v13 = vsel %vm1814_vm5, %v1787_v25, 0.0 }
 0x15f   : > { %1894 = vadd.xlane.f32.xlu0 %v1893_v55  ;;  %v1721_v55 = vsub.f32 %v1649_v18, %v8269_v37  ;;  %v8538_v18 = vmul.f32 %v8256_v29, %v8460_v61 }
 0x161   : > { %1867 = vadd.xlane.f32.xlu1 %v1866_v40  ;;  %v1872_v40 = vsel %vm1814_vm5, %v1801_v6, 0.0  ;;  %v8534_v6 = vmax.f32 %v1723_v52, 0.0  ;;  %10506 = vst [vmem:[#allocation42_spill] sm:$0xff] %v8538_v18  ;;  %v8548_v0 = vmax.f32 %v1721_v55, 0.0  ;;  %v1744_v52 = vsub.f32 %v1697_v1, %v8274_v45 }
 0x162   : > { %v8567_v55 = vmul.f32 %v8256_v29, %v8445_v54 }
 0x163   : > { %1900 = vadd.xlane.f32.xlu0 %v1899_v44  ;;  %v8542_v44 = vmul.f32 %v8256_v29, %v8352_v27  ;;  %v8594_v5 = vmax.f32 %v1744_v52, 0.0  ;;  %v1745_v52 = vsub.f32 %v1697_v1, %v8269_v37 }
 0x164   : > { %10511 = vst [vmem:[#allocation47_spill] sm:$0xff] %v8567_v55 }
 0x165   : > { %1816 = vadd.xlane.f32.xlu1 %v1815_v15  ;;  %v1878_v15 = vsel %vm1814_vm5, %v1803_v14, 0.0  ;;  %10507 = vst [vmem:[#allocation43_spill] sm:$0xff] %v8542_v44  ;;  %v8555_v14 = vmax.f32 %v1728_v12, 0.0  ;;  %v1725_v12 = vsub.f32 %v8473_v39, %v8269_v37  ;;  %v8589_v39 = vmul.f32 %v8256_v29, %v8548_v0  ;;  %10515 = vst [vmem:[#allocation51_spill] sm:$0xff] %v8594_v5 }
 0x166   : > { %v1812_v25 = vmul.f32 %v8308_v2, %v8594_v5  ;;  %v8636_v3 = vmul.f32 %v8256_v29, %v8594_v5 }
 0x167   : > { %1834 = vadd.xlane.f32.xlu0 %v1833_v22  ;;  %10509 = vst [vmem:[#allocation45_spill] sm:$0xff] %v8555_v14  ;;  %v8560_v22 = vmul.f32 %v8256_v29, %v8522_v9  ;;  %10514 = vst [vmem:[#allocation50_spill] sm:$0xff] %v8589_v39  ;;  %v1796_v10 = vmul.f32 %v8308_v2, %v8555_v14  ;;  %v8609_v39 = vmax.f32 %v1725_v12, 0.0  ;;  %v8628_v12 = vmax.f32 %v1741_v21, 0.0 }
 0x168   : > { %v8621_v34 = vmul.f32 %v8256_v29, %v8555_v14  ;;  %10520 = vst [vmem:[#allocation56_spill] sm:$0xff] %v8636_v3  ;;  %v4877_v3 = vrot.slane %v8296_v59, %v8276_v46 }
 0x169   : > { %1873 = vadd.xlane.f32.xlu1 %v1872_v40  ;;  %v1845_v40 = vsel %vm1814_vm5, %v1792_v63, 0.0  ;;  %10510 = vst [vmem:[#allocation46_spill] sm:$0xff] %v8560_v22  ;;  %v1791_v63 = vmul.f32 %v8308_v2, %v8534_v6 }
 0x16a   : > { %10519 = vst [vmem:[#allocation55_spill] sm:$0xff] %v8621_v34  ;;  %v8642_v34 = vmax.f32 %v1745_v52, 0.0  ;;  %v1905_v52 = vsel %vm1814_vm5, %v1812_v25, 0.0  ;;  %v4904_v22 = vsub.f32 %v4877_v3, %v8274_v45 }
 0x16b   : > { %1846 = vadd.xlane.f32.xlu0 %v1845_v40  ;;  %v8581_v40 = vmax.f32 %v1737_v33, 0.0  ;;  %v8598_v33 = vmul.f32 %v8256_v29, %v8497_v11 }
 0x16c   : > { %v8682_v25 = vmul.f32 %v8256_v29, %v8642_v34 }
 0x16d   : > { %1879 = vadd.xlane.f32.xlu1 %v1878_v15  ;;  %v1890_v15 = vsel %vm1814_vm5, %v1807_v8, 0.0  ;;  %v8579_v8 = vmul.f32 %v8256_v29, %v8488_v60  ;;  %10516 = vst [vmem:[#allocation52_spill] sm:$0xff] %v8598_v33  ;;  %v8614_v33 = vmul.f32 %v8256_v29, %v8520_v53  ;;  %v1805_v1 = vmul.f32 %v8308_v2, %v8581_v40 }
 0x16e   : > { %v8650_v21 = vmul.f32 %v8256_v29, %v8581_v40  ;;  %10530 = vst [vmem:[#allocation66_spill] sm:$0xff] %v8682_v25  ;;  %v8702_v25 = vmul.f32 %v8258_v30, %v8522_v9 }
 0x16f   : > { %10513 = vst [vmem:[#allocation49_spill] sm:$0xff] %v8579_v8  ;;  %1852 = vadd.xlane.f32.xlu0 %v1851_v4  ;;  %10518 = vst [vmem:[#allocation54_spill] sm:$0xff] %v8614_v33  ;;  %v1842_v4 = vsel %vm1814_vm5, %v1791_v63, 0.0  ;;  %v8632_v63 = vmax.f32 %v1729_v47, 0.0  ;;  %v8646_v33 = vmul.f32 %v8256_v29, %v8534_v6  ;;  %v8658_v47 = vmul.f32 %v8256_v29, %v8513_v36 }
 0x170   : > { %10523 = vst [vmem:[#allocation59_spill] sm:$0xff] %v8650_v21  ;;  %v1809_v21 = vmul.f32 %v8308_v2, %v8628_v12  ;;  %10535 = vst [vmem:[#allocation71_spill] sm:$0xff] %v8702_v25  ;;  %v8721_v25 = vmul.f32 %v8258_v30, %v8548_v0 }
 0x171   : > { %1891 = vadd.xlane.f32.xlu1 %v1890_v15  ;;  %v8606_v15 = vmul.f32 %v8256_v29, %v8506_v24  ;;  %10522 = vst [vmem:[#allocation58_spill] sm:$0xff] %v8646_v33  ;;  %10525 = vst [vmem:[#allocation61_spill] sm:$0xff] %v8658_v47  ;;  %v8667_v33 = vmul.f32 %v8256_v29, %v8628_v12 }
 0x172   : > { %10539 = vst [vmem:[#allocation75_spill] sm:$0xff] %v8721_v25  ;;  %v8740_v25 = vmul.f32 %v8258_v30, %v8609_v39 }
 0x173   : > { %10517 = vst [vmem:[#allocation53_spill] sm:$0xff] %v8606_v15  ;;  %v1857_v15 = vsel %vm1814_vm5, %v1796_v10, 0.0  ;;  %v8640_v10 = vmul.f32 %v8256_v29, %v8402_v19  ;;  %10527 = vst [vmem:[#allocation63_spill] sm:$0xff] %v8667_v33  ;;  %v8690_v33 = vmul.f32 %v8258_v30, %v8352_v27 }
 0x174   : > { %1858 = vadd.xlane.f32.xlu0 %v1857_v15  ;;  %v8662_v15 = vmul.f32 %v8256_v29, %v8617_v48  ;;  %10543 = vst [vmem:[#allocation79_spill] sm:$0xff] %v8740_v25 }
 0x175   : > { %1831 = vadd.xlane.f32.xlu1 %v1830_v13  ;;  %v8630_v13 = vmax.f32 %v1743_v42, 0.0  ;;  %10521 = vst [vmem:[#allocation57_spill] sm:$0xff] %v8640_v10  ;;  %v8654_v42 = vmul.f32 %v8256_v29, %v8609_v39  ;;  %10532 = vst [vmem:[#allocation68_spill] sm:$0xff] %v8690_v33  ;;  %v8725_v33 = vmul.f32 %v8258_v30, %v8497_v11 }
 0x176   : > { %10526 = vst [vmem:[#allocation62_spill] sm:$0xff] %v8662_v15  ;;  %v1884_v15 = vsel %vm1814_vm5, %v1805_v1, 0.0  ;;  %v8698_v1 = vmul.f32 %v8258_v30, %v8402_v19 }
 0x177   : > { %10524 = vst [vmem:[#allocation60_spill] sm:$0xff] %v8654_v42  ;;  %v8677_v47 = vmul.f32 %v8256_v29, %v8630_v13  ;;  %10540 = vst [vmem:[#allocation76_spill] sm:$0xff] %v8725_v33  ;;  %v8744_v33 = vmul.f32 %v8258_v30, %v8513_v36  ;;  %v8760_v25 = vmul.f32 %v8258_v30, %v8630_v13 }
 0x178   : > { %1906 = vadd.xlane.f32.xlu0 %v1905_v52  ;;  %v8686_v52 = vmul.f32 %v8258_v30, %v8460_v61  ;;  %10534 = vst [vmem:[#allocation70_spill] sm:$0xff] %v8698_v1  ;;  %v8717_v1 = vmul.f32 %v8258_v30, %v8488_v60  ;;  %v4852_v42 = vcombine.high %v8291_v57, %v8291_v57 }
 0x179   : > { %1843 = vadd.xlane.f32.xlu1 %v1842_v4  ;;  %v8673_v4 = vmul.f32 %v8256_v29, %v8632_v63  ;;  %10529 = vst [vmem:[#allocation65_spill] sm:$0xff] %v8677_v47  ;;  %v8708_v47 = vmul.f32 %v8258_v30, %v8445_v54  ;;  %10544 = vst [vmem:[#allocation80_spill] sm:$0xff] %v8744_v33  ;;  %v8764_v33 = vmul.f32 %v8258_v30, %v8642_v34 }
 0x17a   : > { %10531 = vst [vmem:[#allocation67_spill] sm:$0xff] %v8686_v52  ;;  %v1811_v52 = vmul.f32 %v8308_v2, %v8630_v13  ;;  %10538 = vst [vmem:[#allocation74_spill] sm:$0xff] %v8717_v1  ;;  %v8786_v1 = vmul.f32 %v8258_v30, %v8594_v5  ;;  %v4869_v10 = vrot.slane %v4852_v42, %v8276_v46 }
 0x17b   : > { %10528 = vst [vmem:[#allocation64_spill] sm:$0xff] %v8673_v4  ;;  %v8694_v4 = vmul.f32 %v8258_v30, %v8386_v62  ;;  %10536 = vst [vmem:[#allocation72_spill] sm:$0xff] %v8708_v47 }
 0x17c   : > { %v1902_v47 = vsel %vm1814_vm5, %v1811_v52, 0.0  ;;  %v8748_v52 = vmul.f32 %v8258_v30, %v8617_v48  ;;  %10548 = vst [vmem:[#allocation84_spill] sm:$0xff] %v8760_v25  ;;  %10549 = vst [vmem:[#allocation85_spill] sm:$0xff] %v8764_v33  ;;  %v8779_v25 = vmul.f32 %v8258_v30, %v8555_v14 }
 0x17d   : > { %1885 = vadd.xlane.f32.xlu1 %v1884_v15  ;;  %10533 = vst [vmem:[#allocation69_spill] sm:$0xff] %v8694_v4  ;;  %v1896_v15 = vsel %vm1814_vm5, %v1809_v21, 0.0  ;;  %v8713_v4 = vmul.f32 %v8258_v30, %v8478_v43  ;;  %v8730_v21 = vmul.f32 %v8258_v30, %v8534_v6  ;;  %10553 = vst [vmem:[#allocation89_spill] sm:$0xff] %v8786_v1 }
 0x17e   : > { %10545 = vst [vmem:[#allocation81_spill] sm:$0xff] %v8748_v52  ;;  %v1793_v52 = vmul.f32 %v8308_v2, %v8609_v39  ;;  %10552 = vst [vmem:[#allocation88_spill] sm:$0xff] %v8779_v25  ;;  %v4853_v1 = vcombine.high %v8296_v59, %v8296_v59  ;;  %v4901_v59 = vsub.f32 %v4869_v10, %v8269_v37 }
 0x17f   : > { %10537 = vst [vmem:[#allocation73_spill] sm:$0xff] %v8713_v4  ;;  %10541 = vst [vmem:[#allocation77_spill] sm:$0xff] %v8730_v21  ;;  %v1789_v4 = vmul.f32 %v8308_v2, %v8548_v0  ;;  %v8752_v21 = vmul.f32 %v8258_v30, %v8628_v12 }
 0x180   : > { %v1848_v33 = vsel %vm1814_vm5, %v1793_v52, 0.0  ;;  %v1813_v52 = vmul.f32 %v8308_v2, %v8642_v34 }
 0x181   : > { %1897 = vadd.xlane.f32.xlu1 %v1896_v15  ;;  %v8736_v15 = vmul.f32 %v8258_v30, %v8581_v40  ;;  %10546 = vst [vmem:[#allocation82_spill] sm:$0xff] %v8752_v21  ;;  %v8771_v21 = vmul.f32 %v8258_v30, %v8506_v24 }
 0x183   : > { %10542 = vst [vmem:[#allocation78_spill] sm:$0xff] %v8736_v15  ;;  %v8756_v15 = vmul.f32 %v8258_v30, %v8632_v63  ;;  %10550 = vst [vmem:[#allocation86_spill] sm:$0xff] %v8771_v21  ;;  %v1797_v21 = vmul.f32 %v8308_v2, %v8632_v63 }
 0x185   : > { %1903 = vadd.xlane.f32.xlu1 %v1902_v47  ;;  %10547 = vst [vmem:[#allocation83_spill] sm:$0xff] %v8756_v15  ;;  %v1836_v47 = vsel %vm1814_vm5, %v1789_v4, 0.0  ;;  %v8775_v15 = vmul.f32 %v8258_v30, %v8520_v53  ;;  %v1795_v4 = vmul.f32 %v8308_v2, %v8617_v48  ;;  %v1860_v25 = vsel %vm1814_vm5, %v1797_v21, 0.0 }
 0x186   : > { %v1908_v2 = vsel %vm1814_vm5, %v1813_v52, 0.0 }
 0x187   : > { %10551 = vst [vmem:[#allocation87_spill] sm:$0xff] %v8775_v15  ;;  %v4850_v15 = vcombine.high %v8281_v50, %v8281_v50 }
 0x189   : > { %1837 = vadd.xlane.f32.xlu1 %v1836_v47  ;;  %v1854_v47 = vsel %vm1814_vm5, %v1795_v4, 0.0  ;;  %v4857_v4 = vrot.slane %v8281_v50, %v8276_v46  ;;  %v4865_v21 = vrot.slane %v4850_v15, %v8276_v46  ;;  %v4885_v15 = vrot.slane %v4853_v1, %v8276_v46 }
 0x18b   : > { %v4894_v8 = vsub.f32 %v4857_v4, %v8274_v45  ;;  %v4899_v42 = vsub.f32 %v4865_v21, %v8269_v37 }
 0x18d   : > { %1849 = vadd.xlane.f32.xlu1 %v1848_v33  ;;  %v4851_v33 = vcombine.high %v8288_v56, %v8288_v56  ;;  %v8836_v18 = vmax.f32 %v4899_v42, 0.0 }
 0x18f   : > { %v4881_v50 = vrot.slane %v4851_v33, %v8276_v46  ;;  %10558 = vst [vmem:[#allocation94_spill] sm:$0xff] %v8836_v18 }
 0x191   : > { %1855 = vadd.xlane.f32.xlu1 %v1854_v47  ;;  %v4861_v47 = vrot.slane %v8291_v57, %v8276_v46  ;;  %v4895_v57 = vsub.f32 %v4857_v4, %v8269_v37  ;;  %v4905_v4 = vsub.f32 %v4877_v3, %v8269_v37  ;;  %v4906_v35 = vsub.f32 %v4881_v50, %v8274_v45 }
 0x192   : > { %v8843_v3 = vmax.f32 %v4901_v59, 0.0 }
 0x193   : > { %v4896_v55 = vsub.f32 %v4861_v47, %v8274_v45  ;;  %v4897_v52 = vsub.f32 %v4861_v47, %v8269_v37  ;;  %v8827_v44 = vmax.f32 %v4895_v57, 0.0  ;;  %v4907_v47 = vsub.f32 %v4881_v50, %v8269_v37 }
 0x194   : > { %10561 = vst [vmem:[#allocation97_spill] sm:$0xff] %v8843_v3  ;;  %v8850_v23 = vmax.f32 %v4905_v4, 0.0  ;;  %v8852_v50 = vmax.f32 %v4906_v35, 0.0  ;;  %v8887_v59 = vmul.f32 %v8843_v3, %v8256_v29 }
 0x195   : > { %1861 = vadd.xlane.f32.xlu1 %v1860_v25  ;;  %v4873_v25 = vrot.slane %v8288_v56, %v8276_v46  ;;  %v4898_v56 = vsub.f32 %v4865_v21, %v8274_v45  ;;  %10554 = vst [vmem:[#allocation90_spill] sm:$0xff] %v8827_v44  ;;  %v8829_v46 = vmax.f32 %v4894_v8, 0.0  ;;  %v8831_v1 = vmax.f32 %v4896_v55, 0.0 }
 0x196   : > { %v8834_v21 = vmax.f32 %v4897_v52, 0.0  ;;  %v4909_v8 = vsub.f32 %v4885_v15, %v8269_v37  ;;  %v8848_v55 = vmax.f32 %v4904_v22, 0.0  ;;  %10564 = vst [vmem:[#allocation100_spill] sm:$0xff] %v8850_v23  ;;  %10565 = vst [vmem:[#allocation101_spill] sm:$0xff] %v8852_v50  ;;  %v4900_v52 = vsub.f32 %v4869_v10, %v8274_v45 }
 0x197   : > { %v4902_v33 = vsub.f32 %v4873_v25, %v8274_v45  ;;  %10555 = vst [vmem:[#allocation91_spill] sm:$0xff] %v8829_v46  ;;  %10556 = vst [vmem:[#allocation92_spill] sm:$0xff] %v8831_v1  ;;  %v8838_v16 = vmax.f32 %v4898_v56, 0.0  ;;  %v8855_v42 = vmax.f32 %v4907_v47, 0.0  ;;  %v8859_v56 = vmul.f32 %v8829_v46, %v8256_v29 }
 0x198   : > { %10557 = vst [vmem:[#allocation93_spill] sm:$0xff] %v8834_v21  ;;  %10563 = vst [vmem:[#allocation99_spill] sm:$0xff] %v8848_v55  ;;  %v8873_v35 = vmul.f32 %v8834_v21, %v8256_v29  ;;  %v8881_v10 = vmul.f32 %v8836_v18, %v8256_v29 }
 0x199   : > { %1909 = vadd.xlane.f32.xlu1 %v1908_v2  ;;  %v4903_v2 = vsub.f32 %v4873_v25, %v8269_v37  ;;  %10559 = vst [vmem:[#allocation95_spill] sm:$0xff] %v8838_v16  ;;  %v4908_v25 = vsub.f32 %v4885_v15, %v8274_v45  ;;  %v8845_v57 = vmax.f32 %v4902_v33, 0.0  ;;  %10566 = vst [vmem:[#allocation102_spill] sm:$0xff] %v8855_v42  ;;  %v8883_v15 = vmax.f32 %v4909_v8, 0.0 }
 0x19a   : > { %10567 = vst [vmem:[#allocation103_spill] sm:$0xff] %v8859_v56  ;;  %v8867_v37 = vmul.f32 %v8831_v1, %v8256_v29  ;;  %10571 = vst [vmem:[#allocation107_spill] sm:$0xff] %v8873_v35  ;;  %v8877_v45 = vmul.f32 %v8838_v16, %v8256_v29  ;;  %v8889_v33 = vmax.f32 %v4900_v52, 0.0  ;;  %v8905_v8 = vmul.f32 %v8850_v23, %v8256_v29 }
 0x19b   : > { %v8841_v5 = vmax.f32 %v4903_v2, 0.0  ;;  %10562 = vst [vmem:[#allocation98_spill] sm:$0xff] %v8845_v57  ;;  %v8863_v2 = vmul.f32 %v8827_v44, %v8256_v29  ;;  %v8869_v22 = vmax.f32 %v4908_v25, 0.0  ;;  %10573 = vst [vmem:[#allocation109_spill] sm:$0xff] %v8881_v10  ;;  %v8893_v4 = vmul.f32 %v8845_v57, %v8256_v29 }
 0x19c   : > { %10569 = vst [vmem:[#allocation105_spill] sm:$0xff] %v8867_v37  ;;  %10572 = vst [vmem:[#allocation108_spill] sm:$0xff] %v8877_v45  ;;  %v8901_v25 = vmul.f32 %v8848_v55, %v8256_v29  ;;  %v8909_v52 = vmul.f32 %v8852_v50, %v8256_v29 }
 0x19d   : > { %10560 = vst [vmem:[#allocation96_spill] sm:$0xff] %v8841_v5  ;;  %10568 = vst [vmem:[#allocation104_spill] sm:$0xff] %v8863_v2  ;;  %v8897_v47 = vmul.f32 %v8841_v5, %v8256_v29 }
 0x19e   : > { %10570 = vst [vmem:[#allocation106_spill] sm:$0xff] %v8869_v22  ;;  %10574 = vst [vmem:[#allocation110_spill] sm:$0xff] %v8883_v15 }
 0x19f   : > { %10575 = vst [vmem:[#allocation111_spill] sm:$0xff] %v8887_v59  ;;  %10576 = vst [vmem:[#allocation112_spill] sm:$0xff] %v8889_v33  ;;  %v8913_v59 = vmul.f32 %v8855_v42, %v8256_v29 }
 0x1a0   : > { %10577 = vst [vmem:[#allocation113_spill] sm:$0xff] %v8893_v4  ;;  %10578 = vst [vmem:[#allocation114_spill] sm:$0xff] %v8897_v47  ;;  %v8917_v4 = vmul.f32 %v8869_v22, %v8256_v29  ;;  %v8921_v47 = vmul.f32 %v8883_v15, %v8256_v29 }
 0x1a1   : > { %10579 = vst [vmem:[#allocation115_spill] sm:$0xff] %v8901_v25  ;;  %10580 = vst [vmem:[#allocation116_spill] sm:$0xff] %v8905_v8  ;;  %v8925_v25 = vmul.f32 %v8889_v33, %v8256_v29  ;;  %v8929_v8 = vmul.f32 %v8829_v46, %v8258_v30  ;;  %v1033_v29 = vld [vmem:[%s10488_s7 + $0x20] sm:$0xff] }
 0x1a2   : > { %10581 = vst [vmem:[#allocation117_spill] sm:$0xff] %v8909_v52  ;;  %10582 = vst [vmem:[#allocation118_spill] sm:$0xff] %v8913_v59  ;;  %v8933_v52 = vmul.f32 %v8827_v44, %v8258_v30  ;;  %v8937_v59 = vmul.f32 %v8831_v1, %v8258_v30  ;;  %v1031_v44 = vld [vmem:[%s10488_s7 + $0x10] sm:$0xff] }
 0x1a3   : > { %10583 = vst [vmem:[#allocation119_spill] sm:$0xff] %v8917_v4  ;;  %10584 = vst [vmem:[#allocation120_spill] sm:$0xff] %v8921_v47  ;;  %v8941_v4 = vmul.f32 %v8834_v21, %v8258_v30  ;;  %v8945_v47 = vmul.f32 %v8838_v16, %v8258_v30  ;;  %7426 = vmatprep.mubr.msk.f32.mxu1 %vm1261_vm3, %v1031_v44 }
 0x1a4   : > { %10585 = vst [vmem:[#allocation121_spill] sm:$0xff] %v8925_v25  ;;  %10586 = vst [vmem:[#allocation122_spill] sm:$0xff] %v8929_v8  ;;  %v8949_v25 = vmul.f32 %v8836_v18, %v8258_v30  ;;  %v8953_v8 = vmul.f32 %v8889_v33, %v8258_v30 }
 0x1a5   : > { %10587 = vst [vmem:[#allocation123_spill] sm:$0xff] %v8933_v52  ;;  %10588 = vst [vmem:[#allocation124_spill] sm:$0xff] %v8937_v59  ;;  %v8957_v59 = vmul.f32 %v8843_v3, %v8258_v30  ;;  %v8977_v52 = vmul.f32 %v8852_v50, %v8258_v30 }
 0x1a6   : > { %10589 = vst [vmem:[#allocation125_spill] sm:$0xff] %v8941_v4  ;;  %10590 = vst [vmem:[#allocation126_spill] sm:$0xff] %v8945_v47  ;;  %v8961_v4 = vmul.f32 %v8845_v57, %v8258_v30  ;;  %v8965_v47 = vmul.f32 %v8841_v5, %v8258_v30 }
 0x1a7   : > { %10591 = vst [vmem:[#allocation127_spill] sm:$0xff] %v8949_v25  ;;  %10592 = vst [vmem:[#allocation128_spill] sm:$0xff] %v8953_v8  ;;  %v8969_v25 = vmul.f32 %v8848_v55, %v8258_v30  ;;  %v8973_v8 = vmul.f32 %v8850_v23, %v8258_v30 }
 0x1a8   : > { %10593 = vst [vmem:[#allocation129_spill] sm:$0xff] %v8957_v59  ;;  %10594 = vst [vmem:[#allocation130_spill] sm:$0xff] %v8961_v4  ;;  %v8981_v59 = vmul.f32 %v8869_v22, %v8258_v30  ;;  %v8985_v4 = vmul.f32 %v8883_v15, %v8258_v30 }
 0x1a9   : > { %10595 = vst [vmem:[#allocation131_spill] sm:$0xff] %v8965_v47  ;;  %10596 = vst [vmem:[#allocation132_spill] sm:$0xff] %v8969_v25  ;;  %v8990_v25 = vmul.f32 %v8855_v42, %v8258_v30  ;;  %v1032_v30 = vld [vmem:[%s10488_s7 + $0x18] sm:$0xff] }
 0x1aa   : > { %10597 = vst [vmem:[#allocation133_spill] sm:$0xff] %v8973_v8  ;;  %10598 = vst [vmem:[#allocation134_spill] sm:$0xff] %v8977_v52  ;;  %7427 = vmatmul.mubr.msk.f32.vlgmr.msra.gmra.mxu1 %vm1261_vm3, %v1032_v30 }
 0x1ab   : > { %10599 = vst [vmem:[#allocation135_spill] sm:$0xff] %v8981_v59  ;;  %10600 = vst [vmem:[#allocation136_spill] sm:$0xff] %v8985_v4  ;;  %7429 = vmatprep.mubr.msk.f32.mxu1 %vm1261_vm3, %v1033_v29 }
 0x1ac   : > { %10601 = vst [vmem:[#allocation137_spill] sm:$0xff] %v8990_v25 }
 0x1ae   : > { %7430 = vmatmul.mubr.msk.f32.gmra.mxu1 %vm1261_vm3, %v1034_v17 }
 0x1b2   : > { %v1927_v47 = vpop.trf.xlu1 }
 0x1b3   : > { %7437 = vmatprep.mubr.msk.f32.mxu0 %vm1943_vm6, %v1927_v47 }
 0x1b6   : > { %v1928_v8 = vpop.trf.xlu1 }
 0x1b7   : > { %7438 = vmatmul.mubr.msk.f32.vlgmr.msra.gmra.mxu0 %vm1943_vm6, %v1928_v8 }
 0x1c0   : > { %v8993_v10 = vpop.xlane.xlu0 %1864 }
 0x1c1   : > { %v2138_v44 = vrot.slane %v8993_v10, %v8252_v26 }
 0x1c4   : > { %v1820_v52 = vpop.xlane.xlu0 %1819 }
 0x1c5   : > { %v2069_v29 = vrot.slane %v1820_v52, %v8260_v31 }
 0x1c8   : > { %v1871_v59 = vpop.xlane.xlu0 %1870 }
 0x1c9   : > { %v2147_v17 = vrot.slane %v1871_v59, %v8252_v26 }
 0x1cc   : > { %v8997_v37 = vpop.xlane.xlu0 %1876 }
 0x1cd   : > { %v2156_v10 = vrot.slane %v8997_v37, %v8252_v26 }
 0x1d0   : > { %v8999_v2 = vpop.xlane.xlu0 %1888 }
 0x1d4   : > { %v1823_v56 = vpop.xlane.xlu0 %1822 }
 0x1d5   : > { %v2075_v30 = vrot.slane %v1823_v56, %v8252_v26 }
 0x1d8   : > { %v1826_v25 = vpop.xlane.xlu0 %1825 }
 0x1d9   : > { %v2079_v53 = vrot.slane %v1826_v25, %v8260_v31 }
 0x1db   : > { %v2080_v56 = vsel %vm2070_vm7, %v2079_v53, %v2075_v30 }
 0x1dc   : > { %v9005_v8 = vpop.xlane.xlu0 %1828 }
 0x1e0   : > { %v9009_v42 = vpop.xlane.xlu0 %1840 }
 0x1e1   : > { %v2102_v37 = vrot.slane %v9009_v42, %v8252_v26 }
 0x1e4   : > { %v1883_v23 = vpop.xlane.xlu0 %1882 }
 0x1e5   : > { %v2165_v59 = vrot.slane %v1883_v23, %v8252_v26 }
 0x1e8   : > { %v9013_v5 = vpop.xlane.xlu0 %1894 }
 0x1ea   : > { %v8995_v45 = vpop.xlane.xlu1 %1867 }
 0x1eb   : > { %v2142_v25 = vrot.slane %v8995_v45, %v8260_v31  ;;  %v2084_v45 = vrot.slane %v9005_v8, %v8252_v26  ;;  %v2183_v8 = vrot.slane %v9013_v5, %v8252_v26 }
 0x1ec   : > { %v9017_v3 = vpop.xlane.xlu0 %1900 }
 0x1ed   : > { %v2143_v53 = vsel %vm2070_vm7, %v2142_v25, %v2138_v44 }
 0x1ee   : > { %v1817_v35 = vpop.xlane.xlu1 %1816 }
 0x1ef   : > { %v2064_v49 = vrot.slane %v1817_v35, %v8252_v26 }
 0x1f0   : > { %v1835_v16 = vpop.xlane.xlu0 %1834 }
 0x1f1   : > { %v2071_v52 = vsel %vm2070_vm7, %v2069_v29, %v2064_v49  ;;  %v2192_v49 = vrot.slane %v9017_v3, %v8252_v26  ;;  %v2093_v42 = vrot.slane %v1835_v16, %v8252_v26 }
 0x1f2   : > { %v1874_v4 = vpop.xlane.xlu1 %1873  ;;  %v2208_v30 = vsel %vm2207_vm8, %v2080_v56, %v2071_v52 }
 0x1f3   : > { %v2151_v51 = vrot.slane %v1874_v4, %v8260_v31  ;;  %v2174_v4 = vrot.slane %v8999_v2, %v8252_v26 }
 0x1f4   : > { %v9021_v1 = vpop.xlane.xlu0 %1846 }
 0x1f5   : > { %v2152_v2 = vsel %vm2070_vm7, %v2151_v51, %v2147_v17  ;;  %v2111_v17 = vrot.slane %v9021_v1, %v8252_v26 }
 0x1f6   : > { %v1880_v47 = vpop.xlane.xlu1 %1879 }
 0x1f7   : > { %v2160_v35 = vrot.slane %v1880_v47, %v8260_v31 }
 0x1f8   : > { %v9029_v14 = vpop.xlane.xlu0 %1852 }
 0x1f9   : > { %v2120_v1 = vrot.slane %v9029_v14, %v8252_v26 }
 0x1fa   : > { %v9001_v33 = vpop.xlane.xlu1 %1891 }
 0x1fb   : > { %v2178_v5 = vrot.slane %v9001_v33, %v8260_v31 }
 0x1fd   : > { %v1859_v20 = vpop.xlane.xlu0 %1858 }
 0x1fe   : > { %v9003_v15 = vpop.xlane.xlu1 %1831 }
 0x1ff   : > { %v2088_v47 = vrot.slane %v9003_v15, %v8260_v31  ;;  %v2161_v15 = vsel %vm2070_vm7, %v2160_v35, %v2156_v10 }
 0x201   : > { %v2089_v44 = vsel %vm2070_vm7, %v2088_v47, %v2084_v45  ;;  %v1907_v3 = vpop.xlane.xlu0 %1906  ;;  %v2179_v47 = vsel %vm2070_vm7, %v2178_v5, %v2174_v4 }
 0x202   : > { %v9007_v22 = vpop.xlane.xlu1 %1843  ;;  %v2210_v56 = vsel %vm2209_vm9, %v2089_v44, %v2208_v30  ;;  %v2201_v45 = vrot.slane %v1907_v3, %v8252_v26 }
 0x203   : > { %v2106_v33 = vrot.slane %v9007_v22, %v8260_v31 }
 0x206   : > { %v1886_v50 = vpop.xlane.xlu1 %1885 }
 0x207   : > { %v2169_v58 = vrot.slane %v1886_v50, %v8260_v31 }
 0x209   : > { %v2170_v23 = vsel %vm2070_vm7, %v2169_v58, %v2165_v59 }
 0x20a   : > { %v9011_v55 = vpop.xlane.xlu1 %1897 }
 0x20b   : > { %v2187_v51 = vrot.slane %v9011_v55, %v8260_v31 }
 0x20d   : > { %v2188_v52 = vsel %vm2070_vm7, %v2187_v51, %v2183_v8  ;;  %v2107_v8 = vsel %vm2070_vm7, %v2106_v33, %v2102_v37 }
 0x20e   : > { %v9015_v57 = vpop.xlane.xlu1 %1903 }
 0x20f   : > { %v2196_v25 = vrot.slane %v9015_v57, %v8260_v31 }
 0x211   : > { %v2197_v22 = vsel %vm2070_vm7, %v2196_v25, %v2192_v49 }
 0x212   : > { %v1838_v18 = vpop.xlane.xlu1 %1837 }
 0x213   : > { %v2097_v50 = vrot.slane %v1838_v18, %v8260_v31  ;;  %v2221_v18 = vsel %vm2207_vm8, %v2152_v2, %v2143_v53 }
 0x214   : > { %v2222_v35 = vsel %vm2209_vm9, %v2161_v15, %v2221_v18 }
 0x215   : > { %v2098_v16 = vsel %vm2070_vm7, %v2097_v50, %v2093_v42  ;;  %v2223_v10 = vsel %vm2211_vm10, %v2170_v23, %v2222_v35  ;;  %v1026_v35 = vld [vmem:[%s10486_s12 + $0x8] sm:$0xff] }
 0x216   : > { %v9019_v21 = vpop.xlane.xlu1 %1849  ;;  %v2212_v59 = vsel %vm2211_vm10, %v2098_v16, %v2210_v56  ;;  %v2224_v53 = vsel %vm2213_vm11, %v2179_v47, %v2223_v10  ;;  %v1038_v16 = vld [vmem:[%s10487_s13 + $0x8] sm:$0xff]  ;;  %v2350_v10 = vmul.f32 %v8254_v28, %v8386_v62  ;;  %v2351_v56 = vmul.f32 %v8254_v28, %v8402_v19 }
 0x217   : > { %v2115_v58 = vrot.slane %v9019_v21, %v8260_v31  ;;  %v2225_v14 = vsel %vm2215_vm12, %v2188_v52, %v2224_v53  ;;  %v2364_v52 = vmul.f32 %v8254_v28, %v8315_v7  ;;  %v2366_v47 = vmul.f32 %v8254_v28, %v8354_v32 }
 0x218   : > { %v2226_v49 = vsel %vm2217_vm13, %v2197_v22, %v2225_v14  ;;  %v2369_v53 = vmul.f32 %v8254_v28, %v8497_v11  ;;  %v2371_v14 = vmul.f32 %v8254_v28, %v8581_v40 }
 0x219   : > { %v2116_v2 = vsel %vm2070_vm7, %v2115_v58, %v2111_v17  ;;  %v2348_v58 = vmul.f32 %v8254_v28, %v8460_v61  ;;  %v2349_v17 = vmul.f32 %v8254_v28, %v8352_v27  ;;  %v2389_v61 = vsel %vm1814_vm5, %v2351_v56, 0.0  ;;  %v10604_v56 = vld [vmem:[#allocation37_spill] sm:$0xff] }
 0x21a   : > { %v9025_v46 = vpop.xlane.xlu1 %1855  ;;  %v2428_v62 = vsel %vm1814_vm5, %v2364_v52, 0.0  ;;  %v2449_v11 = vsel %vm1814_vm5, %v2371_v14, 0.0 }
 0x21b   : > { %v2124_v57 = vrot.slane %v9025_v46, %v8260_v31  ;;  %v2129_v46 = vrot.slane %v1859_v20, %v8252_v26  ;;  %v2383_v33 = vsel %vm1814_vm5, %v2349_v17, 0.0  ;;  %v10602_v17 = vld [vmem:[#allocation28_spill] sm:$0xff] }
 0x21e   : > { %v9036_v24 = vpop.xlane.xlu1 %1861 }
 0x21f   : > { %v2133_v21 = vrot.slane %v9036_v24, %v8260_v31  ;;  %v2125_v24 = vsel %vm2070_vm7, %v2124_v57, %v2120_v1  ;;  %v2386_v57 = vsel %vm1814_vm5, %v2350_v10, 0.0  ;;  %v2367_v1 = vmul.f32 %v8254_v28, %v8478_v43 }
 0x221   : > { %v2134_v20 = vsel %vm2070_vm7, %v2133_v21, %v2129_v46  ;;  %v2365_v21 = vmul.f32 %v8254_v28, %v8445_v54  ;;  %v2437_v22 = vsel %vm1814_vm5, %v2367_v1, 0.0  ;;  %v2355_v46 = vmul.f32 %v8254_v28, %v8548_v0 }
 0x222   : > { %v1910_v29 = vpop.xlane.xlu1 %1909 }
 0x223   : > { %v2205_v55 = vrot.slane %v1910_v29, %v8260_v31  ;;  %v2214_v29 = vsel %vm2213_vm11, %v2107_v8, %v2212_v59  ;;  %v2431_v19 = vsel %vm1814_vm5, %v2365_v21, 0.0  ;;  %v2354_v59 = vmul.f32 %v8254_v28, %v8488_v60  ;;  %v10606_v21 = vld [vmem:[#allocation35_spill] sm:$0xff] }
 0x224   : > { %v2216_v37 = vsel %vm2215_vm12, %v2116_v2, %v2214_v29  ;;  %v2401_v2 = vsel %vm1814_vm5, %v2355_v46, 0.0  ;;  %v2443_v60 = vsel %vm1814_vm5, %v2369_v53, 0.0  ;;  %v2356_v8 = vmul.f32 %v8254_v28, %v8421_v38  ;;  %v10610_v53 = vld [vmem:[#allocation39_spill] sm:$0xff] }
 0x225   : > { %v2206_v50 = vsel %vm2070_vm7, %v2205_v55, %v2201_v45  ;;  %v2218_v18 = vsel %vm2217_vm13, %v2125_v24, %v2216_v37  ;;  %v2380_v55 = vsel %vm1814_vm5, %v2348_v58, 0.0  ;;  %v2353_v45 = vmul.f32 %v8254_v28, %v8522_v9 }
 0x226   : > { %v2227_v42 = vsel %vm2219_vm14, %v2206_v50, %v2226_v49  ;;  %v2220_v5 = vsel %vm2219_vm14, %v2134_v20, %v2218_v18  ;;  %v2434_v9 = vsel %vm1814_vm5, %v2366_v47, 0.0  ;;  %v2398_v54 = vsel %vm1814_vm5, %v2354_v59, 0.0  ;;  %v10608_v59 = vld [vmem:[#allocation38_spill] sm:$0xff] }
 0x227   : > { %v2395_v27 = vsel %vm1814_vm5, %v2353_v45, 0.0  ;;  %v2368_v50 = vmul.f32 %v8254_v28, %v8366_v41  ;;  %v2404_v0 = vsel %vm1814_vm5, %v2356_v8, 0.0  ;;  %v2357_v24 = vmul.f32 %v8254_v28, %v8534_v6 }
 0x228   : > { %v2373_v20 = vmul.f32 %v8254_v28, %v8513_v36  ;;  %v2361_v29 = vmul.f32 %v8254_v28, %v8617_v48  ;;  %v2377_v48 = vmul.f32 %v8254_v28, %v8630_v13 }
 0x229   : > { %v2440_v43 = vsel %vm1814_vm5, %v2368_v50, 0.0 }
 0x22a   : > { %v2455_v6 = vsel %vm1814_vm5, %v2373_v20, 0.0  ;;  %v2419_v40 = vsel %vm1814_vm5, %v2361_v29, 0.0 }
 0x26a   : > { %v9228_v8 = vpop.f32.mrf.mxu1 }
 0x26c   : > { %v9233_v14 = vpop.f32.mrf.mxu1 }
 0x277   : > { %v7439_v4 = vpop.f32.mrf.mxu0 }
 0x278   : > { %v2026_v15 = vmul.f32 0.35355338, %v7439_v4  ;;  %v2407_v4 = vsel %vm1814_vm5, %v2357_v24, 0.0  ;;  %v10611_v24 = vld [vmem:[#allocation51_spill] sm:$0xff] }
 0x279   : > { %v2016_v30 = vpop.f32.mrf.mxu0 }
 0x27a   : > { %v2025_v23 = vmul.f32 0.35355338, %v2016_v30  ;;  %v9115_v51 = vadd.f32 %v2227_v42, %v2026_v15  ;;  %v2359_v15 = vmul.f32 %v8254_v28, %v8609_v39  ;;  %v2375_v30 = vmul.f32 %v8254_v28, %v8628_v12 }
 0x27b   : > { %v2363_v42 = vmul.f32 %v8254_v28, %v8632_v63  ;;  %v2379_v63 = vmul.f32 %v8254_v28, %v8642_v34 }
 0x27c   : > { %v2235_v44 = vsel %vm1814_vm5, %v9115_v51, -inf  ;;  %v9121_v3 = vadd.f32 %v2220_v5, %v2025_v23  ;;  %v2413_v49 = vsel %vm1814_vm5, %v2359_v15, 0.0  ;;  %v2461_v39 = vsel %vm1814_vm5, %v2375_v30, 0.0 }
 0x27d   : > { %2236 = vmax.xlane.f32.xlu1 %v2235_v44  ;;  %v2425_v23 = vsel %vm1814_vm5, %v2363_v42, 0.0 }
 0x27e   : > { %v2232_v25 = vsel %vm1814_vm5, %v9121_v3, -inf }
 0x27f   : > { %2233 = vmax.xlane.f32.xlu0 %v2232_v25  ;;  %v2467_v25 = vsel %vm1814_vm5, %v2377_v48, 0.0 }
 0x295   : > { %1248 = vperm.xlu0 %7718, %v1026_v35  }
 0x299   : > { %1372 = vperm.xlu0 %7718, %v1038_v16  }
 0x2b8   : > { %2381 = vadd.xlane.f32.xlu0 %v2380_v55 }
 0x2bc   : > { %2384 = vadd.xlane.f32.xlu0 %v2383_v33  ;;  %v10603_v33 = vld [vmem:[#allocation36_spill] sm:$0xff] }
 0x2bd   : > { %v2352_v10 = vmul.f32 %v8254_v28, %v10603_v33 }
 0x2c0   : > { %2387 = vadd.xlane.f32.xlu0 %v2386_v57  ;;  %v2392_v57 = vsel %vm1814_vm5, %v2352_v10, 0.0 }
 0x2c4   : > { %2390 = vadd.xlane.f32.xlu0 %v2389_v61  ;;  %v2370_v61 = vmul.f32 %v8254_v28, %v10604_v56 }
 0x2c6   : > { %v2446_v45 = vsel %vm1814_vm5, %v2370_v61, 0.0 }
 0x2c8   : > { %2396 = vadd.xlane.f32.xlu0 %v2395_v27  ;;  %v10605_v27 = vld [vmem:[#allocation40_spill] sm:$0xff] }
 0x2c9   : > { %v2358_v52 = vmul.f32 %v8254_v28, %v10605_v27 }
 0x2cc   : > { %2429 = vadd.xlane.f32.xlu0 %v2428_v62  ;;  %v2410_v62 = vsel %vm1814_vm5, %v2358_v52, 0.0 }
 0x2d0   : > { %2432 = vadd.xlane.f32.xlu0 %v2431_v19  ;;  %v2372_v19 = vmul.f32 %v8254_v28, %v10606_v21 }
 0x2d2   : > { %v2452_v47 = vsel %vm1814_vm5, %v2372_v19, 0.0 }
 0x2d4   : > { %2435 = vadd.xlane.f32.xlu0 %v2434_v9  ;;  %v10607_v9 = vld [vmem:[#allocation41_spill] sm:$0xff] }
 0x2d5   : > { %v2360_v1 = vmul.f32 %v8254_v28, %v10607_v9 }
 0x2d8   : > { %2438 = vadd.xlane.f32.xlu0 %v2437_v22  ;;  %v2416_v22 = vsel %vm1814_vm5, %v2360_v1, 0.0 }
 0x2dc   : > { %2399 = vadd.xlane.f32.xlu0 %v2398_v54  ;;  %v2374_v54 = vmul.f32 %v8254_v28, %v10608_v59 }
 0x2de   : > { %v2458_v46 = vsel %vm1814_vm5, %v2374_v54, 0.0 }
 0x2e0   : > { %2402 = vadd.xlane.f32.xlu0 %v2401_v2  ;;  %v10609_v2 = vld [vmem:[#allocation45_spill] sm:$0xff] }
 0x2e1   : > { %v2362_v50 = vmul.f32 %v8254_v28, %v10609_v2 }
 0x2e4   : > { %2441 = vadd.xlane.f32.xlu0 %v2440_v43  ;;  %v2422_v43 = vsel %vm1814_vm5, %v2362_v50, 0.0 }
 0x2e8   : > { %2444 = vadd.xlane.f32.xlu0 %v2443_v60  ;;  %v2376_v60 = vmul.f32 %v8254_v28, %v10610_v53 }
 0x2ec   : > { %2405 = vadd.xlane.f32.xlu0 %v2404_v0  ;;  %v2464_v0 = vsel %vm1814_vm5, %v2376_v60, 0.0 }
 0x2f0   : > { %2408 = vadd.xlane.f32.xlu0 %v2407_v4  ;;  %v2378_v4 = vmul.f32 %v8254_v28, %v10611_v24 }
 0x2f4   : > { %2450 = vadd.xlane.f32.xlu0 %v2449_v11  ;;  %v2470_v11 = vsel %vm1814_vm5, %v2378_v4, 0.0 }
 0x2f8   : > { %2414 = vadd.xlane.f32.xlu0 %v2413_v49  ;;  %v9236_v49 = vpop.f32.mrf.mxu1 }
 0x2fc   : > { %2456 = vadd.xlane.f32.xlu0 %v2455_v6  ;;  %v1515_v6 = vpop.f32.mrf.mxu1 }
 0x300   : > { %2420 = vadd.xlane.f32.xlu0 %v2419_v40 }
 0x304   : > { %2462 = vadd.xlane.f32.xlu0 %v2461_v39  ;;  %v10612_v39 = vld [vmem:[#allocation33_spill] sm:$0xff] }
 0x306   : > { %v2237_v36 = vpop.xlane.xlu1 %2236 }
 0x307   : > { %v2239_v37 = vsub.f32 %v9115_v51, %v2237_v36  ;;  %v2473_v51 = vsel %vm1814_vm5, %v2379_v63, 0.0 }
 0x308   : > { %2426 = vadd.xlane.f32.xlu0 %v2425_v23  ;;  %v2234_v18 = vpop.xlane.xlu0 %2233 }
 0x309   : > { %v2242_v5 = vmul.f32 1.442695, %v2239_v37  ;;  %v2238_v12 = vsub.f32 %v9121_v3, %v2234_v18  ;;  %v1041_v3 = vld [vmem:[%s10487_s13 + $0x20] sm:$0xff] }
 0x30b   : > { %7720 = vpow2.f32 %v2242_v5  ;;  %v2240_v44 = vmul.f32 1.442695, %v2238_v12 }
 0x30c   : > { %2468 = vadd.xlane.f32.xlu0 %v2467_v25 }
 0x30d   : > { %7722 = vpow2.f32 %v2240_v44 }
 0x310   : > { %2474 = vadd.xlane.f32.xlu0 %v2473_v51  ;;  %v9201_v55 = vpop.permute.xlu0 %1248 }
 0x311   : > { %v1352_v34 = vadd.f32 %v10602_v17, %v9201_v55 }
 0x314   : > { %v9238_v29 = vpop.permute.xlu0 %1372 }
 0x315   : > { %v1501_v42 = vadd.f32 %v10612_v39, %v9238_v29 }
 0x318   : > { %v7721_v35 = vpop.eup %7720 }
 0x319   : > { %v2247_v13 = vsel %vm1814_vm5, %v7721_v35, 0.0 }
 0x31a   : > { %v7723_v16 = vpop.eup %7722  ;;  %2248 = vadd.xlane.f32.xlu1 %v2247_v13 }
 0x31b   : > { %v2244_v58 = vsel %vm1814_vm5, %v7723_v16, 0.0 }
 0x31e   : > { %2245 = vadd.xlane.f32.xlu1 %v2244_v58 }
 0x32f   : > { %1387 = vperm.xlu1 %7719, %v1041_v3  }
 0x341   : > { %v2382_v58 = vpop.xlane.xlu0 %2381 }
 0x345   : > { %v2385_v3 = vpop.xlane.xlu0 %2384 }
 0x346   : > { %v2630_v39 = vrot.slane %v2385_v3, %v8260_v31 }
 0x349   : > { %v2388_v17 = vpop.xlane.xlu0 %2387 }
 0x358   : > { %2476 = vxpose.xlu1.b32.start.end [1/1] (short) (narrow) %v1352_v34, 16  ;;  %v2391_v34 = vpop.xlane.xlu0 %2390 }
 0x35c   : > { %v2397_v10 = vpop.xlane.xlu0 %2396 }
 0x383   : > { %2393 = vadd.xlane.f32.xlu1 %v2392_v57  ;;  %v2430_v57 = vpop.xlane.xlu0 %2429 }
 0x387   : > { %2447 = vadd.xlane.f32.xlu1 %v2446_v45  ;;  %v2433_v61 = vpop.xlane.xlu0 %2432 }
 0x38b   : > { %2411 = vadd.xlane.f32.xlu1 %v2410_v62 }
 0x38f   : > { %2453 = vadd.xlane.f32.xlu1 %v2452_v47 }
 0x393   : > { %2417 = vadd.xlane.f32.xlu1 %v2416_v22 }
 0x397   : > { %2459 = vadd.xlane.f32.xlu1 %v2458_v46 }
 0x39b   : > { %2423 = vadd.xlane.f32.xlu1 %v2422_v43 }
 0x39f   : > { %2465 = vadd.xlane.f32.xlu1 %v2464_v0 }
 0x3a3   : > { %v2249_v15 = vpop.xlane.xlu1 %2248  ;;  %2471 = vadd.xlane.f32.xlu1 %v2470_v11 }
 0x3a4   : > { %7724 = vrcp.f32 %v2249_v15 }
 0x3a7   : > { %v2246_v20 = vpop.xlane.xlu1 %2245 }
 0x3a8   : > { %7726 = vrcp.f32 %v2246_v20 }
 0x3ab   : > { %v9240_v40 = vpop.permute.xlu1 %1387 }
 0x3ac   : > { %v1516_v30 = vadd.f32 %v1515_v6, %v9240_v40 }
 0x3ae   : > { %7440 = vmatprep.subr.msk.mxu0 %vm1814_vm5, %v1516_v30 }
 0x3af   : > { %7441 = vmatpush3.xpose.msk.msra.mxu0 %vm1814_vm5, %v1516_v30 }
 0x3b0   : > { %7445 = vmatprep.subr.mxu0 %v1501_v42 }
 0x3b1   : > { %v7725_v36 = vpop.eup %7724 }
 0x3b2   : > { %v2253_v37 = vmul.f32 %v7725_v36, %v2249_v15  ;;  %v2639_v15 = vrot.slane %v2391_v34, %v8260_v31 }
 0x3b4   : > { %v2255_v48 = vsub.f32 2.0, %v2253_v37 }
 0x3b5   : > { %v7727_v23 = vpop.eup %7726 }
 0x3b6   : > { %v2252_v18 = vmul.f32 %v7727_v23, %v2246_v20  ;;  %v2257_v12 = vmul.f32 %v7725_v36, %v2255_v48  ;;  %v2702_v36 = vrot.slane %v2433_v61, %v8260_v31 }
 0x3b8   : > { %v2254_v5 = vsub.f32 2.0, %v2252_v18  ;;  %v2259_v63 = vmul.f32 %v7721_v35, %v2257_v12 }
 0x3ba   : > { %v2256_v44 = vmul.f32 %v7727_v23, %v2254_v5  ;;  %v2626_v23 = vrot.slane %v2382_v58, %v8252_v26 }
 0x3bc   : > { %v2258_v25 = vmul.f32 %v7723_v16, %v2256_v44  ;;  %v2436_v16 = vpop.xlane.xlu0 %2435  ;;  %v2698_v44 = vrot.slane %v2430_v57, %v8252_v26  ;;  %v2631_v3 = vsel %vm2070_vm7, %v2630_v39, %v2626_v23 }
 0x3bd   : > { %v2707_v37 = vrot.slane %v2436_v16, %v8252_v26 }
 0x3be   : > { %7442 = vmatprep.mubr.msk.f32.mxu0 %vm1814_vm5, %v2258_v25  ;;  %v2703_v58 = vsel %vm2070_vm7, %v2702_v36, %v2698_v44 }
 0x3bf   : > { %7443 = vmatmul.mubr.msk.f32.vlgmr.msra.gmra.mxu0 %vm1814_vm5, %v2259_v63 }
 0x3c0   : > { %7446 = vmatpush3.msra.mxu0 %v1501_v42  ;;  %v2439_v35 = vpop.xlane.xlu0 %2438  ;;  %v2635_v42 = vrot.slane %v2388_v17, %v8252_v26 }
 0x3c1   : > { %v2711_v20 = vrot.slane %v2439_v35, %v8260_v31 }
 0x3c2   : > { %v2640_v12 = vsel %vm2070_vm7, %v2639_v15, %v2635_v42 }
 0x3c3   : > { %v2712_v25 = vsel %vm2070_vm7, %v2711_v20, %v2707_v37  ;;  %v2767_v61 = vsel %vm2207_vm8, %v2640_v12, %v2631_v3 }
 0x3c4   : > { %v2400_v45 = vpop.xlane.xlu0 %2399  ;;  %v2774_v57 = vsel %vm2207_vm8, %v2712_v25, %v2703_v58 }
 0x3c5   : > { %v2653_v17 = vrot.slane %v2400_v45, %v8252_v26 }
 0x3c8   : > { %v2403_v27 = vpop.xlane.xlu0 %2402 }
 0x3c9   : > { %v2657_v63 = vrot.slane %v2403_v27, %v8260_v31 }
 0x3cc   : > { %v2442_v52 = vpop.xlane.xlu0 %2441 }
 0x3cd   : > { %v2716_v48 = vrot.slane %v2442_v52, %v8252_v26 }
 0x3d0   : > { %v2445_v62 = vpop.xlane.xlu0 %2444 }
 0x3d1   : > { %v2720_v6 = vrot.slane %v2445_v62, %v8260_v31 }
 0x3d4   : > { %v2492_v51 = vpop.trf.xlu1  ;;  %v9251_v19 = vpop.xlane.xlu0 %2405 }
 0x3d5   : > { %7447 = vmatprep.mubr.msk.f32.mxu0 %vm1943_vm6, %v2492_v51  ;;  %v2648_v51 = vrot.slane %v2397_v10, %v8260_v31  ;;  %v2658_v10 = vsel %vm2070_vm7, %v2657_v63, %v2653_v17  ;;  %v2662_v45 = vrot.slane %v9251_v19, %v8252_v26 }
 0x3d8   : > { %v2493_v13 = vpop.trf.xlu1  ;;  %v9253_v9 = vpop.xlane.xlu0 %2408 }
 0x3d9   : > { %7448 = vmatmul.mubr.msk.f32.vlgmr.msra.gmra.mxu0 %vm1943_vm6, %v2493_v13  ;;  %v2721_v13 = vsel %vm2070_vm7, %v2720_v6, %v2716_v48  ;;  %v2666_v19 = vrot.slane %v9253_v9, %v8260_v31 }
 0x3da   : > { %v2775_v52 = vsel %vm2209_vm9, %v2721_v13, %v2774_v57 }
 0x3db   : > { %v2667_v25 = vsel %vm2070_vm7, %v2666_v19, %v2662_v45  ;;  %v1042_v19 = vld [vmem:[%s10487_s13 + $0x28] sm:$0xff] }
 0x3dc   : > { %v2451_v22 = vpop.xlane.xlu0 %2450 }
 0x3dd   : > { %v2729_v62 = vrot.slane %v2451_v22, %v8260_v31 }
 0x3e0   : > { %v9257_v46 = vpop.xlane.xlu0 %2414 }
 0x3e1   : > { %v2675_v36 = vrot.slane %v9257_v46, %v8260_v31 }
 0x3e4   : > { %v2457_v50 = vpop.xlane.xlu0 %2456 }
 0x3e8   : > { %v9261_v60 = vpop.xlane.xlu0 %2420 }
 0x3e9   : > { %v2684_v9 = vrot.slane %v9261_v60, %v8260_v31 }
 0x3ec   : > { %v2463_v24 = vpop.xlane.xlu0 %2462 }
 0x3ed   : > { %v2747_v15 = vrot.slane %v2463_v24, %v8260_v31 }
 0x3f0   : > { %v9265_v11 = vpop.xlane.xlu0 %2426 }
 0x3f1   : > { %v2693_v46 = vrot.slane %v9265_v11, %v8260_v31 }
 0x3f4   : > { %v2469_v18 = vpop.xlane.xlu0 %2468 }
 0x3f8   : > { %v2475_v20 = vpop.xlane.xlu0 %2474 }
 0x3f9   : > { %v2765_v37 = vrot.slane %v2475_v20, %v8260_v31 }
 0x40c   : > { %v2394_v47 = vpop.xlane.xlu1 %2393 }
 0x40d   : > { %v2644_v5 = vrot.slane %v2394_v47, %v8252_v26 }
 0x40f   : > { %v2649_v16 = vsel %vm2070_vm7, %v2648_v51, %v2644_v5 }
 0x410   : > { %v2448_v1 = vpop.xlane.xlu1 %2447  ;;  %v2768_v39 = vsel %vm2209_vm9, %v2649_v16, %v2767_v61 }
 0x411   : > { %v2725_v34 = vrot.slane %v2448_v1, %v8252_v26  ;;  %v2738_v1 = vrot.slane %v2457_v50, %v8260_v31  ;;  %v2756_v50 = vrot.slane %v2469_v18, %v8260_v31  ;;  %v2769_v48 = vsel %vm2211_vm10, %v2658_v10, %v2768_v39 }
 0x412   : > { %v2770_v11 = vsel %vm2213_vm11, %v2667_v25, %v2769_v48 }
 0x413   : > { %v2730_v42 = vsel %vm2070_vm7, %v2729_v62, %v2725_v34 }
 0x414   : > { %v9255_v54 = vpop.xlane.xlu1 %2411  ;;  %v2776_v18 = vsel %vm2211_vm10, %v2730_v42, %v2775_v52 }
 0x415   : > { %v2671_v22 = vrot.slane %v9255_v54, %v8252_v26 }
 0x417   : > { %v2676_v12 = vsel %vm2070_vm7, %v2675_v36, %v2671_v22  ;;  %v1035_v36 = vld [vmem:[%s10488_s7 + $0x30] sm:$0xff] }
 0x418   : > { %v2454_v2 = vpop.xlane.xlu1 %2453  ;;  %v2771_v61 = vsel %vm2215_vm12, %v2676_v12, %v2770_v11  ;;  %7432 = vmatprep.mubr.msk.f32.mxu1 %vm1261_vm3, %v1035_v36  ;;  %v10620_v11 = vld [vmem:[#allocation48_spill] sm:$0xff] }
 0x419   : > { %v2734_v35 = vrot.slane %v2454_v2, %v8252_v26 }
 0x41b   : > { %v2739_v24 = vsel %vm2070_vm7, %v2738_v1, %v2734_v35 }
 0x41c   : > { %v9259_v43 = vpop.xlane.xlu1 %2417  ;;  %v2777_v44 = vsel %vm2213_vm11, %v2739_v24, %v2776_v18  ;;  %v1039_v24 = vld [vmem:[%s10487_s13 + $0x10] sm:$0xff]  ;;  %v10616_v18 = vld [vmem:[#allocation44_spill] sm:$0xff] }
 0x420   : > { %v2460_v0 = vpop.xlane.xlu1 %2459 }
 0x421   : > { %v2743_v47 = vrot.slane %v2460_v0, %v8252_v26 }
 0x423   : > { %v2748_v23 = vsel %vm2070_vm7, %v2747_v15, %v2743_v47 }
 0x424   : > { %v9263_v4 = vpop.xlane.xlu1 %2423  ;;  %v2778_v51 = vsel %vm2215_vm12, %v2748_v23, %v2777_v44  ;;  %v10614_v23 = vld [vmem:[#allocation42_spill] sm:$0xff] }
 0x425   : > { %v2689_v54 = vrot.slane %v9263_v4, %v8252_v26 }
 0x427   : > { %v2694_v58 = vsel %vm2070_vm7, %v2693_v46, %v2689_v54  ;;  %v3095_v54 = vsel %vm1814_vm5, %v10614_v23, 0.0  ;;  %v10617_v46 = vld [vmem:[#allocation26_spill] sm:$0xff] }
 0x428   : > { %v2466_v30 = vpop.xlane.xlu1 %2465  ;;  %v3067_v12 = vmul.f32 %v10617_v46, %v10603_v33 }
 0x429   : > { %v2752_v6 = vrot.slane %v2466_v30, %v8252_v26  ;;  %v2680_v30 = vrot.slane %v9259_v43, %v8252_v26 }
 0x42a   : > { %v3107_v44 = vsel %vm1814_vm5, %v3067_v12, 0.0 }
 0x42b   : > { %v2757_v5 = vsel %vm2070_vm7, %v2756_v50, %v2752_v6  ;;  %v2685_v60 = vsel %vm2070_vm7, %v2684_v9, %v2680_v30  ;;  %v1027_v50 = vld [vmem:[%s10486_s12 + $0x10] sm:$0xff]  ;;  %v1046_v30 = vld [vmem:[%s10613_s2 + $0x8] sm:$0xff] }
 0x42c   : > { %v2472_v27 = vpop.xlane.xlu1 %2471  ;;  %v2779_v3 = vsel %vm2217_vm13, %v2757_v5, %v2778_v51  ;;  %v2772_v35 = vsel %vm2217_vm13, %v2685_v60, %v2771_v61  ;;  %7455 = vmatprep.subr.mxu0 %v1046_v30  ;;  %v10615_v9 = vld [vmem:[#allocation43_spill] sm:$0xff]  ;;  %v3101_v5 = vsel %vm1814_vm5, %v10616_v18, 0.0  ;;  %v3079_v60 = vmul.f32 %v10617_v46, %v8315_v7 }
 0x42d   : > { %v2761_v0 = vrot.slane %v2472_v27, %v8252_v26  ;;  %v2773_v27 = vsel %vm2219_vm14, %v2694_v58, %v2772_v35  ;;  %7456 = vmatpush3.msra.mxu0 %v1046_v30  ;;  %v3098_v48 = vsel %vm1814_vm5, %v10615_v9, 0.0  ;;  %v10619_v51 = vld [vmem:[#allocation47_spill] sm:$0xff]  ;;  %v3083_v35 = vmul.f32 %v10617_v46, %v8366_v41 }
 0x42e   : > { %v10626_v30 = vld [vmem:[#allocation55_spill] sm:$0xff] }
 0x42f   : > { %v2766_v4 = vsel %vm2070_vm7, %v2765_v37, %v2761_v0  ;;  %v1036_v37 = vld [vmem:[%s10488_s7 + $0x38] sm:$0xff]  ;;  %v3137_v36 = vsel %vm1814_vm5, %v10626_v30, 0.0 }
 0x430   : > { %v2780_v34 = vsel %vm2219_vm14, %v2766_v4, %v2779_v3  ;;  %7433 = vmatmul.mubr.msk.f32.gmra.mxu1 %vm1261_vm3, %v1036_v37  ;;  %v10618_v4 = vld [vmem:[#allocation46_spill] sm:$0xff]  ;;  %v3081_v3 = vmul.f32 %v10617_v46, %v8354_v32  ;;  %v3091_v37 = vmul.f32 %v10617_v46, %v10610_v53 }
 0x431   : > { %v3110_v25 = vsel %vm1814_vm5, %v10618_v4, 0.0  ;;  %v10628_v4 = vld [vmem:[#allocation32_spill] sm:$0xff] }
 0x432   : > { %v3149_v58 = vsel %vm1814_vm5, %v3081_v3, 0.0  ;;  %v3179_v23 = vsel %vm1814_vm5, %v3091_v37, 0.0 }
 0x47f   : > { %v9300_v2 = vpop.f32.mrf.mxu0 }
 0x481   : > { %v9324_v43 = vpop.f32.mrf.mxu0 }
 0x499   : > { %v7449_v63 = vpop.f32.mrf.mxu0 }
 0x49a   : > { %v2590_v13 = vmul.f32 0.35355338, %v7449_v63  ;;  %v3143_v63 = vsel %vm1814_vm5, %v3079_v60, 0.0 }
 0x49b   : > { %v2580_v17 = vpop.f32.mrf.mxu0 }
 0x49c   : > { %v2589_v57 = vmul.f32 0.35355338, %v2580_v17  ;;  %v2784_v16 = vadd.f32 %v2780_v34, %v2590_v13  ;;  %v3146_v13 = vsel %vm1814_vm5, %v10619_v51, 0.0  ;;  %v3152_v17 = vsel %vm1814_vm5, %v10620_v11, 0.0  ;;  %v10621_v34 = vld [vmem:[#allocation49_spill] sm:$0xff] }
 0x49d   : > { %v3113_v61 = vsel %vm1814_vm5, %v10621_v34, 0.0 }
 0x49e   : > { %v2788_v10 = vsel %vm1814_vm5, %v2784_v16, -inf  ;;  %v2783_v52 = vadd.f32 %v2773_v27, %v2589_v57  ;;  %v10622_v57 = vld [vmem:[#allocation50_spill] sm:$0xff]  ;;  %v3155_v27 = vsel %vm1814_vm5, %v3083_v35, 0.0 }
 0x49f   : > { %2789 = vmax.xlane.f32.xlu0 %v2788_v10  ;;  %v10623_v10 = vld [vmem:[#allocation52_spill] sm:$0xff]  ;;  %v10630_v35 = vld [vmem:[#allocation58_spill] sm:$0xff] }
 0x4a0   : > { %v2785_v62 = vsel %vm1814_vm5, %v2783_v52, -inf }
 0x4a1   : > { %2786 = vmax.xlane.f32.xlu1 %v2785_v62  ;;  %v3071_v62 = vmul.f32 %v10617_v46, %v8421_v38 }
 0x528   : > { %v2790_v47 = vpop.xlane.xlu0 %2789 }
 0x529   : > { %v2792_v45 = vsub.f32 %v2784_v16, %v2790_v47  ;;  %v3116_v16 = vsel %vm1814_vm5, %v10622_v57, 0.0  ;;  %v3119_v47 = vsel %vm1814_vm5, %v3071_v62, 0.0 }
 0x52a   : > { %v2787_v1 = vpop.xlane.xlu1 %2786 }
 0x52b   : > { %v2795_v15 = vmul.f32 1.442695, %v2792_v45  ;;  %v2791_v20 = vsub.f32 %v2783_v52, %v2787_v1  ;;  %v3158_v52 = vsel %vm1814_vm5, %v10623_v10, 0.0  ;;  %v3085_v45 = vmul.f32 %v10617_v46, %v10604_v56  ;;  %v10632_v10 = vld [vmem:[#allocation60_spill] sm:$0xff] }
 0x52d   : > { %7728 = vpow2.f32 %v2795_v15  ;;  %v2793_v6 = vmul.f32 1.442695, %v2791_v20  ;;  %v3161_v1 = vsel %vm1814_vm5, %v3085_v45, 0.0  ;;  %v10624_v15 = vld [vmem:[#allocation53_spill] sm:$0xff]  ;;  %v10635_v45 = vld [vmem:[#allocation63_spill] sm:$0xff] }
 0x52e   : > { %v3125_v20 = vsel %vm1814_vm5, %v10624_v15, 0.0  ;;  %v10636_v15 = vld [vmem:[#allocation64_spill] sm:$0xff] }
 0x52f   : > { %7730 = vpow2.f32 %v2793_v6  ;;  %v3087_v6 = vmul.f32 %v10617_v46, %v10606_v21 }
 0x53a   : > { %v9343_v39 = vpop.eup %7728 }
 0x53b   : > { %v2800_v42 = vsel %vm1814_vm5, %v9343_v39, 0.0 }
 0x53c   : > { %v9347_v22 = vpop.eup %7730  ;;  %2801 = vadd.xlane.f32.xlu0 %v2800_v42  ;;  %v3167_v42 = vsel %vm1814_vm5, %v3087_v6, 0.0  ;;  %v10637_v6 = vld [vmem:[#allocation65_spill] sm:$0xff] }
 0x53d   : > { %v2797_v0 = vsel %vm1814_vm5, %v9347_v22, 0.0 }
 0x53e   : > { %2798 = vadd.xlane.f32.xlu1 %v2797_v0  ;;  %v10625_v0 = vld [vmem:[#allocation54_spill] sm:$0xff] }
 0x54f   : > { %1392 = vperm.xlu1 %7719, %v1042_v19   ;;  %v3131_v19 = vsel %vm1814_vm5, %v10625_v0, 0.0  ;;  %v10638_v0 = vld [vmem:[#allocation66_spill] sm:$0xff] }
 0x552   : > { %1253 = vperm.xlu0 %7718, %v1027_v50   ;;  %v3089_v50 = vmul.f32 %v10617_v46, %v10608_v59  ;;  %v1045_v46 = vld [vmem:[%s10613_s2] sm:$0xff] }
 0x553   : > { %1377 = vperm.xlu1 %7719, %v1039_v24  }
 0x554   : > { %v3173_v24 = vsel %vm1814_vm5, %v3089_v50, 0.0  ;;  %v9455_v50 = vpop.f32.mrf.mxu1 }
 0x571   : > { %3096 = vadd.xlane.f32.xlu0 %v3095_v54  ;;  %v10627_v54 = vld [vmem:[#allocation56_spill] sm:$0xff] }
 0x572   : > { %v3185_v9 = vsel %vm1814_vm5, %v10627_v54, 0.0 }
 0x575   : > { %3099 = vadd.xlane.f32.xlu0 %v3098_v48 }
 0x579   : > { %3102 = vadd.xlane.f32.xlu0 %v3101_v5 }
 0x57d   : > { %3108 = vadd.xlane.f32.xlu0 %v3107_v44 }
 0x581   : > { %3111 = vadd.xlane.f32.xlu0 %v3110_v25 }
 0x585   : > { %3144 = vadd.xlane.f32.xlu0 %v3143_v63 }
 0x589   : > { %3147 = vadd.xlane.f32.xlu0 %v3146_v13 }
 0x58d   : > { %3150 = vadd.xlane.f32.xlu0 %v3149_v58 }
 0x591   : > { %3153 = vadd.xlane.f32.xlu0 %v3152_v17 }
 0x595   : > { %3114 = vadd.xlane.f32.xlu0 %v3113_v61 }
 0x599   : > { %3117 = vadd.xlane.f32.xlu0 %v3116_v16 }
 0x59d   : > { %3156 = vadd.xlane.f32.xlu0 %v3155_v27 }
 0x5a1   : > { %3159 = vadd.xlane.f32.xlu0 %v3158_v52  ;;  %v3128_v52 = vsel %vm1814_vm5, %v10632_v10, 0.0 }
 0x5a5   : > { %3120 = vadd.xlane.f32.xlu0 %v3119_v47 }
 0x5a9   : > { %3162 = vadd.xlane.f32.xlu0 %v3161_v1  ;;  %v3176_v1 = vsel %vm1814_vm5, %v10635_v45, 0.0 }
 0x5ad   : > { %3126 = vadd.xlane.f32.xlu0 %v3125_v20  ;;  %v3140_v20 = vsel %vm1814_vm5, %v10636_v15, 0.0 }
 0x5b1   : > { %3168 = vadd.xlane.f32.xlu0 %v3167_v42  ;;  %v3182_v42 = vsel %vm1814_vm5, %v10637_v6, 0.0 }
 0x5b5   : > { %3132 = vadd.xlane.f32.xlu0 %v3131_v19  ;;  %v3188_v19 = vsel %vm1814_vm5, %v10638_v0, 0.0 }
 0x5b9   : > { %3174 = vadd.xlane.f32.xlu0 %v3173_v24  ;;  %v9457_v24 = vpop.f32.mrf.mxu1 }
 0x5bd   : > { %3138 = vadd.xlane.f32.xlu0 %v3137_v36 }
 0x5c1   : > { %3180 = vadd.xlane.f32.xlu0 %v3179_v23 }
 0x5c5   : > { %3186 = vadd.xlane.f32.xlu0 %v3185_v9  ;;  %v2802_v48 = vpop.xlane.xlu0 %2801 }
 0x5c6   : > { %7732 = vrcp.f32 %v2802_v48 }
 0x5c7   : > { %v2799_v18 = vpop.xlane.xlu1 %2798 }
 0x5c8   : > { %7734 = vrcp.f32 %v2799_v18 }
 0x5cb   : > { %v9412_v5 = vpop.permute.xlu1 %1392 }
 0x5cc   : > { %v1521_v12 = vadd.f32 %v9236_v49, %v9412_v5 }
 0x5cd   : > { %v9416_v44 = vpop.permute.xlu0 %1253 }
 0x5ce   : > { %v1357_v25 = vadd.f32 %v10628_v4, %v9416_v44  ;;  %7450 = vmatprep.subr.msk.mxu1 %vm1814_vm5, %v1521_v12 }
 0x5cf   : > { %7451 = vmatpush3.xpose.msk.msra.mxu1 %vm1814_vm5, %v1521_v12  ;;  %v9423_v60 = vpop.permute.xlu1 %1377 }
 0x5d0   : > { %v1506_v63 = vadd.f32 %v9233_v14, %v9423_v60  ;;  %3191 = vxpose.xlu1.b32.start.end [1/1] (short) (narrow) %v1357_v25, 16  ;;  %7460 = vmatprep.subr.mxu1 %v1045_v46  ;;  %v10629_v14 = vld [vmem:[#allocation57_spill] sm:$0xff] }
 0x5d1   : > { %v3104_v16 = vsel %vm1814_vm5, %v10629_v14, 0.0 }
 0x5d2   : > { %7465 = vmatprep.subr.mxu0 %v1506_v63 }
 0x5d3   : > { %v7733_v51 = vpop.eup %7732 }
 0x5d4   : > { %v2806_v49 = vmul.f32 %v7733_v51, %v2802_v48 }
 0x5d5   : > { %v7735_v13 = vpop.eup %7734 }
 0x5d6   : > { %v2808_v3 = vsub.f32 2.0, %v2806_v49  ;;  %v2805_v58 = vmul.f32 %v7735_v13, %v2799_v18 }
 0x5d8   : > { %v2807_v11 = vsub.f32 2.0, %v2805_v58  ;;  %v2810_v17 = vmul.f32 %v7733_v51, %v2808_v3 }
 0x5da   : > { %v2809_v34 = vmul.f32 %v7735_v13, %v2807_v11  ;;  %v2812_v57 = vmul.f32 %v9343_v39, %v2810_v17  ;;  %v10631_v39 = vld [vmem:[#allocation59_spill] sm:$0xff] }
 0x5db   : > { %v3164_v27 = vsel %vm1814_vm5, %v10631_v39, 0.0 }
 0x5dc   : > { %v2811_v61 = vmul.f32 %v9347_v22, %v2809_v34  ;;  %v3122_v22 = vsel %vm1814_vm5, %v10630_v35, 0.0 }
 0x5de   : > { %7452 = vmatprep.mubr.msk.f32.mxu1 %vm1814_vm5, %v2811_v61 }
 0x5df   : > { %7453 = vmatmul.mubr.msk.f32.vlgmr.msra.gmra.mxu1 %vm1814_vm5, %v2812_v57 }
 0x5e0   : > { %7462 = vmatprep.mubr.msk.f32.mxu1 %vm1943_vm6, %v9324_v43  ;;  %7461 = vmatpush3.msra.mxu1 %v1045_v46  ;;  %v10633_v43 = vld [vmem:[#allocation61_spill] sm:$0xff] }
 0x5e1   : > { %v3170_v62 = vsel %vm1814_vm5, %v10633_v43, 0.0 }
 0x5e3   : > { %7463 = vmatmul.mubr.msk.f32.vlgmr.msra.gmra.mxu1 %vm1943_vm6, %v9300_v2  ;;  %v10634_v2 = vld [vmem:[#allocation62_spill] sm:$0xff] }
 0x5e4   : > { %v3134_v47 = vsel %vm1814_vm5, %v10634_v2, 0.0 }
 0x5fa   : > { %v3097_v54 = vpop.xlane.xlu0 %3096 }
 0x5fb   : > { %3105 = vadd.xlane.f32.xlu1 %v3104_v16  ;;  %v3341_v0 = vrot.slane %v3097_v54, %v8252_v26 }
 0x5fe   : > { %v3100_v9 = vpop.xlane.xlu0 %3099 }
 0x5ff   : > { %3123 = vadd.xlane.f32.xlu1 %v3122_v22 }
 0x602   : > { %v3103_v48 = vpop.xlane.xlu0 %3102 }
 0x603   : > { %3165 = vadd.xlane.f32.xlu1 %v3164_v27  ;;  %v3350_v15 = vrot.slane %v3103_v48, %v8252_v26 }
 0x606   : > { %v3109_v18 = vpop.xlane.xlu0 %3108 }
 0x607   : > { %3129 = vadd.xlane.f32.xlu1 %v3128_v52 }
 0x60a   : > { %v3112_v12 = vpop.xlane.xlu0 %3111 }
 0x60b   : > { %3171 = vadd.xlane.f32.xlu1 %v3170_v62 }
 0x60e   : > { %v3145_v46 = vpop.xlane.xlu0 %3144 }
 0x60f   : > { %3135 = vadd.xlane.f32.xlu1 %v3134_v47  ;;  %v3345_v47 = vrot.slane %v3100_v9, %v8260_v31 }
 0x612   : > { %v3148_v4 = vpop.xlane.xlu0 %3147 }
 0x613   : > { %3177 = vadd.xlane.f32.xlu1 %v3176_v1  ;;  %v3417_v6 = vrot.slane %v3148_v4, %v8260_v31 }
 0x616   : > { %v3151_v25 = vpop.xlane.xlu0 %3150 }
 0x617   : > { %3141 = vadd.xlane.f32.xlu1 %v3140_v20  ;;  %v3363_v20 = vrot.slane %v3112_v12, %v8260_v31 }
 0x61a   : > { %v3154_v51 = vpop.xlane.xlu0 %3153 }
 0x61b   : > { %3183 = vadd.xlane.f32.xlu1 %v3182_v42  ;;  %v3426_v62 = vrot.slane %v3154_v51, %v8260_v31  ;;  %v3422_v42 = vrot.slane %v3151_v25, %v8252_v26  ;;  %v3346_v25 = vsel %vm2070_vm7, %v3345_v47, %v3341_v0 }
 0x61d   : > { %v3427_v9 = vsel %vm2070_vm7, %v3426_v62, %v3422_v42 }
 0x61e   : > { %v3115_v49 = vpop.xlane.xlu0 %3114 }
 0x61f   : > { %3189 = vadd.xlane.f32.xlu1 %v3188_v19  ;;  %v3368_v12 = vrot.slane %v3115_v49, %v8252_v26 }
 0x622   : > { %v3118_v13 = vpop.xlane.xlu0 %3117 }
 0x623   : > { %v3372_v19 = vrot.slane %v3118_v13, %v8260_v31 }
 0x626   : > { %v3157_v3 = vpop.xlane.xlu0 %3156 }
 0x62a   : > { %v3160_v11 = vpop.xlane.xlu0 %3159 }
 0x62b   : > { %v3435_v45 = vrot.slane %v3160_v11, %v8260_v31 }
 0x62e   : > { %v9465_v17 = vpop.xlane.xlu0 %3120 }
 0x62f   : > { %v3377_v62 = vrot.slane %v9465_v17, %v8252_v26 }
 0x632   : > { %v3163_v61 = vpop.xlane.xlu0 %3162 }
 0x636   : > { %v9469_v14 = vpop.xlane.xlu0 %3126 }
 0x63a   : > { %v3169_v35 = vpop.xlane.xlu0 %3168 }
 0x63e   : > { %v9473_v39 = vpop.xlane.xlu0 %3132 }
 0x63f   : > { %v3395_v0 = vrot.slane %v9473_v39, %v8252_v26 }
 0x642   : > { %v3175_v10 = vpop.xlane.xlu0 %3174 }
 0x646   : > { %v9477_v43 = vpop.xlane.xlu0 %3138 }
 0x647   : > { %v3404_v39 = vrot.slane %v9477_v43, %v8252_v26 }
 0x64c   : > { %v3207_v36 = vpop.trf.xlu1 }
 0x650   : > { %v3208_v23 = vpop.trf.xlu1 }
 0x684   : > { %v3106_v58 = vpop.xlane.xlu1 %3105 }
 0x685   : > { %v3354_v2 = vrot.slane %v3106_v58, %v8260_v31 }
 0x687   : > { %v3355_v48 = vsel %vm2070_vm7, %v3354_v2, %v3350_v15  ;;  %v3440_v2 = vrot.slane %v3163_v61, %v8252_v26 }
 0x69f   : > { %v7454_v30 = vpop.f32.mrf.mxu1 }
 0x6a1   : > { %v2888_v37 = vpop.f32.mrf.mxu1 }
 0x6a2   : > { %7457 = vmatprep.mubr.msk.f32.mxu0 %vm1943_vm6, %v2888_v37  ;;  %v3359_v37 = vrot.slane %v3109_v18, %v8252_v26 }
 0x6a3   : > { %7458 = vmatmul.mubr.msk.f32.vlgmr.msra.gmra.mxu0 %vm1943_vm6, %v7454_v30  ;;  %v3431_v30 = vrot.slane %v3157_v3, %v8252_v26  ;;  %v3482_v3 = vsel %vm2207_vm8, %v3355_v48, %v3346_v25 }
 0x6a4   : > { %7466 = vmatpush3.msra.mxu0 %v1506_v63  ;;  %7467 = vmatprep.mubr.msk.f32.mxu0 %vm1943_vm6, %v3207_v36  ;;  %v9463_v63 = vpop.xlane.xlu1 %3123  ;;  %v3181_v36 = vpop.xlane.xlu0 %3180  ;;  %v3364_v54 = vsel %vm2070_vm7, %v3363_v20, %v3359_v37 }
 0x6a5   : > { %v3436_v4 = vsel %vm2070_vm7, %v3435_v45, %v3431_v30  ;;  %v3458_v45 = vrot.slane %v3175_v10, %v8252_v26  ;;  %v3381_v20 = vrot.slane %v9463_v63, %v8260_v31 }
 0x6a7   : > { %7468 = vmatmul.mubr.msk.f32.vlgmr.msra.gmra.mxu0 %vm1943_vm6, %v3208_v23  ;;  %v3413_v23 = vrot.slane %v3145_v46, %v8252_v26  ;;  %v3373_v46 = vsel %vm2070_vm7, %v3372_v19, %v3368_v12 }
 0x6a8   : > { %v3166_v34 = vpop.xlane.xlu1 %3165  ;;  %v3187_v15 = vpop.xlane.xlu0 %3186 }
 0x6a9   : > { %v3418_v51 = vsel %vm2070_vm7, %v3417_v6, %v3413_v23  ;;  %v3444_v13 = vrot.slane %v3166_v34, %v8260_v31  ;;  %v3449_v34 = vrot.slane %v3169_v35, %v8252_v26  ;;  %v3483_v6 = vsel %vm2209_vm9, %v3364_v54, %v3482_v3 }
 0x6aa   : > { %v3489_v18 = vsel %vm2207_vm8, %v3427_v9, %v3418_v51  ;;  %v3386_v35 = vrot.slane %v9469_v14, %v8252_v26  ;;  %v3476_v19 = vrot.slane %v3187_v15, %v8252_v26  ;;  %v3382_v14 = vsel %vm2070_vm7, %v3381_v20, %v3377_v62  ;;  %v1040_v15 = vld [vmem:[%s10487_s13 + $0x18] sm:$0xff]  ;;  %v10639_v20 = vld [vmem:[#allocation67_spill] sm:$0xff] }
 0x6ab   : > { %v3490_v49 = vsel %vm2209_vm9, %v3436_v4, %v3489_v18  ;;  %v3445_v42 = vsel %vm2070_vm7, %v3444_v13, %v3440_v2 }
 0x6ac   : > { %v9467_v57 = vpop.xlane.xlu1 %3129  ;;  %v3491_v37 = vsel %vm2211_vm10, %v3445_v42, %v3490_v49 }
 0x6ad   : > { %v3390_v17 = vrot.slane %v9467_v57, %v8260_v31 }
 0x6af   : > { %v3391_v9 = vsel %vm2070_vm7, %v3390_v17, %v3386_v35  ;;  %v10641_v17 = vld [vmem:[#allocation69_spill] sm:$0xff]  ;;  %v10642_v35 = vld [vmem:[#allocation70_spill] sm:$0xff] }
 0x6b0   : > { %v3172_v16 = vpop.xlane.xlu1 %3171 }
 0x6b1   : > { %v3453_v58 = vrot.slane %v3172_v16, %v8260_v31 }
 0x6b3   : > { %v3454_v10 = vsel %vm2070_vm7, %v3453_v58, %v3449_v34 }
 0x6b4   : > { %v9471_v22 = vpop.xlane.xlu1 %3135  ;;  %v3492_v48 = vsel %vm2213_vm11, %v3454_v10, %v3491_v37  ;;  %v10643_v10 = vld [vmem:[#allocation71_spill] sm:$0xff] }
 0x6b5   : > { %v3399_v63 = vrot.slane %v9471_v22, %v8260_v31 }
 0x6b8   : > { %v3178_v27 = vpop.xlane.xlu1 %3177 }
 0x6b9   : > { %v3462_v47 = vrot.slane %v3178_v27, %v8260_v31  ;;  %v3467_v27 = vrot.slane %v3181_v36, %v8252_v26  ;;  %v3484_v36 = vsel %vm2211_vm10, %v3373_v46, %v3483_v6  ;;  %v10640_v6 = vld [vmem:[#allocation68_spill] sm:$0xff] }
 0x6ba   : > { %v3485_v54 = vsel %vm2213_vm11, %v3382_v14, %v3484_v36  ;;  %v3734_v42 = vsel %vm1814_vm5, %v10640_v6, 0.0 }
 0x6bb   : > { %v3463_v57 = vsel %vm2070_vm7, %v3462_v47, %v3458_v45  ;;  %v3486_v46 = vsel %vm2215_vm12, %v3391_v9, %v3485_v54  ;;  %v1028_v45 = vld [vmem:[%s10486_s12 + $0x18] sm:$0xff]  ;;  %v10647_v9 = vld [vmem:[#allocation74_spill] sm:$0xff] }
 0x6bc   : > { %v9475_v52 = vpop.xlane.xlu1 %3141  ;;  %v3493_v25 = vsel %vm2215_vm12, %v3463_v57, %v3492_v48  ;;  %v10648_v48 = vld [vmem:[#allocation75_spill] sm:$0xff] }
 0x6bd   : > { %v3408_v30 = vrot.slane %v9475_v52, %v8260_v31  ;;  %v3400_v52 = vsel %vm2070_vm7, %v3399_v63, %v3395_v0  ;;  %v3746_v63 = vsel %vm1814_vm5, %v10643_v10, 0.0  ;;  %v10644_v0 = vld [vmem:[#allocation27_spill] sm:$0xff]  ;;  %v10658_v10 = vld [vmem:[#allocation85_spill] sm:$0xff] }
 0x6be   : > { %v3717_v36 = vmul.f32 %v10644_v0, %v8354_v32  ;;  %v3707_v54 = vmul.f32 %v10644_v0, %v8421_v38  ;;  %v10654_v38 = vld [vmem:[#allocation81_spill] sm:$0xff] }
 0x6bf   : > { %v3409_v13 = vsel %vm2070_vm7, %v3408_v30, %v3404_v39  ;;  %v10645_v30 = vld [vmem:[#allocation72_spill] sm:$0xff] }
 0x6c0   : > { %v3184_v1 = vpop.xlane.xlu1 %3183  ;;  %v3782_v14 = vsel %vm1814_vm5, %v10645_v30, 0.0  ;;  %v3785_v37 = vsel %vm1814_vm5, %v3717_v36, 0.0  ;;  %v10659_v36 = vld [vmem:[#allocation31_spill] sm:$0xff] }
 0x6c1   : > { %v3471_v16 = vrot.slane %v3184_v1, %v8260_v31 }
 0x6c3   : > { %v3472_v22 = vsel %vm2070_vm7, %v3471_v16, %v3467_v27  ;;  %v3731_v16 = vsel %vm1814_vm5, %v10639_v20, 0.0  ;;  %v3740_v27 = vsel %vm1814_vm5, %v10642_v35, 0.0  ;;  %v10656_v20 = vld [vmem:[#allocation83_spill] sm:$0xff]  ;;  %v10657_v35 = vld [vmem:[#allocation84_spill] sm:$0xff] }
 0x6c4   : > { %v3190_v11 = vpop.xlane.xlu1 %3189  ;;  %v3494_v43 = vsel %vm2217_vm13, %v3472_v22, %v3493_v25  ;;  %v10646_v22 = vld [vmem:[#allocation73_spill] sm:$0xff] }
 0x6c5   : > { %v3480_v61 = vrot.slane %v3190_v11, %v8260_v31  ;;  %v3487_v11 = vsel %vm2217_vm13, %v3400_v52, %v3486_v46  ;;  %v3788_v39 = vsel %vm1814_vm5, %v10646_v22, 0.0  ;;  %v3719_v52 = vmul.f32 %v10644_v0, %v8366_v41  ;;  %v10652_v46 = vld [vmem:[#allocation79_spill] sm:$0xff] }
 0x6c6   : > { %v3488_v62 = vsel %vm2219_vm14, %v3409_v13, %v3487_v11  ;;  %v10650_v13 = vld [vmem:[#allocation77_spill] sm:$0xff]  ;;  %v3703_v22 = vmul.f32 %v10644_v0, %v10603_v33  ;;  %v10661_v33 = vld [vmem:[#allocation87_spill] sm:$0xff] }
 0x6c7   : > { %v3481_v12 = vsel %vm2070_vm7, %v3480_v61, %v3476_v19  ;;  %v3737_v61 = vsel %vm1814_vm5, %v10641_v17, 0.0  ;;  %v3715_v19 = vmul.f32 %v10644_v0, %v8315_v7  ;;  %v3749_v7 = vsel %vm1814_vm5, %v10647_v9, 0.0 }
 0x6c8   : > { %v3495_v3 = vsel %vm2219_vm14, %v3481_v12, %v3494_v43  ;;  %v3752_v12 = vsel %vm1814_vm5, %v10648_v48, 0.0  ;;  %v3791_v32 = vsel %vm1814_vm5, %v3719_v52, 0.0  ;;  %v3758_v43 = vsel %vm1814_vm5, %v10650_v13, 0.0  ;;  %v10660_v48 = vld [vmem:[#allocation86_spill] sm:$0xff] }
 0x6c9   : > { %v3779_v57 = vsel %vm1814_vm5, %v3715_v19, 0.0  ;;  %v3721_v9 = vmul.f32 %v10644_v0, %v10604_v56  ;;  %v3723_v52 = vmul.f32 %v10644_v0, %v10606_v21  ;;  %v3725_v56 = vmul.f32 %v10644_v0, %v10608_v59 }
 0x6ca   : > { %v3727_v21 = vmul.f32 %v10644_v0, %v10610_v53 }
 0x6cc   : > { %v3815_v13 = vsel %vm1814_vm5, %v3727_v21, 0.0 }
 0x763   : > { %v9525_v1 = vpop.f32.mrf.mxu0 }
 0x765   : > { %v9537_v23 = vpop.f32.mrf.mxu0 }
 0x767   : > { %v7469_v4 = vpop.f32.mrf.mxu0 }
 0x768   : > { %v3305_v51 = vmul.f32 0.35355338, %v7469_v4  ;;  %v10649_v4 = vld [vmem:[#allocation76_spill] sm:$0xff] }
 0x769   : > { %v3295_v18 = vpop.f32.mrf.mxu0  ;;  %v3794_v25 = vsel %vm1814_vm5, %v10649_v4, 0.0  ;;  %v3767_v4 = vsel %vm1814_vm5, %v10661_v33, 0.0  ;;  %v9660_v33 = vpop.f32.mrf.mxu1 }
 0x76a   : > { %v3304_v58 = vmul.f32 0.35355338, %v3295_v18  ;;  %v3499_v49 = vadd.f32 %v3495_v3, %v3305_v51  ;;  %v3755_v51 = vsel %vm1814_vm5, %v3707_v54, 0.0  ;;  %v10651_v18 = vld [vmem:[#allocation78_spill] sm:$0xff]  ;;  %v3764_v3 = vsel %vm1814_vm5, %v10652_v46, 0.0  ;;  %v10662_v54 = vld [vmem:[#allocation88_spill] sm:$0xff] }
 0x76b   : > { %v3800_v41 = vsel %vm1814_vm5, %v10651_v18, 0.0 }
 0x76c   : > { %v3498_v2 = vadd.f32 %v3488_v62, %v3304_v58  ;;  %v3503_v47 = vsel %vm1814_vm5, %v3499_v49, -inf  ;;  %v10653_v58 = vld [vmem:[#allocation80_spill] sm:$0xff]  ;;  %v3770_v62 = vsel %vm1814_vm5, %v10654_v38, 0.0 }
 0x76d   : > { %3504 = vmax.xlane.f32.xlu1 %v3503_v47  ;;  %v3806_v11 = vsel %vm1814_vm5, %v10653_v58, 0.0  ;;  %v10655_v47 = vld [vmem:[#allocation82_spill] sm:$0xff] }
 0x76e   : > { %v3500_v34 = vsel %vm1814_vm5, %v3498_v2, -inf }
 0x76f   : > { %3501 = vmax.xlane.f32.xlu0 %v3500_v34  ;;  %v3812_v34 = vsel %vm1814_vm5, %v10655_v47, 0.0 }
 0x785   : > { %1258 = vperm.xlu0 %7718, %v1028_v45  }
 0x789   : > { %1382 = vperm.xlu0 %7718, %v1040_v15  }
 0x7a8   : > { %3732 = vadd.xlane.f32.xlu0 %v3731_v16  ;;  %v3776_v16 = vsel %vm1814_vm5, %v10656_v20, 0.0 }
 0x7ac   : > { %3735 = vadd.xlane.f32.xlu0 %v3734_v42 }
 0x7b0   : > { %3738 = vadd.xlane.f32.xlu0 %v3737_v61 }
 0x7b4   : > { %3741 = vadd.xlane.f32.xlu0 %v3740_v27  ;;  %v3818_v27 = vsel %vm1814_vm5, %v10657_v35, 0.0 }
 0x7b8   : > { %3747 = vadd.xlane.f32.xlu0 %v3746_v63  ;;  %v3824_v63 = vsel %vm1814_vm5, %v10658_v10, 0.0 }
 0x7bc   : > { %3780 = vadd.xlane.f32.xlu0 %v3779_v57 }
 0x7c0   : > { %3783 = vadd.xlane.f32.xlu0 %v3782_v14 }
 0x7c4   : > { %3786 = vadd.xlane.f32.xlu0 %v3785_v37 }
 0x7c8   : > { %3789 = vadd.xlane.f32.xlu0 %v3788_v39  ;;  %v3743_v39 = vsel %vm1814_vm5, %v3703_v22, 0.0 }
 0x7cc   : > { %3750 = vadd.xlane.f32.xlu0 %v3749_v7  ;;  %v3797_v7 = vsel %vm1814_vm5, %v3721_v9, 0.0 }
 0x7d0   : > { %3753 = vadd.xlane.f32.xlu0 %v3752_v12  ;;  %v3761_v12 = vsel %vm1814_vm5, %v10660_v48, 0.0 }
 0x7d4   : > { %3792 = vadd.xlane.f32.xlu0 %v3791_v32  ;;  %v3803_v32 = vsel %vm1814_vm5, %v3723_v52, 0.0 }
 0x7d8   : > { %3795 = vadd.xlane.f32.xlu0 %v3794_v25  ;;  %v3809_v25 = vsel %vm1814_vm5, %v3725_v56, 0.0 }
 0x7dc   : > { %3756 = vadd.xlane.f32.xlu0 %v3755_v51  ;;  %v3773_v51 = vsel %vm1814_vm5, %v10662_v54, 0.0 }
 0x7e0   : > { %3759 = vadd.xlane.f32.xlu0 %v3758_v43  ;;  %v10663_v43 = vld [vmem:[#allocation89_spill] sm:$0xff] }
 0x7e1   : > { %v3821_v18 = vsel %vm1814_vm5, %v10663_v43, 0.0 }
 0x7e4   : > { %3801 = vadd.xlane.f32.xlu0 %v3800_v41 }
 0x7e8   : > { %3765 = vadd.xlane.f32.xlu0 %v3764_v3 }
 0x7ec   : > { %3807 = vadd.xlane.f32.xlu0 %v3806_v11 }
 0x7f0   : > { %3771 = vadd.xlane.f32.xlu0 %v3770_v62 }
 0x7f4   : > { %3813 = vadd.xlane.f32.xlu0 %v3812_v34 }
 0x7f6   : > { %v3505_v45 = vpop.xlane.xlu1 %3504 }
 0x7f7   : > { %v3507_v15 = vsub.f32 %v3499_v49, %v3505_v45 }
 0x7f8   : > { %3777 = vadd.xlane.f32.xlu0 %v3776_v16  ;;  %v3502_v6 = vpop.xlane.xlu0 %3501 }
 0x7f9   : > { %v3510_v42 = vmul.f32 1.442695, %v3507_v15  ;;  %v3506_v17 = vsub.f32 %v3498_v2, %v3502_v6  ;;  %v1043_v2 = vld [vmem:[%s10487_s13 + $0x30] sm:$0xff] }
 0x7fa   : > { %v1047_v6 = vld [vmem:[%s10613_s2 + $0x10] sm:$0xff] }
 0x7fb   : > { %7736 = vpow2.f32 %v3510_v42  ;;  %v3508_v61 = vmul.f32 1.442695, %v3506_v17  ;;  %7475 = vmatprep.subr.mxu0 %v1047_v6 }
 0x7fc   : > { %3819 = vadd.xlane.f32.xlu0 %v3818_v27  ;;  %7476 = vmatpush3.msra.mxu0 %v1047_v6 }
 0x7fd   : > { %7738 = vpow2.f32 %v3508_v61 }
 0x800   : > { %3825 = vadd.xlane.f32.xlu0 %v3824_v63  ;;  %v9610_v14 = vpop.permute.xlu0 %1258 }
 0x801   : > { %v1362_v37 = vadd.f32 %v10659_v36, %v9610_v14 }
 0x804   : > { %v9637_v46 = vpop.permute.xlu0 %1382 }
 0x805   : > { %v1511_v53 = vadd.f32 %v9228_v8, %v9637_v46 }
 0x808   : > { %v7737_v49 = vpop.eup %7736 }
 0x809   : > { %v3515_v19 = vsel %vm1814_vm5, %v7737_v49, 0.0 }
 0x80a   : > { %v7739_v57 = vpop.eup %7738  ;;  %3516 = vadd.xlane.f32.xlu1 %v3515_v19 }
 0x80b   : > { %v3512_v30 = vsel %vm1814_vm5, %v7739_v57, 0.0 }
 0x80e   : > { %3513 = vadd.xlane.f32.xlu1 %v3512_v30 }
 0x81f   : > { %1397 = vperm.xlu1 %7719, %v1043_v2  }
 0x831   : > { %v3733_v42 = vpop.xlane.xlu0 %3732 }
 0x835   : > { %v3736_v17 = vpop.xlane.xlu0 %3735 }
 0x839   : > { %v3739_v61 = vpop.xlane.xlu0 %3738 }
 0x83d   : > { %v3742_v35 = vpop.xlane.xlu0 %3741 }
 0x841   : > { %v3748_v27 = vpop.xlane.xlu0 %3747 }
 0x842   : > { %v3999_v6 = vrot.slane %v3748_v27, %v8260_v31 }
 0x845   : > { %v3781_v10 = vpop.xlane.xlu0 %3780 }
 0x848   : > { %3827 = vxpose.xlu1.b32.start.end [1/1] (short) (narrow) %v1362_v37, 16 }
 0x849   : > { %v3784_v63 = vpop.xlane.xlu0 %3783 }
 0x873   : > { %3744 = vadd.xlane.f32.xlu1 %v3743_v39 }
 0x877   : > { %3798 = vadd.xlane.f32.xlu1 %v3797_v7 }
 0x87b   : > { %3762 = vadd.xlane.f32.xlu1 %v3761_v12 }
 0x87f   : > { %3804 = vadd.xlane.f32.xlu1 %v3803_v32 }
 0x883   : > { %3768 = vadd.xlane.f32.xlu1 %v3767_v4 }
 0x887   : > { %3810 = vadd.xlane.f32.xlu1 %v3809_v25  ;;  %v9666_v25 = vpop.f32.mrf.mxu1 }
 0x88b   : > { %3774 = vadd.xlane.f32.xlu1 %v3773_v51 }
 0x88f   : > { %3816 = vadd.xlane.f32.xlu1 %v3815_v13 }
 0x893   : > { %v3517_v41 = vpop.xlane.xlu1 %3516  ;;  %3822 = vadd.xlane.f32.xlu1 %v3821_v18 }
 0x894   : > { %7740 = vrcp.f32 %v3517_v41 }
 0x897   : > { %v3514_v59 = vpop.xlane.xlu1 %3513 }
 0x898   : > { %7742 = vrcp.f32 %v3514_v59 }
 0x89b   : > { %v9639_v3 = vpop.permute.xlu1 %1397 }
 0x89c   : > { %v1526_v58 = vadd.f32 %v9457_v24, %v9639_v3 }
 0x89e   : > { %7470 = vmatprep.subr.msk.mxu1 %vm1814_vm5, %v1526_v58 }
 0x89f   : > { %7471 = vmatpush3.xpose.msk.msra.mxu1 %vm1814_vm5, %v1526_v58 }
 0x8a0   : > { %7480 = vmatprep.subr.mxu1 %v1511_v53 }
 0x8a1   : > { %v7741_v0 = vpop.eup %7740 }
 0x8a2   : > { %v3521_v11 = vmul.f32 %v7741_v0, %v3517_v41  ;;  %v3990_v41 = vrot.slane %v3742_v35, %v8260_v31 }
 0x8a4   : > { %v3523_v62 = vsub.f32 2.0, %v3521_v11  ;;  %v3986_v11 = vrot.slane %v3739_v61, %v8252_v26 }
 0x8a5   : > { %v7743_v38 = vpop.eup %7742 }
 0x8a6   : > { %v3520_v47 = vmul.f32 %v7743_v38, %v3514_v59  ;;  %v3525_v45 = vmul.f32 %v7741_v0, %v3523_v62  ;;  %v3981_v0 = vrot.slane %v3736_v17, %v8260_v31 }
 0x8a8   : > { %v3522_v34 = vsub.f32 2.0, %v3520_v47  ;;  %v3527_v16 = vmul.f32 %v7737_v49, %v3525_v45  ;;  %v3787_v49 = vpop.xlane.xlu0 %3786  ;;  %v3977_v47 = vrot.slane %v3733_v42, %v8252_v26 }
 0x8a9   : > { %v4058_v62 = vrot.slane %v3787_v49, %v8252_v26 }
 0x8aa   : > { %v3524_v15 = vmul.f32 %v7743_v38, %v3522_v34  ;;  %v4053_v38 = vrot.slane %v3784_v63, %v8260_v31  ;;  %v3982_v61 = vsel %vm2070_vm7, %v3981_v0, %v3977_v47 }
 0x8ac   : > { %v3526_v20 = vmul.f32 %v7739_v57, %v3524_v15  ;;  %v3790_v19 = vpop.xlane.xlu0 %3789 }
 0x8ad   : > { %v4062_v59 = vrot.slane %v3790_v19, %v8260_v31 }
 0x8ae   : > { %7472 = vmatprep.mubr.msk.f32.mxu1 %vm1814_vm5, %v3526_v20  ;;  %v3991_v20 = vsel %vm2070_vm7, %v3990_v41, %v3986_v11 }
 0x8af   : > { %7473 = vmatmul.mubr.msk.f32.vlgmr.msra.gmra.mxu1 %vm1814_vm5, %v3527_v16  ;;  %v4049_v16 = vrot.slane %v3781_v10, %v8252_v26  ;;  %v4118_v49 = vsel %vm2207_vm8, %v3991_v20, %v3982_v61 }
 0x8b0   : > { %7481 = vmatpush3.msra.mxu1 %v1511_v53  ;;  %v3751_v57 = vpop.xlane.xlu0 %3750 }
 0x8b1   : > { %v4054_v42 = vsel %vm2070_vm7, %v4053_v38, %v4049_v16  ;;  %v4004_v35 = vrot.slane %v3751_v57, %v8252_v26 }
 0x8b4   : > { %v3754_v30 = vpop.xlane.xlu0 %3753 }
 0x8b8   : > { %v3793_v2 = vpop.xlane.xlu0 %3792 }
 0x8b9   : > { %v4067_v34 = vrot.slane %v3793_v2, %v8252_v26 }
 0x8bc   : > { %v3796_v36 = vpop.xlane.xlu0 %3795 }
 0x8bd   : > { %v4071_v58 = vrot.slane %v3796_v36, %v8260_v31 }
 0x8bf   : > { %v4072_v17 = vsel %vm2070_vm7, %v4071_v58, %v4067_v34 }
 0x8c0   : > { %v9652_v37 = vpop.xlane.xlu0 %3756 }
 0x8c1   : > { %v4013_v57 = vrot.slane %v9652_v37, %v8252_v26 }
 0x8c4   : > { %v3843_v8 = vpop.trf.xlu1  ;;  %v9654_v39 = vpop.xlane.xlu0 %3759 }
 0x8c5   : > { %7482 = vmatprep.mubr.msk.f32.mxu1 %vm1943_vm6, %v3843_v8  ;;  %v4063_v8 = vsel %vm2070_vm7, %v4062_v59, %v4058_v62 }
 0x8c6   : > { %v4125_v10 = vsel %vm2207_vm8, %v4063_v8, %v4054_v42 }
 0x8c7   : > { %v4126_v36 = vsel %vm2209_vm9, %v4072_v17, %v4125_v10 }
 0x8c8   : > { %v3844_v24 = vpop.trf.xlu1  ;;  %v3802_v7 = vpop.xlane.xlu0 %3801 }
 0x8c9   : > { %7483 = vmatmul.mubr.msk.f32.vlgmr.msra.gmra.mxu1 %vm1943_vm6, %v3844_v24  ;;  %v4008_v24 = vrot.slane %v3754_v30, %v8260_v31 }
 0x8cb   : > { %v4009_v27 = vsel %vm2070_vm7, %v4008_v24, %v4004_v35 }
 0x8cc   : > { %v9658_v12 = vpop.xlane.xlu0 %3765 }
 0x8d0   : > { %v3808_v32 = vpop.xlane.xlu0 %3807 }
 0x8d4   : > { %v9664_v56 = vpop.xlane.xlu0 %3771 }
 0x8d8   : > { %v3814_v21 = vpop.xlane.xlu0 %3813 }
 0x8dc   : > { %v9672_v18 = vpop.xlane.xlu0 %3777 }
 0x8e0   : > { %v3820_v45 = vpop.xlane.xlu0 %3819 }
 0x8e1   : > { %v4107_v37 = vrot.slane %v3820_v45, %v8260_v31 }
 0x8e4   : > { %v3826_v41 = vpop.xlane.xlu0 %3825 }
 0x8e5   : > { %v4116_v11 = vrot.slane %v3826_v41, %v8260_v31 }
 0x8fc   : > { %v3745_v22 = vpop.xlane.xlu1 %3744 }
 0x8fd   : > { %v3995_v15 = vrot.slane %v3745_v22, %v8252_v26  ;;  %v4080_v22 = vrot.slane %v3802_v7, %v8260_v31 }
 0x8ff   : > { %v4000_v19 = vsel %vm2070_vm7, %v3999_v6, %v3995_v15 }
 0x900   : > { %v3799_v9 = vpop.xlane.xlu1 %3798 }
 0x901   : > { %v4076_v63 = vrot.slane %v3799_v9, %v8252_v26  ;;  %v4089_v9 = vrot.slane %v3808_v32, %v8260_v31 }
 0x903   : > { %v4081_v58 = vsel %vm2070_vm7, %v4080_v22, %v4076_v63 }
 0x904   : > { %v9656_v48 = vpop.xlane.xlu1 %3762  ;;  %v4127_v47 = vsel %vm2211_vm10, %v4081_v58, %v4126_v36  ;;  %v3056_v58 = vadd.f32 %v9660_v33, %v9525_v1 }
 0x905   : > { %v4022_v0 = vrot.slane %v9656_v48, %v8252_v26 }
 0x908   : > { %v3805_v52 = vpop.xlane.xlu1 %3804 }
 0x909   : > { %v4085_v30 = vrot.slane %v3805_v52, %v8252_v26  ;;  %v4119_v52 = vsel %vm2209_vm9, %v4000_v19, %v4118_v49 }
 0x90a   : > { %v4120_v62 = vsel %vm2211_vm10, %v4009_v27, %v4119_v52 }
 0x90b   : > { %v4090_v32 = vsel %vm2070_vm7, %v4089_v9, %v4085_v30 }
 0x90c   : > { %v9662_v4 = vpop.xlane.xlu1 %3768  ;;  %v4128_v45 = vsel %vm2213_vm11, %v4090_v32, %v4127_v47 }
 0x910   : > { %v3811_v54 = vpop.xlane.xlu1 %3810 }
 0x914   : > { %v9670_v43 = vpop.xlane.xlu1 %3774 }
 0x915   : > { %v4040_v48 = vrot.slane %v9670_v43, %v8252_v26 }
 0x918   : > { %v3817_v53 = vpop.xlane.xlu1 %3816 }
 0x919   : > { %v4103_v59 = vrot.slane %v3817_v53, %v8252_v26  ;;  %v4026_v53 = vrot.slane %v9658_v12, %v8260_v31 }
 0x91b   : > { %v4108_v34 = vsel %vm2070_vm7, %v4107_v37, %v4103_v59  ;;  %v4027_v12 = vsel %vm2070_vm7, %v4026_v53, %v4022_v0 }
 0x91c   : > { %v3823_v2 = vpop.xlane.xlu1 %3822 }
 0x91d   : > { %v4112_v7 = vrot.slane %v3823_v2, %v8252_v26 }
 0x91f   : > { %v4117_v15 = vsel %vm2070_vm7, %v4116_v11, %v4112_v7 }
 0x96f   : > { %v7474_v51 = vpop.f32.mrf.mxu1 }
 0x971   : > { %v3603_v13 = vpop.f32.mrf.mxu1 }
 0x972   : > { %7477 = vmatprep.mubr.msk.f32.mxu0 %vm1943_vm6, %v3603_v13  ;;  %v4098_v13 = vrot.slane %v3814_v21, %v8260_v31  ;;  %v4031_v21 = vrot.slane %v9662_v4, %v8252_v26  ;;  %v4044_v4 = vrot.slane %v9672_v18, %v8260_v31 }
 0x973   : > { %7478 = vmatmul.mubr.msk.f32.vlgmr.msra.gmra.mxu0 %vm1943_vm6, %v7474_v51  ;;  %v4094_v51 = vrot.slane %v3811_v54, %v8252_v26  ;;  %v4017_v54 = vrot.slane %v9654_v39, %v8260_v31  ;;  %v4035_v39 = vrot.slane %v9664_v56, %v8260_v31 }
 0x974   : > { %v4045_v24 = vsel %vm2070_vm7, %v4044_v4, %v4040_v48 }
 0x975   : > { %v4099_v38 = vsel %vm2070_vm7, %v4098_v13, %v4094_v51  ;;  %v4018_v43 = vsel %vm2070_vm7, %v4017_v54, %v4013_v57  ;;  %v4036_v20 = vsel %vm2070_vm7, %v4035_v39, %v4031_v21  ;;  %v1044_v54 = vld [vmem:[%s10487_s13 + $0x38] sm:$0xff] }
 0x976   : > { %v4129_v56 = vsel %vm2215_vm12, %v4099_v38, %v4128_v45  ;;  %v4121_v8 = vsel %vm2213_vm11, %v4018_v43, %v4120_v62  ;;  %v3051_v43 = vadd.f32 %v9666_v25, %v9537_v23 }
 0x977   : > { %v4130_v18 = vsel %vm2217_vm13, %v4108_v34, %v4129_v56  ;;  %v4122_v17 = vsel %vm2215_vm12, %v4027_v12, %v4121_v8  ;;  %v7215_v8 = vld [vmem:[%s8154_s25] ss:$0 sm:$0xff] }
 0x978   : > { %v4131_v61 = vsel %vm2219_vm14, %v4117_v15, %v4130_v18  ;;  %v4123_v49 = vsel %vm2217_vm13, %v4036_v20, %v4122_v17 }
 0x979   : > { %v4124_v10 = vsel %vm2219_vm14, %v4045_v24, %v4123_v49 }
 0x989   : > { %v7484_v16 = vpop.f32.mrf.mxu1 }
 0x98a   : > { %v3941_v6 = vmul.f32 0.35355338, %v7484_v16 }
 0x98b   : > { %v3931_v42 = vpop.f32.mrf.mxu1 }
 0x98c   : > { %v4135_v35 = vadd.f32 %v4131_v61, %v3941_v6  ;;  %v3940_v63 = vmul.f32 0.35355338, %v3931_v42  ;;  %v7780_v61 = vld [vmem:[#allocation2] sm:$0xff] }
 0x98e   : > { %v4134_v19 = vadd.f32 %v4124_v10, %v3940_v63  ;;  %v4139_v30 = vsel %vm1814_vm5, %v4135_v35, -inf  ;;  %v7781_v63 = vld [vmem:[#allocation2 + $0x8] sm:$0xff] }
 0x98f   : > { %4140 = vmax.xlane.f32.xlu0 %v4139_v30 }
 0x990   : > { %v4136_v2 = vsel %vm1814_vm5, %v4134_v19, -inf }
 0x991   : > { %4137 = vmax.xlane.f32.xlu1 %v4136_v2 }
 0xa18   : > { %v4141_v27 = vpop.xlane.xlu0 %4140 }
 0xa19   : > { %v4143_v36 = vsub.f32 %v4135_v35, %v4141_v27 }
 0xa1a   : > { %v4138_v22 = vpop.xlane.xlu1 %4137 }
 0xa1b   : > { %v4146_v51 = vmul.f32 1.442695, %v4143_v36  ;;  %v4142_v57 = vsub.f32 %v4134_v19, %v4138_v22 }
 0xa1d   : > { %7744 = vpow2.f32 %v4146_v51  ;;  %v4144_v9 = vmul.f32 1.442695, %v4142_v57 }
 0xa1f   : > { %7746 = vpow2.f32 %v4144_v9  ;;  %v1056_v9 = vld [vmem:[%s8173_s0 + $0x18] sm:$0xff] }
 0xa2a   : > { %v7745_v13 = vpop.eup %7744 }
 0xa2b   : > { %v4151_v41 = vsel %vm1814_vm5, %v7745_v13, 0.0 }
 0xa2c   : > { %v7747_v59 = vpop.eup %7746  ;;  %4152 = vadd.xlane.f32.xlu0 %v4151_v41  ;;  %v1054_v41 = vld [vmem:[%s8173_s0 + $0x8] sm:$0xff] }
 0xa2d   : > { %v4148_v52 = vsel %vm1814_vm5, %v7747_v59, 0.0 }
 0xa2e   : > { %4149 = vadd.xlane.f32.xlu1 %v4148_v52  ;;  %v1240_v52 = vld [vmem:[#allocation3] sm:$0xff] }
 0xa33   : > { %v7479_v0 = vpop.f32.mrf.mxu0 }
 0xa34   : > { %v3694_v7 = vadd.f32 %v7479_v0, %v3056_v58  ;;  %v1065_v58 = vld [vmem:[%s8184_s3 + $0x38] sm:$0xff]  ;;  %v1064_v0 = vld [vmem:[%s8184_s3 + $0x30] sm:$0xff] }
 0xa35   : > { %v3684_v12 = vpop.f32.mrf.mxu0 }
 0xa36   : > { %v3693_v56 = vadd.f32 %v3684_v12, %v3051_v43  ;;  %v7783_v43 = vld [vmem:[%s8128_s21 + $0x8] sm:$0xff] }
 0xa3f   : > { %1402 = vperm.xlu1 %7719, %v1044_v54   ;;  %v1062_v54 = vld [vmem:[%s8184_s3 + $0x20] sm:$0xff] }
 0xab5   : > { %v4153_v37 = vpop.xlane.xlu0 %4152 }
 0xab6   : > { %7748 = vrcp.f32 %v4153_v37 }
 0xab7   : > { %v4150_v32 = vpop.xlane.xlu1 %4149 }
 0xab8   : > { %7750 = vrcp.f32 %v4150_v32 }
 0xabb   : > { %v9751_v21 = vpop.permute.xlu1 %1402 }
 0xabc   : > { %v1531_v53 = vadd.f32 %v9455_v50, %v9751_v21  ;;  %v1048_v50 = vld [vmem:[%s10613_s2 + $0x18] sm:$0xff] }
 0xabd   : > { %7490 = vmatprep.subr.mxu1 %v1048_v50 }
 0xabe   : > { %7485 = vmatprep.subr.msk.mxu0 %vm1814_vm5, %v1531_v53  ;;  %7491 = vmatpush3.msra.mxu1 %v1048_v50 }
 0xabf   : > { %7486 = vmatpush3.xpose.msk.msra.mxu0 %vm1814_vm5, %v1531_v53  ;;  %7506 = vmatprep.subr.mxu1 %v1065_v58 }
 0xac0   : > { %7495 = vmatprep.subr.mxu0 %v1056_v9 }
 0xac3   : > { %v7749_v11 = vpop.eup %7748 }
 0xac4   : > { %v4157_v1 = vmul.f32 %v7749_v11, %v4153_v37 }
 0xac5   : > { %v7751_v33 = vpop.eup %7750 }
 0xac6   : > { %v4159_v38 = vsub.f32 2.0, %v4157_v1  ;;  %v4156_v48 = vmul.f32 %v7751_v33, %v4150_v32 }
 0xac8   : > { %v4158_v39 = vsub.f32 2.0, %v4156_v48  ;;  %v4161_v62 = vmul.f32 %v7749_v11, %v4159_v38  ;;  %v7216_v48 = vld [vmem:[%s8196_s1] ss:$0 sm:$0xff] }
 0xaca   : > { %v4160_v47 = vmul.f32 %v7751_v33, %v4158_v39  ;;  %v4163_v4 = vmul.f32 %v7745_v13, %v4161_v62  ;;  %v1055_v13 = vld [vmem:[%s8173_s0 + $0x10] sm:$0xff]  ;;  %v7217_v62 = vld [vmem:[%s8202_s30] ss:$0 sm:$0xff] }
 0xacc   : > { %v4162_v34 = vmul.f32 %v7747_v59, %v4160_v47  ;;  %v1053_v59 = vld [vmem:[%s8173_s0] sm:$0xff] }
 0xace   : > { %7487 = vmatprep.mubr.msk.f32.mxu0 %vm1814_vm5, %v4162_v34 }
 0xacf   : > { %7488 = vmatmul.mubr.msk.f32.vlgmr.msra.gmra.mxu0 %vm1814_vm5, %v4163_v4 }
 0xad0   : > { %7496 = vmatpush3.msra.mxu0 %v1056_v9  ;;  %v10668_v9 = vld [vmem:[#allocation91_spill] sm:$0xff] }
 0xad1   : > { %7497 = vmatprep.subr.mxu0 %v1055_v13 }
 0xad2   : > { %7498 = vmatpush3.msra.mxu0 %v1055_v13 }
 0xad3   : > { %7499 = vmatprep.subr.mxu0 %v1054_v41 }
 0xad4   : > { %7500 = vmatpush3.msra.mxu0 %v1054_v41 }
 0xad5   : > { %7501 = vmatprep.subr.mxu0 %v1053_v59 }
 0xad6   : > { %7502 = vmatpush3.msra.mxu0 %v1053_v59 }
 0xad7   : > { %7525 = vmatprep.subr.msk.mxu0 %vm1261_vm3, %v1240_v52 }
 0xb8f   : > { %v7489_v45 = vpop.f32.mrf.mxu0 }
 0xb91   : > { %v4239_v15 = vpop.f32.mrf.mxu0 }
 0xb92   : > { %7492 = vmatprep.mubr.msk.f32.mxu1 %vm1943_vm6, %v4239_v15  ;;  %v7782_v15 = vld [vmem:[%s8128_s21] sm:$0xff] }
 0xb93   : > { %7493 = vmatmul.mubr.msk.f32.vlgmr.msra.gmra.mxu1 %vm1943_vm6, %v7489_v45 }
 0xb94   : > { %7507 = vmatpush3.msra.mxu1 %v1065_v58 }
 0xb95   : > { %7508 = vmatprep.subr.mxu1 %v1064_v0 }
 0xb96   : > { %7509 = vmatpush3.msra.mxu1 %v1064_v0 }
 0xc53   : > { %v7494_v20 = vpop.f32.mrf.mxu1 }
 0xc54   : > { %v4330_v16 = vadd.f32 %v7494_v20, %v3694_v7  ;;  %v1063_v7 = vld [vmem:[%s8184_s3 + $0x28] sm:$0xff]  ;;  %v7784_v20 = vld [vmem:[%s8128_s21 + $0x10] sm:$0xff] }
 0xc55   : > { %v4320_v24 = vpop.f32.mrf.mxu1  ;;  %7510 = vmatprep.subr.mxu1 %v1063_v7 }
 0xc56   : > { %v4329_v6 = vadd.f32 %v4320_v24, %v3693_v56  ;;  %v4338_v18 = vadd.f32 %v7215_v8, %v4330_v16  ;;  %7511 = vmatpush3.msra.mxu1 %v1063_v7  ;;  %v7785_v56 = vld [vmem:[%s8128_s21 + $0x18] sm:$0xff]  ;;  %v7786_v16 = vld [vmem:[%s10488_s7] sm:$0xff]  ;;  %v1060_v24 = vld [vmem:[%s8184_s3 + $0x10] sm:$0xff]  ;;  %s10718_s21 = sld [smem:[#allocation10_spill]] }
 0xc57   : > { %7512 = vmatprep.subr.mxu1 %v1062_v54  ;;  %v10670_v7 = vld [vmem:[#allocation92_spill] sm:$0xff] }
 0xc58   : > { %v4337_v17 = vadd.f32 %v7215_v8, %v4329_v6  ;;  %v4340_v49 = vadd.f32 %v7781_v63, %v4338_v18  ;;  %7513 = vmatpush3.msra.mxu1 %v1062_v54  ;;  %v1061_v8 = vld [vmem:[%s8184_s3 + $0x18] sm:$0xff]  ;;  %v1059_v6 = vld [vmem:[%s8184_s3 + $0x8] sm:$0xff]  ;;  %v1058_v18 = vld [vmem:[%s8184_s3] sm:$0xff] }
 0xc59   : > { %7514 = vmatprep.subr.mxu1 %v1061_v8 }
 0xc5a   : > { %v4339_v42 = vadd.f32 %v7780_v61, %v4337_v17  ;;  %v4344_v10 = vsel %vm1261_vm3, %v4340_v49, 0.0  ;;  %7515 = vmatpush3.msra.mxu1 %v1061_v8  ;;  %v10666_v17 = vmov 0.0   ;;  %v7218_v61 = vld [vmem:[%s10664_s26] ss:$0 sm:$0xff] }
 0xc5b   : > { %7516 = vmatprep.subr.mxu1 %v1060_v24 }
 0xc5c   : > { %v4341_v35 = vsel %vm1261_vm3, %v4339_v42, 0.0  ;;  %7517 = vmatpush3.msra.mxu1 %v1060_v24  ;;  %v10678_v24 = vld [vmem:[#allocation100_spill] sm:$0xff]  ;;  %p7259_p1 = scmp.ne.s32.totalorder %s10718_s21, 1 }
 0xc5d   : > { %4342 = vadd.xlane.f32.xlu0 %v4341_v35  ;;  %7518 = vmatprep.subr.mxu1 %v1059_v6 }
 0xc5e   : > { %7519 = vmatpush3.msra.mxu1 %v1059_v6 }
 0xc5f   : > { %7520 = vmatprep.subr.mxu1 %v1058_v18 }
 0xc60   : > { %7521 = vmatpush3.msra.mxu1 %v1058_v18 }
 0xc61   : > { %4345 = vadd.xlane.f32.xlu0 %v4344_v10  ;;  %7549 = vmatprep.subr.mxu1 %v10666_v17 }
 0xce6   : > { %v4343_v23 = vpop.xlane.xlu0 %4342 }
 0xce7   : > { %v4348_v25 = vmul.f32 0.03125, %v4343_v23 }
 0xce9   : > { %v4350_v19 = vsub.f32 %v4339_v42, %v4348_v25  ;;  %v7221_v25 = vld [vmem:[%s10665_s23] ss:$0 sm:$0xff] }
 0xcea   : > { %v4346_v30 = vpop.xlane.xlu0 %4345 }
 0xceb   : > { %v4349_v2 = vmul.f32 0.03125, %v4346_v30  ;;  %v4352_v27 = vmul.f32 %v4350_v19, %v4350_v19 }
 0xced   : > { %v4351_v36 = vsub.f32 %v4340_v49, %v4349_v2  ;;  %v4354_v22 = vsel %vm1261_vm3, %v4352_v27, 0.0 }
 0xcee   : > { %4355 = vadd.xlane.f32.xlu0 %v4354_v22 }
 0xcef   : > { %v4353_v51 = vmul.f32 %v4351_v36, %v4351_v36 }
 0xcf1   : > { %v4357_v57 = vsel %vm1261_vm3, %v4353_v51, 0.0 }
 0xcf2   : > { %4358 = vadd.xlane.f32.xlu0 %v4357_v57  ;;  %v10667_v57 = vld [vmem:[#allocation29_spill] sm:$0xff] }
 0xcf3   : > { %v4926_v13 = vmul.f32 %v10668_v9, %v10667_v57  ;;  %v4928_v54 = vmul.f32 %v10670_v7, %v10667_v57  ;;  %v4937_v6 = vmul.f32 %v10678_v24, %v10667_v57 }
 0xcf5   : > { %v4942_v59 = vsel %vm1814_vm5, %v4926_v13, 0.0  ;;  %v4975_v18 = vsel %vm1814_vm5, %v4937_v6, 0.0 }
 0xd77   : > { %v4356_v37 = vpop.xlane.xlu0 %4355 }
 0xd78   : > { %v4360_v32 = vmul.f32 0.03125, %v4356_v37  ;;  %v4948_v37 = vsel %vm1814_vm5, %v4928_v54, 0.0 }
 0xd7a   : > { %v4362_v53 = vadd.f32 1e-05, %v4360_v32  ;;  %v10671_v32 = vld [vmem:[#allocation93_spill] sm:$0xff] }
 0xd7b   : > { %v4359_v11 = vpop.xlane.xlu0 %4358 }
 0xd7c   : > { %7752 = vrsqrt.f32 %v4362_v53  ;;  %v4361_v1 = vmul.f32 0.03125, %v4359_v11  ;;  %v4929_v53 = vmul.f32 %v10671_v32, %v10667_v57 }
 0xd7e   : > { %v4363_v33 = vadd.f32 1e-05, %v4361_v1  ;;  %v4951_v11 = vsel %vm1814_vm5, %v4929_v53, 0.0  ;;  %v10672_v1 = vld [vmem:[#allocation95_spill] sm:$0xff] }
 0xd80   : > { %7754 = vrsqrt.f32 %v4363_v33  ;;  %v4930_v33 = vmul.f32 %v10672_v1, %v10667_v57 }
 0xd89   : > { %v7753_v38 = vpop.eup %7752 }
 0xd8a   : > { %v4366_v39 = vmul.f32 %v7753_v38, %v4350_v19  ;;  %v4954_v38 = vsel %vm1814_vm5, %v4930_v33, 0.0 }
 0xd8c   : > { %v4374_v47 = vmul.f32 %v7216_v48, %v4366_v39 }
 0xd8d   : > { %v7755_v34 = vpop.eup %7754 }
 0xd8e   : > { %v4367_v4 = vmul.f32 %v7755_v34, %v4351_v36  ;;  %v4382_v50 = vadd.f32 %v7217_v62, %v4374_v47  ;;  %v10674_v47 = vld [vmem:[#allocation97_spill] sm:$0xff] }
 0xd8f   : > { %v4933_v34 = vmul.f32 %v10674_v47, %v10667_v57 }
 0xd90   : > { %7503 = vmatprep.mubr.msk.f32.mxu0 %vm1261_vm3, %v4382_v50  ;;  %v4375_v12 = vmul.f32 %v7216_v48, %v4367_v4  ;;  %v10673_v48 = vld [vmem:[#allocation94_spill] sm:$0xff] }
 0xd91   : > { %v4931_v39 = vmul.f32 %v10673_v48, %v10667_v57  ;;  %v4963_v4 = vsel %vm1814_vm5, %v4933_v34, 0.0  ;;  %v5288_v6 = vmul.f32 %v10673_v48, %v8254_v28 }
 0xd92   : > { %v4383_v45 = vadd.f32 %v7217_v62, %v4375_v12 }
 0xd93   : > { %v4957_v62 = vsel %vm1814_vm5, %v4931_v39, 0.0 }
 0xd94   : > { %7504 = vmatmul.mubr.msk.f32.vlgmr.msra.gmra.mxu0 %vm1261_vm3, %v4383_v45 }
 0xd95   : > { %7526 = vmatpush3.xpose.msk.msra.mxu0 %vm1261_vm3, %v1240_v52  ;;  %7527 = vmatprep.mubr.msk.f32.mxu0 %vm1261_vm3, %v7782_v15  ;;  %v10669_v52 = vld [vmem:[#allocation90_spill] sm:$0xff]  ;;  %v10676_v15 = vld [vmem:[#allocation96_spill] sm:$0xff] }
 0xd96   : > { %v4927_v58 = vmul.f32 %v10669_v52, %v10667_v57 }
 0xd98   : > { %7528 = vmatmul.mubr.msk.f32.vlgmr.msra.gmra.mxu0 %vm1261_vm3, %v7783_v43  ;;  %v4945_v0 = vsel %vm1814_vm5, %v4927_v58, 0.0  ;;  %v4935_v43 = vmul.f32 %v10676_v15, %v10667_v57 }
 0xd99   : > { %7530 = vmatprep.mubr.msk.f32.mxu0 %vm1261_vm3, %v7784_v20 }
 0xd9a   : > { %v4969_v20 = vsel %vm1814_vm5, %v4935_v43, 0.0 }
 0xd9c   : > { %7531 = vmatmul.mubr.msk.f32.gmra.mxu0 %vm1261_vm3, %v7785_v56  ;;  %v10677_v56 = vld [vmem:[#allocation99_spill] sm:$0xff] }
 0xd9d   : > { %7537 = vmatprep.mubr.msk.f32.mxu0 %vm1261_vm3, %v7786_v16  ;;  %v4936_v16 = vmul.f32 %v10677_v56, %v10667_v57 }
 0xd9f   : > { %v4972_v8 = vsel %vm1814_vm5, %v4936_v16, 0.0  ;;  %v5286_v16 = vmul.f32 %v10671_v32, %v8254_v28 }
 0xe54   : > { %v7505_v42 = vpop.f32.mrf.mxu0 }
 0xe55   : > { %v4468_v35 = vadd.f32 %v7505_v42, %v7218_v61 }
 0xe56   : > { %v4462_v63 = vpop.f32.mrf.mxu0 }
 0xe57   : > { %v4463_v49 = vadd.f32 %v7218_v61, %v4462_v63  ;;  %v4472_v23 = vmax.f32 %v4468_v35, 0.0  ;;  %v10679_v61 = vld [vmem:[#allocation101_spill] sm:$0xff]  ;;  %v10680_v63 = vld [vmem:[#allocation102_spill] sm:$0xff] }
 0xe58   : > { %v4938_v42 = vmul.f32 %v10679_v61, %v10667_v57  ;;  %v9861_v33 = vpop.f32.mrf.mxu0 }
 0xe59   : > { %v4471_v10 = vmax.f32 %v4463_v49, 0.0  ;;  %v4939_v49 = vmul.f32 %v10680_v63, %v10667_v57 }
 0xe5a   : > { %v4978_v35 = vsel %vm1814_vm5, %v4938_v42, 0.0  ;;  %v5290_v42 = vmul.f32 %v10674_v47, %v8254_v28 }
 0xe5b   : > { %7522 = vmatprep.mubr.msk.f32.mxu1 %vm4479_vm15, %v4471_v10  ;;  %v4981_v10 = vsel %vm1814_vm5, %v4939_v49, 0.0  ;;  %v5292_v49 = vmul.f32 %v10676_v15, %v8254_v28  ;;  %v5295_v15 = vmul.f32 %v10679_v61, %v8254_v28 }
 0xe5c   : > { %7523 = vmatmul.mubr.msk.f32.vlgmr.msra.gmra.mxu1 %vm4479_vm15, %v4472_v23  ;;  %v10681_v23 = vld [vmem:[#allocation106_spill] sm:$0xff] }
 0xe5d   : > { %7551 = vmatprep.mubr.msk.f32.mxu1 %vm7913_vm4, %v10666_v17 }
 0xf1c   : > { %v7524_v19 = vpop.f32.mrf.mxu1 }
 0xf1d   : > { %v4558_v30 = vadd.f32 %v7524_v19, %v7221_v25 }
 0xf1e   : > { %v4552_v2 = vpop.f32.mrf.mxu1 }
 0xf1f   : > { %v4562_v27 = vadd.f32 %v4558_v30, %v4383_v45  ;;  %v4553_v36 = vadd.f32 %v7221_v25, %v4552_v2  ;;  %v4940_v25 = vmul.f32 %v10681_v23, %v10667_v57  ;;  %v10682_v30 = vld [vmem:[#allocation110_spill] sm:$0xff] }
 0xf20   : > { %v4941_v2 = vmul.f32 %v10682_v30, %v10667_v57 }
 0xf21   : > { %v4561_v22 = vadd.f32 %v4553_v36, %v4382_v50  ;;  %v4566_v51 = vsel %vm1261_vm3, %v4562_v27, 0.0  ;;  %v10675_v50 = vld [vmem:[#allocation98_spill] sm:$0xff]  ;;  %v4984_v19 = vsel %vm1814_vm5, %v4940_v25, 0.0  ;;  %v5293_v25 = vmul.f32 %v10677_v56, %v8254_v28 }
 0xf22   : > { %4567 = vadd.xlane.f32.xlu1 %v4566_v51  ;;  %v4934_v12 = vmul.f32 %v10675_v50, %v10667_v57  ;;  %v4987_v36 = vsel %vm1814_vm5, %v4941_v2, 0.0  ;;  %v5294_v2 = vmul.f32 %v10678_v24, %v8254_v28  ;;  %v5297_v24 = vmul.f32 %v10681_v23, %v8254_v28 }
 0xf23   : > { %v4563_v41 = vsel %vm1261_vm3, %v4561_v22, 0.0 }
 0xf24   : > { %4564 = vadd.xlane.f32.xlu0 %v4563_v41  ;;  %v4966_v45 = vsel %vm1814_vm5, %v4934_v12, 0.0 }
 0xf26   : > { %4943 = vadd.xlane.f32.xlu1 %v4942_v59 }
 0xf2a   : > { %4946 = vadd.xlane.f32.xlu1 %v4945_v0 }
 0xf2e   : > { %4949 = vadd.xlane.f32.xlu1 %v4948_v37 }
 0xf32   : > { %4952 = vadd.xlane.f32.xlu1 %v4951_v11 }
 0xf36   : > { %4955 = vadd.xlane.f32.xlu1 %v4954_v38  ;;  %v4674_v38 = vpop.f32.mrf.mxu0 }
 0xf3a   : > { %4958 = vadd.xlane.f32.xlu1 %v4957_v62 }
 0xf3e   : > { %4964 = vadd.xlane.f32.xlu1 %v4963_v4  ;;  %v5283_v4 = vmul.f32 %v10668_v9, %v8254_v28  ;;  %v5308_v9 = vsel %vm1814_vm5, %v5286_v16, 0.0  ;;  %v9941_v16 = vpop.f32.mrf.mxu0 }
 0xf40   : > { %v5299_v12 = vsel %vm1814_vm5, %v5283_v4, 0.0  ;;  %v7789_v4 = vld [vmem:[%s10613_s2 + $0x8] sm:$0xff] }
 0xf42   : > { %4967 = vadd.xlane.f32.xlu1 %v4966_v45  ;;  %v5284_v45 = vmul.f32 %v10669_v52, %v8254_v28 }
 0xf44   : > { %v5302_v43 = vsel %vm1814_vm5, %v5284_v45, 0.0  ;;  %v7791_v45 = vld [vmem:[%s10488_s7 + $0x20] sm:$0xff] }
 0xf46   : > { %4970 = vadd.xlane.f32.xlu1 %v4969_v20  ;;  %v5285_v20 = vmul.f32 %v10670_v7, %v8254_v28  ;;  %v5314_v7 = vsel %vm1814_vm5, %v5288_v6, 0.0  ;;  %v10685_v6 = vld [vmem:[#allocation34_spill] sm:$0xff] }
 0xf4a   : > { %4973 = vadd.xlane.f32.xlu1 %v4972_v8  ;;  %v5287_v8 = vmul.f32 %v10672_v1, %v8254_v28  ;;  %v5320_v1 = vsel %vm1814_vm5, %v5290_v42, 0.0 }
 0xf4c   : > { %v5311_v52 = vsel %vm1814_vm5, %v5287_v8, 0.0 }
 0xf4e   : > { %4976 = vadd.xlane.f32.xlu1 %v4975_v18 }
 0xf52   : > { %4979 = vadd.xlane.f32.xlu1 %v4978_v35  ;;  %v5291_v35 = vmul.f32 %v10675_v50, %v8254_v28 }
 0xf54   : > { %v5323_v48 = vsel %vm1814_vm5, %v5291_v35, 0.0 }
 0xf56   : > { %4982 = vadd.xlane.f32.xlu1 %v4981_v10  ;;  %v5326_v10 = vsel %vm1814_vm5, %v5292_v49, 0.0 }
 0xf5a   : > { %4985 = vadd.xlane.f32.xlu1 %v4984_v19  ;;  %v5329_v19 = vsel %vm1814_vm5, %v5293_v25, 0.0 }
 0xf5e   : > { %4988 = vadd.xlane.f32.xlu1 %v4987_v36 }
 0xfab   : > { %v4568_v51 = vpop.xlane.xlu1 %4567 }
 0xfac   : > { %v4570_v13 = vmul.f32 0.03125, %v4568_v51 }
 0xfad   : > { %v4565_v41 = vpop.xlane.xlu0 %4564 }
 0xfae   : > { %v9851_v59 = vsub.f32 %v4562_v27, %v4570_v13  ;;  %v4569_v58 = vmul.f32 0.03125, %v4565_v41  ;;  %v10683_v27 = vld [vmem:[#allocation30_spill] sm:$0xff]  ;;  %v5332_v13 = vsel %vm1814_vm5, %v5294_v2, 0.0 }
 0xfaf   : > { %v4675_v39 = vadd.f32 %v4674_v38, %v10683_v27  ;;  %v7225_v27 = vld [vmem:[%s8214_s24] ss:$0 sm:$0xff]  ;;  %v4944_v49 = vpop.xlane.xlu1 %4943 }
 0xfb0   : > { %v9853_v0 = vsub.f32 %v4561_v22, %v4569_v58  ;;  %v4574_v54 = vmul.f32 %v9851_v59, %v9851_v59  ;;  %v10684_v22 = vld [vmem:[#allocation112_spill] sm:$0xff]  ;;  %v5335_v58 = vsel %vm1814_vm5, %v5295_v15, 0.0 }
 0xfb1   : > { %v4932_v62 = vmul.f32 %v10684_v22, %v10667_v57  ;;  %v5305_v57 = vsel %vm1814_vm5, %v5285_v20, 0.0  ;;  %v5289_v18 = vmul.f32 %v10684_v22, %v8254_v28  ;;  %v7793_v20 = vld [vmem:[%s10488_s7 + $0x30] sm:$0xff] }
 0xfb2   : > { %v4578_v37 = vsel %vm1261_vm3, %v4574_v54, 0.0  ;;  %v4573_v53 = vmul.f32 %v9853_v0, %v9853_v0  ;;  %v5341_v54 = vsel %vm1814_vm5, %v5297_v24, 0.0 }
 0xfb3   : > { %4579 = vadd.xlane.f32.xlu0 %v4578_v37  ;;  %v4960_v34 = vsel %vm1814_vm5, %v4932_v62, 0.0  ;;  %v5317_v32 = vsel %vm1814_vm5, %v5289_v18, 0.0  ;;  %v5298_v37 = vmul.f32 %v10682_v30, %v8254_v28 }
 0xfb4   : > { %v4575_v11 = vsel %vm1261_vm3, %v4573_v53, 0.0 }
 0xfb5   : > { %v5344_v61 = vsel %vm1814_vm5, %v5298_v37, 0.0 }
 0xfb7   : > { %4576 = vadd.xlane.f32.xlu0 %v4575_v11  ;;  %v7224_v11 = vld [vmem:[%s8208_s29] ss:$0 sm:$0xff] }
 0xfe4   : > { %4990 = vxpose.xlu0.b32.start.end [1/1] (short) (narrow) %v4675_v39, 8 }
0x1011   : > { %4961 = vadd.xlane.f32.xlu0 %v4960_v34 }
0x1015   : > { %5300 = vadd.xlane.f32.xlu0 %v5299_v12  ;;  %v7790_v12 = vld [vmem:[%s10488_s7 + $0x18] sm:$0xff] }
0x1019   : > { %5303 = vadd.xlane.f32.xlu0 %v5302_v43  ;;  %v7792_v43 = vld [vmem:[%s10488_s7 + $0x28] sm:$0xff] }
0x101d   : > { %5306 = vadd.xlane.f32.xlu0 %v5305_v57  ;;  %v7794_v57 = vld [vmem:[%s10488_s7 + $0x38] sm:$0xff] }
0x1021   : > { %5309 = vadd.xlane.f32.xlu0 %v5308_v9  ;;  %v9943_v9 = vpop.f32.mrf.mxu0 }
0x1025   : > { %5312 = vadd.xlane.f32.xlu0 %v5311_v52 }
0x1029   : > { %5315 = vadd.xlane.f32.xlu0 %v5314_v7 }
0x102d   : > { %5318 = vadd.xlane.f32.xlu0 %v5317_v32 }
0x1031   : > { %5321 = vadd.xlane.f32.xlu0 %v5320_v1 }
0x1035   : > { %5324 = vadd.xlane.f32.xlu0 %v5323_v48 }
0x1039   : > { %5327 = vadd.xlane.f32.xlu0 %v5326_v10  ;;  %v4947_v10 = vpop.xlane.xlu1 %4946 }
0x103c   : > { %v4580_v47 = vpop.xlane.xlu0 %4579 }
0x103d   : > { %v4582_v50 = vmul.f32 0.03125, %v4580_v47  ;;  %5330 = vadd.xlane.f32.xlu0 %v5329_v19  ;;  %v4950_v25 = vpop.xlane.xlu1 %4949 }
0x103e   : > { %v5124_v37 = vrot.slane %v4950_v25, %v8252_v26 }
0x103f   : > { %v4584_v36 = vadd.f32 1e-05, %v4582_v50 }
0x1040   : > { %v4577_v51 = vpop.xlane.xlu0 %4576 }
0x1041   : > { %7756 = vrsqrt.f32 %v4584_v36  ;;  %v4581_v56 = vmul.f32 0.03125, %v4577_v51  ;;  %5333 = vadd.xlane.f32.xlu0 %v5332_v13  ;;  %v4953_v47 = vpop.xlane.xlu1 %4952 }
0x1043   : > { %v4583_v41 = vadd.f32 1e-05, %v4581_v56 }
0x1045   : > { %7758 = vrsqrt.f32 %v4583_v41  ;;  %5336 = vadd.xlane.f32.xlu0 %v5335_v58  ;;  %v4956_v19 = vpop.xlane.xlu1 %4955  ;;  %v5128_v58 = vrot.slane %v4953_v47, %v8260_v31 }
0x1049   : > { %5342 = vadd.xlane.f32.xlu0 %v5341_v54  ;;  %v4959_v2 = vpop.xlane.xlu1 %4958  ;;  %v5119_v54 = vrot.slane %v4947_v10, %v8260_v31 }
0x104d   : > { %5345 = vadd.xlane.f32.xlu0 %v5344_v61  ;;  %v4965_v50 = vpop.xlane.xlu1 %4964 }
0x104e   : > { %v7757_v53 = vpop.eup %7756 }
0x104f   : > { %v4588_v38 = vmul.f32 %v7757_v53, %v9851_v59  ;;  %v7787_v59 = vld [vmem:[%s10488_s7 + $0x8] sm:$0xff]  ;;  %v5133_v53 = vrot.slane %v4956_v19, %v8252_v26 }
0x1051   : > { %v4596_v39 = vmul.f32 %v7224_v11, %v4588_v38  ;;  %v4968_v36 = vpop.xlane.xlu1 %4967  ;;  %v5129_v38 = vsel %vm2070_vm7, %v5128_v58, %v5124_v37  ;;  %v10686_v37 = vld [vmem:[#allocation103_spill] sm:$0xff] }
0x1052   : > { %v7759_v23 = vpop.eup %7758 }
0x1053   : > { %v4604_v22 = vadd.f32 %v7225_v27, %v4596_v39  ;;  %v4587_v62 = vmul.f32 %v7759_v23, %v9853_v0  ;;  %v7788_v0 = vld [vmem:[%s10488_s7 + $0x10] sm:$0xff] }
0x1055   : > { %7533 = vmatprep.subr.msk.mxu0 %vm1261_vm3, %v4604_v22  ;;  %6829 = vst.msk [vmem:[#allocation2 + $0x8] sm:$0xff] %vm1261_vm3, %v4604_v22  ;;  %v4595_v30 = vmul.f32 %v7224_v11, %v4587_v62  ;;  %v4971_v51 = vpop.xlane.xlu1 %4970  ;;  %v5115_v11 = vrot.slane %v4944_v49, %v8252_v26 }
0x1056   : > { %7534 = vmatpush3.xpose.msk.msra.mxu0 %vm1261_vm3, %v4604_v22 }
0x1057   : > { %v4603_v34 = vadd.f32 %v7225_v27, %v4595_v30  ;;  %v5146_v27 = vrot.slane %v4965_v50, %v8260_v31  ;;  %v5120_v23 = vsel %vm2070_vm7, %v5119_v54, %v5115_v11  ;;  %v5155_v30 = vrot.slane %v4971_v51, %v8260_v31 }
0x1058   : > { %v5184_v62 = vsel %vm2207_vm8, %v5129_v38, %v5120_v23  ;;  %v10688_v38 = vld [vmem:[#allocation105_spill] sm:$0xff] }
0x1059   : > { %7535 = vmatprep.subr.msk.mxu0 %vm1261_vm3, %v4603_v34  ;;  %6828 = vst.msk [vmem:[#allocation2] sm:$0xff] %vm1261_vm3, %v4603_v34  ;;  %v4974_v13 = vpop.xlane.xlu1 %4973 }
0x105a   : > { %7536 = vmatpush3.xpose.msk.msra.mxu0 %vm1261_vm3, %v4603_v34 }
0x105b   : > { %7569 = vmatprep.subr.mxu0 %v10666_v17 }
0x105d   : > { %7538 = vmatmul.mubr.msk.f32.vlgmr.msra.gmra.mxu0 %vm1261_vm3, %v7787_v59  ;;  %v4977_v15 = vpop.xlane.xlu1 %4976 }
0x105e   : > { %7540 = vmatprep.mubr.msk.f32.mxu0 %vm1261_vm3, %v7788_v0  ;;  %7570 = vmatpush3.msra.mxu0 %v7789_v4  ;;  %v5151_v0 = vrot.slane %v4968_v36, %v8252_v26 }
0x105f   : > { %7579 = vmatprep.subr.mxu0 %v10666_v17 }
0x1060   : > { %v5006_v32 = vpop.trf.xlu0 }
0x1061   : > { %7541 = vmatmul.mubr.msk.f32.gmra.mxu0 %vm1261_vm3, %v7790_v12  ;;  %v4980_v56 = vpop.xlane.xlu1 %4979  ;;  %v5164_v12 = vrot.slane %v4977_v15, %v8260_v31 }
0x1062   : > { %7543 = vmatprep.mubr.msk.f32.mxu0 %vm1261_vm3, %v7791_v45  ;;  %v5156_v45 = vsel %vm2070_vm7, %v5155_v30, %v5151_v0  ;;  %v10693_v30 = vld [vmem:[#allocation113_spill] sm:$0xff] }
0x1065   : > { %7544 = vmatmul.mubr.msk.f32.gmra.mxu0 %vm1261_vm3, %v7792_v43  ;;  %v4983_v24 = vpop.xlane.xlu1 %4982  ;;  %v5160_v43 = vrot.slane %v4974_v13, %v8252_v26 }
0x1066   : > { %7546 = vmatprep.mubr.msk.f32.mxu0 %vm1261_vm3, %v7793_v20 }
0x1069   : > { %7547 = vmatmul.mubr.msk.f32.gmra.mxu0 %vm1261_vm3, %v7794_v57  ;;  %v4986_v34 = vpop.xlane.xlu1 %4985  ;;  %v5173_v57 = vrot.slane %v4983_v24, %v8260_v31  ;;  %v5296_v24 = vmul.f32 %v10680_v63, %v8254_v28  ;;  %v10690_v28 = vld [vmem:[#allocation108_spill] sm:$0xff] }
0x106a   : > { %7571 = vmatprep.mubr.msk.f32.mxu0 %vm7913_vm4, %v10666_v17  ;;  %v5178_v49 = vrot.slane %v4986_v34, %v8252_v26  ;;  %v5814_v63 = vsel %vm1814_vm5, %v10690_v28, 0.0  ;;  %v5826_v34 = vsel %vm1814_vm5, %v10693_v30, 0.0 }
0x106b   : > { %v5338_v54 = vsel %vm1814_vm5, %v5296_v24, 0.0 }
0x109a   : > { %v4962_v41 = vpop.xlane.xlu0 %4961 }
0x109b   : > { %v5142_v61 = vrot.slane %v4962_v41, %v8252_v26 }
0x109d   : > { %v5147_v22 = vsel %vm2070_vm7, %v5146_v27, %v5142_v61  ;;  %v5802_v61 = vsel %vm1814_vm5, %v10686_v37, 0.0  ;;  %v5808_v27 = vsel %vm1814_vm5, %v10688_v38, 0.0 }
0x111d   : > { %v9945_v8 = vpop.f32.mrf.mxu0 }
0x111f   : > { %v4765_v52 = vpop.f32.mrf.mxu0 }
0x1120   : > { %v4766_v7 = vadd.f32 %v4765_v52, %v10685_v6  ;;  %v4989_v52 = vpop.xlane.xlu1 %4988  ;;  %v5165_v6 = vsel %vm2070_vm7, %v5164_v12, %v5160_v43 }
0x1121   : > { %v9948_v18 = vpop.f32.mrf.mxu0 }
0x1122   : > { %7550 = vmatpush3.msra.mxu1 %v4766_v7  ;;  %v5169_v7 = vrot.slane %v4980_v56, %v8252_v26 }
0x1123   : > { %v9950_v42 = vpop.f32.mrf.mxu0  ;;  %7552 = vmatmul.mubr.msk.f32.vlgmr.msra.gmra.mxu1 %vm1943_vm6, %v5006_v32  ;;  %7554 = vmatprep.subr.mxu1 %v10666_v17 }
0x1124   : > { %7556 = vmatprep.mubr.msk.f32.mxu1 %vm7913_vm4, %v10666_v17 }
0x1125   : > { %v9956_v1 = vpop.f32.mrf.mxu0 }
0x1127   : > { %v4785_v35 = vpop.f32.mrf.mxu0 }
0x1128   : > { %v4786_v48 = vadd.f32 %v4785_v35, %v9240_v40  ;;  %v5137_v40 = vrot.slane %v4959_v2, %v8260_v31  ;;  %v5182_v35 = vrot.slane %v4989_v52, %v8260_v31 }
0x112a   : > { %7555 = vmatpush3.xpose.msk.msra.mxu1 %vm1814_vm5, %v4786_v48  ;;  %v5138_v39 = vsel %vm2070_vm7, %v5137_v40, %v5133_v53  ;;  %v5174_v48 = vsel %vm2070_vm7, %v5173_v57, %v5169_v7  ;;  %v5183_v47 = vsel %vm2070_vm7, %v5182_v35, %v5178_v49  ;;  %v4680_v40 = vadd.f32 %v9861_v33, %v9201_v55  ;;  %v10687_v53 = vld [vmem:[#allocation104_spill] sm:$0xff]  ;;  %v10689_v55 = vld [vmem:[#allocation107_spill] sm:$0xff]  ;;  %v10697_v57 = vld [vmem:[#allocation117_spill] sm:$0xff] }
0x112b   : > { %7559 = vmatprep.subr.mxu1 %v10666_v17  ;;  %v5185_v59 = vsel %vm2209_vm9, %v5138_v39, %v5184_v62  ;;  %v5805_v11 = vsel %vm1814_vm5, %v10687_v53, 0.0  ;;  %v5811_v33 = vsel %vm1814_vm5, %v10689_v55, 0.0  ;;  %v10691_v39 = vld [vmem:[#allocation109_spill] sm:$0xff]  ;;  %v5838_v52 = vsel %vm1814_vm5, %v10697_v57, 0.0 }
0x112c   : > { %v5186_v4 = vsel %vm2211_vm10, %v5147_v22, %v5185_v59  ;;  %v5817_v23 = vsel %vm1814_vm5, %v10691_v39, 0.0  ;;  %v10692_v22 = vld [vmem:[#allocation111_spill] sm:$0xff]  ;;  %v10694_v59 = vld [vmem:[#allocation114_spill] sm:$0xff] }
0x112d   : > { %v5187_v20 = vsel %vm2213_vm11, %v5156_v45, %v5186_v4  ;;  %v5823_v62 = vsel %vm1814_vm5, %v10692_v22, 0.0  ;;  %v5829_v0 = vsel %vm1814_vm5, %v10694_v59, 0.0  ;;  %v10695_v4 = vld [vmem:[#allocation115_spill] sm:$0xff]  ;;  %v10696_v45 = vld [vmem:[#allocation116_spill] sm:$0xff] }
0x112e   : > { %v5188_v32 = vsel %vm2215_vm12, %v5165_v6, %v5187_v20  ;;  %v5832_v12 = vsel %vm1814_vm5, %v10695_v4, 0.0  ;;  %v5835_v43 = vsel %vm1814_vm5, %v10696_v45, 0.0  ;;  %v10698_v6 = vld [vmem:[#allocation118_spill] sm:$0xff] }
0x112f   : > { %v5189_v10 = vsel %vm2217_vm13, %v5174_v48, %v5188_v32  ;;  %v5841_v7 = vsel %vm1814_vm5, %v10698_v6, 0.0  ;;  %v10699_v32 = vld [vmem:[#allocation119_spill] sm:$0xff]  ;;  %v10700_v48 = vld [vmem:[#allocation120_spill] sm:$0xff] }
0x1130   : > { %v5190_v2 = vsel %vm2219_vm14, %v5183_v47, %v5189_v10  ;;  %v5844_v35 = vsel %vm1814_vm5, %v10699_v32, 0.0  ;;  %v5847_v49 = vsel %vm1814_vm5, %v10700_v48, 0.0 }
0x11e3   : > { %v5091_v25 = vpop.f32.mrf.mxu1 }
0x11e4   : > { %v5095_v19 = vmul.f32 0.35355338, %v5091_v25 }
0x11e5   : > { %v7553_v50 = vpop.f32.mrf.mxu1 }
0x11e6   : > { %v5192_v36 = vadd.f32 %v5190_v2, %v5095_v19  ;;  %v4771_v50 = vadd.f32 %v9945_v8, %v9238_v29  ;;  %v5301_v29 = vpop.xlane.xlu0 %5300 }
0x11e7   : > { %v5472_v22 = vrot.slane %v5301_v29, %v8252_v26 }
0x11e8   : > { %v5193_v51 = vsel %vm1814_vm5, %v5192_v36, -inf }
0x11e9   : > { %5194 = vmax.xlane.f32.xlu1 %v5193_v51 }
0x11ea   : > { %v5304_v8 = vpop.xlane.xlu0 %5303 }
0x11eb   : > { %v5476_v55 = vrot.slane %v5304_v8, %v8260_v31 }
0x1272   : > { %v5195_v13 = vpop.xlane.xlu1 %5194 }
0x1273   : > { %v5196_v15 = vsub.f32 %v5192_v36, %v5195_v13  ;;  %v4791_v36 = vadd.f32 %v9956_v1, %v9412_v5  ;;  %v5307_v13 = vpop.xlane.xlu0 %5306 }
0x1275   : > { %v5197_v56 = vmul.f32 1.442695, %v5196_v15 }
0x1277   : > { %7760 = vpow2.f32 %v5197_v56  ;;  %v5310_v15 = vpop.xlane.xlu0 %5309 }
0x127b   : > { %v5313_v56 = vpop.xlane.xlu0 %5312 }
0x127c   : > { %v5490_v39 = vrot.slane %v5313_v56, %v8252_v26 }
0x1284   : > { %v7761_v41 = vpop.eup %7760 }
0x1285   : > { %v5199_v58 = vsel %vm1814_vm5, %v7761_v41, 0.0 }
0x1286   : > { %5200 = vadd.xlane.f32.xlu1 %v5199_v58 }
0x12b9   : > { %5347 = vxpose.xlu1.b32.start.end [1/1] (short) (narrow) %v4680_v40, 8 }
0x12e0   : > { %5339 = vadd.xlane.f32.xlu1 %v5338_v54 }
0x12e4   : > { %5803 = vadd.xlane.f32.xlu1 %v5802_v61 }
0x12e8   : > { %5806 = vadd.xlane.f32.xlu1 %v5805_v11  ;;  %v5485_v11 = vrot.slane %v5310_v15, %v8260_v31 }
0x12ec   : > { %5809 = vadd.xlane.f32.xlu1 %v5808_v27 }
0x12f0   : > { %5812 = vadd.xlane.f32.xlu1 %v5811_v33  ;;  %v5481_v33 = vrot.slane %v5307_v13, %v8252_v26 }
0x12f4   : > { %5815 = vadd.xlane.f32.xlu1 %v5814_v63 }
0x12f8   : > { %5818 = vadd.xlane.f32.xlu1 %v5817_v23 }
0x12fc   : > { %5824 = vadd.xlane.f32.xlu1 %v5823_v62  ;;  %v5486_v62 = vsel %vm2070_vm7, %v5485_v11, %v5481_v33 }
0x1300   : > { %5827 = vadd.xlane.f32.xlu1 %v5826_v34 }
0x1304   : > { %5830 = vadd.xlane.f32.xlu1 %v5829_v0 }
0x1308   : > { %5833 = vadd.xlane.f32.xlu1 %v5832_v12  ;;  %v5477_v12 = vsel %vm2070_vm7, %v5476_v55, %v5472_v22  ;;  %v10705_v55 = vld [vmem:[#allocation125_spill] sm:$0xff] }
0x1309   : > { %v10709_v22 = vld [vmem:[#allocation129_spill] sm:$0xff] }
0x130c   : > { %5836 = vadd.xlane.f32.xlu1 %v5835_v43 }
0x130f   : > { %v5201_v20 = vpop.xlane.xlu1 %5200 }
0x1310   : > { %7762 = vrcp.f32 %v5201_v20  ;;  %5839 = vadd.xlane.f32.xlu1 %v5838_v52 }
0x1314   : > { %5842 = vadd.xlane.f32.xlu1 %v5841_v7 }
0x1318   : > { %5845 = vadd.xlane.f32.xlu1 %v5844_v35 }
0x131c   : > { %5848 = vadd.xlane.f32.xlu1 %v5847_v49 }
0x131d   : > { %v7763_v10 = vpop.eup %7762 }
0x131e   : > { %v5203_v25 = vmul.f32 %v7763_v10, %v5201_v20  ;;  %v5541_v20 = vsel %vm2207_vm8, %v5486_v62, %v5477_v12  ;;  %v6254_v62 = vsel %vm1814_vm5, %v10709_v22, 0.0 }
0x1320   : > { %v5204_v47 = vsub.f32 2.0, %v5203_v25 }
0x1322   : > { %v5205_v19 = vmul.f32 %v7763_v10, %v5204_v47 }
0x1324   : > { %v5206_v2 = vmul.f32 %v7761_v41, %v5205_v19  ;;  %v5316_v41 = vpop.xlane.xlu0 %5315 }
0x1325   : > { %v5494_v38 = vrot.slane %v5316_v41, %v8260_v31 }
0x1326   : > { %7557 = vmatmul.mubr.msk.f32.vlgmr.msra.gmra.mxu1 %vm1814_vm5, %v5206_v2 }
0x1327   : > { %7560 = vmatpush3.msra.mxu1 %v4771_v50  ;;  %7561 = vmatprep.mubr.msk.f32.mxu1 %vm7913_vm4, %v10666_v17  ;;  %v5495_v59 = vsel %vm2070_vm7, %v5494_v38, %v5490_v39  ;;  %v10704_v38 = vld [vmem:[#allocation124_spill] sm:$0xff] }
0x1328   : > { %7564 = vmatprep.subr.mxu1 %v10666_v17  ;;  %v5319_v58 = vpop.xlane.xlu0 %5318  ;;  %v5542_v7 = vsel %vm2209_vm9, %v5495_v59, %v5541_v20  ;;  %v10708_v39 = vld [vmem:[#allocation128_spill] sm:$0xff]  ;;  %v10711_v59 = vld [vmem:[#allocation131_spill] sm:$0xff] }
0x1329   : > { %v5499_v30 = vrot.slane %v5319_v58, %v8252_v26 }
0x132c   : > { %v5322_v40 = vpop.xlane.xlu0 %5321 }
0x132d   : > { %v5503_v28 = vrot.slane %v5322_v40, %v8260_v31 }
0x132f   : > { %v5504_v45 = vsel %vm2070_vm7, %v5503_v28, %v5499_v30  ;;  %v10707_v28 = vld [vmem:[#allocation127_spill] sm:$0xff]  ;;  %v10710_v30 = vld [vmem:[#allocation130_spill] sm:$0xff] }
0x1330   : > { %v5325_v24 = vpop.xlane.xlu0 %5324  ;;  %v5543_v35 = vsel %vm2211_vm10, %v5504_v45, %v5542_v7 }
0x1331   : > { %v5508_v0 = vrot.slane %v5325_v24, %v8252_v26  ;;  %v4685_v24 = vadd.f32 %v9943_v9, %v9416_v44  ;;  %v6242_v44 = vsel %vm1814_vm5, %v10705_v55, 0.0  ;;  %v10706_v9 = vld [vmem:[#allocation126_spill] sm:$0xff] }
0x1332   : > { %v6245_v33 = vsel %vm1814_vm5, %v10706_v9, 0.0 }
0x1334   : > { %v5328_v5 = vpop.xlane.xlu0 %5327 }
0x1335   : > { %v5363_v51 = vpop.trf.xlu1  ;;  %v5512_v23 = vrot.slane %v5328_v5, %v8260_v31  ;;  %v10701_v5 = vld [vmem:[#allocation121_spill] sm:$0xff] }
0x1336   : > { %7562 = vmatmul.mubr.msk.f32.vlgmr.msra.gmra.mxu1 %vm1943_vm6, %v5363_v51 }
0x1337   : > { %7565 = vmatpush3.xpose.msk.msra.mxu1 %vm1814_vm5, %v4791_v36  ;;  %7566 = vmatprep.mubr.msk.f32.mxu1 %vm7913_vm4, %v10666_v17  ;;  %v5513_v57 = vsel %vm2070_vm7, %v5512_v23, %v5508_v0  ;;  %v6251_v23 = vsel %vm1814_vm5, %v10708_v39, 0.0  ;;  %v6260_v0 = vsel %vm1814_vm5, %v10711_v59, 0.0 }
0x1338   : > { %7574 = vmatprep.subr.mxu1 %v10666_v17  ;;  %v5331_v1 = vpop.xlane.xlu0 %5330  ;;  %v5544_v49 = vsel %vm2213_vm11, %v5513_v57, %v5543_v35  ;;  %v10714_v57 = vld [vmem:[#allocation134_spill] sm:$0xff] }
0x1339   : > { %v5517_v43 = vrot.slane %v5331_v1, %v8252_v26  ;;  %v5820_v1 = vsel %vm1814_vm5, %v10701_v5, 0.0 }
0x133c   : > { %v5334_v54 = vpop.xlane.xlu0 %5333 }
0x133d   : > { %v5521_v34 = vrot.slane %v5334_v54, %v8260_v31  ;;  %v10702_v54 = vld [vmem:[#allocation122_spill] sm:$0xff] }
0x133f   : > { %v5522_v32 = vsel %vm2070_vm7, %v5521_v34, %v5517_v43  ;;  %v6257_v34 = vsel %vm1814_vm5, %v10710_v30, 0.0  ;;  %v10713_v43 = vld [vmem:[#allocation133_spill] sm:$0xff] }
0x1340   : > { %v5337_v37 = vpop.xlane.xlu0 %5336  ;;  %v5545_v25 = vsel %vm2215_vm12, %v5522_v32, %v5544_v49  ;;  %v6266_v20 = vsel %vm1814_vm5, %v10713_v43, 0.0  ;;  %v10716_v32 = vld [vmem:[#allocation136_spill] sm:$0xff] }
0x1341   : > { %v5526_v52 = vrot.slane %v5337_v37, %v8252_v26  ;;  %v6233_v37 = vsel %vm1814_vm5, %v10702_v54, 0.0  ;;  %v6278_v35 = vsel %vm1814_vm5, %v10716_v32, 0.0 }
0x1344   : > { %v5343_v27 = vpop.xlane.xlu0 %5342 }
0x1345   : > { %v5535_v47 = vrot.slane %v5343_v27, %v8252_v26  ;;  %v6239_v27 = vsel %vm1814_vm5, %v10704_v38, 0.0 }
0x1348   : > { %v5346_v6 = vpop.xlane.xlu0 %5345 }
0x1349   : > { %v5539_v10 = vrot.slane %v5346_v6, %v8260_v31  ;;  %v10715_v6 = vld [vmem:[#allocation135_spill] sm:$0xff] }
0x134a   : > { %v6275_v7 = vsel %vm1814_vm5, %v10715_v6, 0.0 }
0x134b   : > { %v5540_v50 = vsel %vm2070_vm7, %v5539_v10, %v5535_v47 }
0x1369   : > { %v5340_v63 = vpop.xlane.xlu1 %5339 }
0x136a   : > { %v5530_v4 = vrot.slane %v5340_v63, %v8260_v31  ;;  %v6248_v63 = vsel %vm1814_vm5, %v10707_v28, 0.0 }
0x136c   : > { %v5531_v48 = vsel %vm2070_vm7, %v5530_v4, %v5526_v52  ;;  %v10712_v4 = vld [vmem:[#allocation132_spill] sm:$0xff]  ;;  %v6269_v52 = vsel %vm1814_vm5, %v10714_v57, 0.0 }
0x136d   : > { %v5546_v19 = vsel %vm2217_vm13, %v5531_v48, %v5545_v25  ;;  %v6263_v12 = vsel %vm1814_vm5, %v10712_v4, 0.0  ;;  %v10111_v25 = vpop.f32.mrf.mxu0 }
0x136e   : > { %v5547_v51 = vsel %vm2219_vm14, %v5540_v50, %v5546_v19  ;;  %v7795_v50 = vld [vmem:[%s10613_s2] sm:$0xff] }
0x13e6   : > { %v10042_v61 = vpop.f32.mrf.mxu1 }
0x13e8   : > { %v7558_v53 = vpop.f32.mrf.mxu1 }
0x13e9   : > { %v10703_v53 = vld [vmem:[#allocation123_spill] sm:$0xff] }
0x13ea   : > { %v6236_v11 = vsel %vm1814_vm5, %v10703_v53, 0.0 }
0x13f6   : > { %v5448_v2 = vpop.f32.mrf.mxu1 }
0x13f7   : > { %v5452_v36 = vmul.f32 0.35355338, %v5448_v2  ;;  %v4795_v2 = vpop.f32.mrf.mxu0 }
0x13f8   : > { %v7563_v29 = vpop.f32.mrf.mxu1 }
0x13f9   : > { %v5549_v8 = vadd.f32 %v5547_v51, %v5452_v36  ;;  %v4796_v36 = vadd.f32 %v4795_v2, %v9639_v3  ;;  %v4776_v51 = vadd.f32 %v9950_v42, %v9423_v60  ;;  %v5804_v60 = vpop.xlane.xlu1 %5803 }
0x13fb   : > { %v5550_v13 = vsel %vm1814_vm5, %v5549_v8, -inf }
0x13fc   : > { %5551 = vmax.xlane.f32.xlu0 %v5550_v13 }
0x13fd   : > { %v5807_v42 = vpop.xlane.xlu1 %5806 }
0x1485   : > { %v5552_v15 = vpop.xlane.xlu0 %5551 }
0x1486   : > { %v5553_v56 = vsub.f32 %v5549_v8, %v5552_v15  ;;  %v7796_v15 = vld [vmem:[%s10613_s2 + $0x10] sm:$0xff] }
0x1488   : > { %v5554_v41 = vmul.f32 1.442695, %v5553_v56  ;;  %v5810_v56 = vpop.xlane.xlu1 %5809 }
0x1489   : > { %v5984_v9 = vrot.slane %v5810_v56, %v8252_v26 }
0x148a   : > { %7764 = vpow2.f32 %v5554_v41 }
0x148c   : > { %v5813_v41 = vpop.xlane.xlu1 %5812 }
0x148d   : > { %v5988_v38 = vrot.slane %v5813_v41, %v8260_v31 }
0x148f   : > { %v5989_v39 = vsel %vm2070_vm7, %v5988_v38, %v5984_v9 }
0x1497   : > { %v7765_v58 = vpop.eup %7764 }
0x1498   : > { %v5556_v40 = vsel %vm1814_vm5, %v7765_v58, 0.0 }
0x1499   : > { %5557 = vadd.xlane.f32.xlu0 %v5556_v40 }
0x14c6   : > { %5850 = vxpose.xlu0.b32.start.end [1/1] (short) (narrow) %v4685_v24, 8 }
0x14f3   : > { %5821 = vadd.xlane.f32.xlu0 %v5820_v1 }
0x14f7   : > { %6234 = vadd.xlane.f32.xlu0 %v6233_v37 }
0x14fb   : > { %6237 = vadd.xlane.f32.xlu0 %v6236_v11 }
0x14ff   : > { %6240 = vadd.xlane.f32.xlu0 %v6239_v27 }
0x1503   : > { %6243 = vadd.xlane.f32.xlu0 %v6242_v44  ;;  %v5979_v44 = vrot.slane %v5807_v42, %v8260_v31 }
0x1507   : > { %6246 = vadd.xlane.f32.xlu0 %v6245_v33 }
0x150b   : > { %6249 = vadd.xlane.f32.xlu0 %v6248_v63  ;;  %v5975_v63 = vrot.slane %v5804_v60, %v8252_v26 }
0x150f   : > { %6252 = vadd.xlane.f32.xlu0 %v6251_v23 }
0x1513   : > { %6255 = vadd.xlane.f32.xlu0 %v6254_v62  ;;  %v5980_v62 = vsel %vm2070_vm7, %v5979_v44, %v5975_v63 }
0x1517   : > { %6258 = vadd.xlane.f32.xlu0 %v6257_v34  ;;  %v6044_v34 = vsel %vm2207_vm8, %v5989_v39, %v5980_v62 }
0x151b   : > { %6261 = vadd.xlane.f32.xlu0 %v6260_v0 }
0x151f   : > { %6264 = vadd.xlane.f32.xlu0 %v6263_v12 }
0x1522   : > { %v5558_v45 = vpop.xlane.xlu0 %5557 }
0x1523   : > { %7766 = vrcp.f32 %v5558_v45  ;;  %6267 = vadd.xlane.f32.xlu0 %v6266_v20 }
0x1527   : > { %6270 = vadd.xlane.f32.xlu0 %v6269_v52 }
0x152b   : > { %6276 = vadd.xlane.f32.xlu0 %v6275_v7 }
0x152f   : > { %6279 = vadd.xlane.f32.xlu0 %v6278_v35 }
0x1530   : > { %v7767_v48 = vpop.eup %7766 }
0x1531   : > { %v5560_v49 = vmul.f32 %v7767_v48, %v5558_v45 }
0x1533   : > { %v5561_v10 = vsub.f32 2.0, %v5560_v49 }
0x1535   : > { %v5562_v47 = vmul.f32 %v7767_v48, %v5561_v10 }
0x1537   : > { %v5563_v19 = vmul.f32 %v7765_v58, %v5562_v47  ;;  %v5816_v58 = vpop.xlane.xlu1 %5815 }
0x1538   : > { %v5993_v28 = vrot.slane %v5816_v58, %v8252_v26 }
0x1539   : > { %7567 = vmatmul.mubr.msk.f32.vlgmr.msra.gmra.mxu1 %vm1814_vm5, %v5563_v19 }
0x153a   : > { %7575 = vmatpush3.msra.mxu1 %v7795_v50  ;;  %7576 = vmatprep.mubr.msk.f32.mxu1 %vm7913_vm4, %v10666_v17 }
0x153b   : > { %7584 = vmatprep.subr.mxu1 %v10666_v17  ;;  %v5819_v40 = vpop.xlane.xlu1 %5818 }
0x153c   : > { %v5997_v27 = vrot.slane %v5819_v40, %v8260_v31  ;;  %v4690_v40 = vadd.f32 %v9941_v16, %v9610_v14  ;;  %v7797_v16 = vld [vmem:[%s10613_s2 + $0x18] sm:$0xff] }
0x153d   : > { %7577 = vmatmul.mubr.msk.f32.vlgmr.msra.gmra.mxu1 %vm1943_vm6, %v10042_v61 }
0x153e   : > { %7585 = vmatpush3.xpose.msk.msra.mxu1 %vm1814_vm5, %v4796_v36  ;;  %7586 = vmatprep.mubr.msk.f32.mxu1 %vm7913_vm4, %v10666_v17  ;;  %v5998_v22 = vsel %vm2070_vm7, %v5997_v27, %v5993_v28  ;;  %v4781_v27 = vadd.f32 %v9948_v18, %v9637_v46 }
0x153f   : > { %7594 = vmatprep.subr.mxu1 %v10666_v17  ;;  %v5825_v24 = vpop.xlane.xlu1 %5824  ;;  %v6045_v4 = vsel %vm2209_vm9, %v5998_v22, %v6044_v34  ;;  %v4801_v34 = vadd.f32 %v10111_v25, %v9751_v21 }
0x1540   : > { %v6006_v23 = vrot.slane %v5825_v24, %v8260_v31  ;;  %v10717_v24 = vld [vmem:[#allocation137_spill] sm:$0xff] }
0x1542   : > { %v5866_v3 = vpop.trf.xlu0 }
0x1543   : > { %v5828_v5 = vpop.xlane.xlu1 %5827 }
0x1544   : > { %v6011_v12 = vrot.slane %v5828_v5, %v8252_v26  ;;  %v6272_v5 = vsel %vm1814_vm5, %v10717_v24, 0.0 }
0x1547   : > { %v5831_v1 = vpop.xlane.xlu1 %5830 }
0x1548   : > { %v6015_v59 = vrot.slane %v5831_v1, %v8260_v31 }
0x154a   : > { %v6016_v20 = vsel %vm2070_vm7, %v6015_v59, %v6011_v12 }
0x154b   : > { %v5834_v54 = vpop.xlane.xlu1 %5833 }
0x154c   : > { %v6020_v57 = vrot.slane %v5834_v54, %v8252_v26 }
0x154f   : > { %v5837_v37 = vpop.xlane.xlu1 %5836 }
0x1550   : > { %v6024_v43 = vrot.slane %v5837_v37, %v8260_v31 }
0x1552   : > { %v6025_v32 = vsel %vm2070_vm7, %v6024_v43, %v6020_v57 }
0x1553   : > { %v5840_v53 = vpop.xlane.xlu1 %5839 }
0x1554   : > { %v6029_v35 = vrot.slane %v5840_v53, %v8252_v26 }
0x1557   : > { %v5843_v55 = vpop.xlane.xlu1 %5842 }
0x1558   : > { %v6033_v6 = vrot.slane %v5843_v55, %v8260_v31 }
0x155a   : > { %v6034_v47 = vsel %vm2070_vm7, %v6033_v6, %v6029_v35 }
0x155b   : > { %v5846_v0 = vpop.xlane.xlu1 %5845 }
0x155c   : > { %v6038_v2 = vrot.slane %v5846_v0, %v8252_v26 }
0x155f   : > { %v5849_v7 = vpop.xlane.xlu1 %5848 }
0x1560   : > { %v6042_v10 = vrot.slane %v5849_v7, %v8260_v31 }
0x157c   : > { %v5822_v11 = vpop.xlane.xlu0 %5821 }
0x157d   : > { %v6002_v33 = vrot.slane %v5822_v11, %v8252_v26 }
0x157f   : > { %v6007_v30 = vsel %vm2070_vm7, %v6006_v23, %v6002_v33 }
0x1580   : > { %v6046_v45 = vsel %vm2211_vm10, %v6007_v30, %v6045_v4  ;;  %v6235_v55 = vpop.xlane.xlu0 %6234 }
0x1581   : > { %v6047_v52 = vsel %vm2213_vm11, %v6016_v20, %v6046_v45  ;;  %v6406_v6 = vrot.slane %v6235_v55, %v8252_v26 }
0x1582   : > { %v6048_v49 = vsel %vm2215_vm12, %v6025_v32, %v6047_v52 }
0x1583   : > { %v6049_v50 = vsel %vm2217_vm13, %v6034_v47, %v6048_v49 }
0x1584   : > { %v6238_v46 = vpop.xlane.xlu0 %6237 }
0x1585   : > { %v6410_v43 = vrot.slane %v6238_v46, %v8260_v31 }
0x1588   : > { %v6241_v18 = vpop.xlane.xlu0 %6240 }
0x1589   : > { %v6415_v21 = vrot.slane %v6241_v18, %v8252_v26 }
0x158c   : > { %v6244_v44 = vpop.xlane.xlu0 %6243 }
0x158d   : > { %v6419_v4 = vrot.slane %v6244_v44, %v8260_v31 }
0x158f   : > { %v6420_v7 = vsel %vm2070_vm7, %v6419_v4, %v6415_v21  ;;  %v7805_v4 = vld [vmem:[%s8184_s3 + $0x20] sm:$0xff] }
0x1590   : > { %v6247_v9 = vpop.xlane.xlu0 %6246  ;;  %v7809_v21 = vld [vmem:[%s8184_s3] sm:$0xff] }
0x1591   : > { %v6424_v57 = vrot.slane %v6247_v9, %v8252_v26 }
0x1594   : > { %v6250_v33 = vpop.xlane.xlu0 %6249 }
0x1595   : > { %v6428_v12 = vrot.slane %v6250_v33, %v8260_v31 }
0x1597   : > { %v6429_v49 = vsel %vm2070_vm7, %v6428_v12, %v6424_v57  ;;  %v7806_v12 = vld [vmem:[%s8184_s3 + $0x18] sm:$0xff] }
0x1598   : > { %v6253_v28 = vpop.xlane.xlu0 %6252 }
0x1599   : > { %v6433_v32 = vrot.slane %v6253_v28, %v8252_v26 }
0x159c   : > { %v6256_v63 = vpop.xlane.xlu0 %6255 }
0x159d   : > { %v6437_v25 = vrot.slane %v6256_v63, %v8260_v31 }
0x15a0   : > { %v6259_v39 = vpop.xlane.xlu0 %6258 }
0x15a4   : > { %v6262_v23 = vpop.xlane.xlu0 %6261 }
0x15a5   : > { %v6446_v52 = vrot.slane %v6262_v23, %v8260_v31  ;;  %v7798_v23 = vld [vmem:[%s8173_s0 + $0x18] sm:$0xff] }
0x15a8   : > { %v6265_v22 = vpop.xlane.xlu0 %6264 }
0x15ac   : > { %v6268_v62 = vpop.xlane.xlu0 %6267 }
0x15ad   : > { %v6455_v35 = vrot.slane %v6268_v62, %v8260_v31 }
0x15b0   : > { %v6271_v30 = vpop.xlane.xlu0 %6270 }
0x15b4   : > { %v6277_v45 = vpop.xlane.xlu0 %6276 }
0x15f9   : > { %v5636_v29 = vpop.f32.mrf.mxu1 }
0x15fa   : > { %7572 = vmatmul.mubr.msk.f32.vlgmr.msra.gmra.mxu0 %vm1943_vm6, %v5636_v29 }
0x15fb   : > { %7580 = vmatpush3.msra.mxu0 %v4776_v51  ;;  %v7568_v8 = vpop.f32.mrf.mxu1  ;;  %7581 = vmatprep.mubr.msk.f32.mxu0 %vm7913_vm4, %v10666_v17  ;;  %v6043_v51 = vsel %vm2070_vm7, %v6042_v10, %v6038_v2  ;;  %v6442_v10 = vrot.slane %v6259_v39, %v8252_v26  ;;  %v6438_v2 = vsel %vm2070_vm7, %v6437_v25, %v6433_v32 }
0x15fc   : > { %7589 = vmatprep.subr.mxu0 %v10666_v17  ;;  %v6050_v8 = vsel %vm2219_vm14, %v6043_v51, %v6049_v50  ;;  %v6451_v50 = vrot.slane %v6265_v22, %v8252_v26  ;;  %v7801_v22 = vld [vmem:[%s8173_s0] sm:$0xff] }
0x15fd   : > { %v10131_v61 = vpop.f32.mrf.mxu1  ;;  %v6447_v51 = vsel %vm2070_vm7, %v6446_v52, %v6442_v10  ;;  %v7810_v52 = vld [vmem:[%s8154_s25] ss:$0 sm:$0xff] }
0x15fe   : > { %7582 = vmatmul.mubr.msk.f32.vlgmr.msra.gmra.mxu0 %vm1943_vm6, %v5866_v3 }
0x15ff   : > { %v7578_v13 = vpop.f32.mrf.mxu1  ;;  %7590 = vmatpush3.msra.mxu0 %v7796_v15  ;;  %7591 = vmatprep.mubr.msk.f32.mxu0 %vm7913_vm4, %v10666_v17 }
0x1600   : > { %7599 = vmatprep.subr.mxu0 %v10666_v17 }
0x16ba   : > { %v10162_v48 = vpop.f32.mrf.mxu0 }
0x16bc   : > { %v7573_v19 = vpop.f32.mrf.mxu0 }
0x16bd   : > { %v6411_v19 = vsel %vm2070_vm7, %v6410_v43, %v6406_v6  ;;  %v7808_v43 = vld [vmem:[%s8184_s3 + $0x8] sm:$0xff] }
0x16be   : > { %v5951_v36 = vpop.f32.mrf.mxu0 }
0x16bf   : > { %v5955_v29 = vmul.f32 0.35355338, %v5951_v36  ;;  %v6475_v36 = vsel %vm2207_vm8, %v6420_v7, %v6411_v19  ;;  %v7811_v7 = vld [vmem:[#allocation3] sm:$0xff] }
0x16c0   : > { %v7583_v3 = vpop.f32.mrf.mxu0 }
0x16c1   : > { %v6052_v13 = vadd.f32 %v6050_v8, %v5955_v29  ;;  %v6460_v29 = vrot.slane %v6271_v30, %v8252_v26  ;;  %v6280_v8 = vpop.xlane.xlu0 %6279  ;;  %v6476_v3 = vsel %vm2209_vm9, %v6429_v49, %v6475_v36 }
0x16c3   : > { %v6053_v15 = vsel %vm1814_vm5, %v6052_v13, -inf }
0x16c4   : > { %6054 = vmax.xlane.f32.xlu1 %v6053_v15  ;;  %v6477_v15 = vsel %vm2211_vm10, %v6438_v2, %v6476_v3 }
0x174d   : > { %v6055_v60 = vpop.xlane.xlu1 %6054 }
0x174e   : > { %v6056_v42 = vsub.f32 %v6052_v13, %v6055_v60  ;;  %v6456_v13 = vsel %vm2070_vm7, %v6455_v35, %v6451_v50 }
0x1750   : > { %v6057_v56 = vmul.f32 1.442695, %v6056_v42  ;;  %v6478_v42 = vsel %vm2213_vm11, %v6447_v51, %v6477_v15 }
0x1752   : > { %7768 = vpow2.f32 %v6057_v56  ;;  %v6473_v56 = vrot.slane %v6280_v8, %v8260_v31  ;;  %v7812_v8 = vld [vmem:[%s8196_s1] ss:$0 sm:$0xff] }
0x175f   : > { %v7769_v41 = vpop.eup %7768 }
0x1760   : > { %v6059_v58 = vsel %vm1814_vm5, %v7769_v41, 0.0 }
0x1761   : > { %6060 = vadd.xlane.f32.xlu1 %v6059_v58  ;;  %v6469_v58 = vrot.slane %v6277_v45, %v8252_v26  ;;  %v7807_v45 = vld [vmem:[%s8184_s3 + $0x10] sm:$0xff] }
0x1794   : > { %6281 = vxpose.xlu1.b32.start.end [1/1] (short) (narrow) %v4690_v40, 8 }
0x17bb   : > { %6273 = vadd.xlane.f32.xlu1 %v6272_v5  ;;  %v6474_v5 = vsel %vm2070_vm7, %v6473_v56, %v6469_v58 }
0x17ea   : > { %v6061_v1 = vpop.xlane.xlu1 %6060 }
0x17eb   : > { %7770 = vrcp.f32 %v6061_v1 }
0x17f8   : > { %v7771_v54 = vpop.eup %7770 }
0x17f9   : > { %v6063_v37 = vmul.f32 %v7771_v54, %v6061_v1 }
0x17fb   : > { %v6064_v53 = vsub.f32 2.0, %v6063_v37 }
0x17fd   : > { %v6065_v11 = vmul.f32 %v7771_v54, %v6064_v53 }
0x17ff   : > { %v6066_v38 = vmul.f32 %v7769_v41, %v6065_v11  ;;  %v6479_v41 = vsel %vm2215_vm12, %v6456_v13, %v6478_v42  ;;  %v7813_v13 = vld [vmem:[%s8202_s30] ss:$0 sm:$0xff] }
0x1800   : > { %v7814_v42 = vld [vmem:[%s10664_s26] ss:$0 sm:$0xff] }
0x1801   : > { %7587 = vmatmul.mubr.msk.f32.vlgmr.msra.gmra.mxu1 %vm1814_vm5, %v6066_v38 }
0x1802   : > { %7595 = vmatpush3.msra.mxu1 %v4781_v27  ;;  %7596 = vmatprep.mubr.msk.f32.mxu1 %vm7913_vm4, %v10666_v17 }
0x1803   : > { %7604 = vmatprep.subr.mxu1 %v10666_v17 }
0x1810   : > { %v6297_v14 = vpop.trf.xlu1 }
0x1811   : > { %7597 = vmatmul.mubr.msk.f32.vlgmr.msra.gmra.mxu1 %vm1943_vm6, %v6297_v14 }
0x1812   : > { %7605 = vmatpush3.msra.mxu1 %v7797_v16  ;;  %7606 = vmatprep.mubr.msk.f32.mxu1 %vm7913_vm4, %v10666_v17  ;;  %v5783_v16 = vadd.f32 %v10131_v61, %v10162_v48  ;;  %v7799_v61 = vld [vmem:[%s8173_s0 + $0x10] sm:$0xff]  ;;  %v7800_v48 = vld [vmem:[%s8173_s0 + $0x8] sm:$0xff] }
0x1813   : > { %7620 = vmatprep.subr.mxu1 %v10666_v17 }
0x1844   : > { %v6274_v20 = vpop.xlane.xlu1 %6273 }
0x1845   : > { %v6464_v47 = vrot.slane %v6274_v20, %v8260_v31 }
0x1847   : > { %v6465_v60 = vsel %vm2070_vm7, %v6464_v47, %v6460_v29 }
0x1848   : > { %v6480_v40 = vsel %vm2217_vm13, %v6465_v60, %v6479_v41 }
0x1849   : > { %v6481_v54 = vsel %vm2219_vm14, %v6474_v5, %v6480_v40 }
0x18c1   : > { %v6139_v59 = vpop.f32.mrf.mxu1 }
0x18c2   : > { %7592 = vmatmul.mubr.msk.f32.vlgmr.msra.gmra.mxu0 %vm1943_vm6, %v6139_v59  ;;  %v7803_v59 = vld [vmem:[%s8184_s3 + $0x30] sm:$0xff] }
0x18c3   : > { %7600 = vmatpush3.xpose.msk.msra.mxu0 %vm1814_vm5, %v4801_v34  ;;  %v7588_v0 = vpop.f32.mrf.mxu1  ;;  %7601 = vmatprep.mubr.msk.f32.mxu0 %vm7913_vm4, %v10666_v17  ;;  %v7802_v34 = vld [vmem:[%s8184_s3 + $0x38] sm:$0xff] }
0x18c4   : > { %7609 = vmatprep.subr.mxu0 %v10666_v17  ;;  %v7804_v0 = vld [vmem:[%s8184_s3 + $0x28] sm:$0xff] }
0x18d1   : > { %v6382_v24 = vpop.f32.mrf.mxu1 }
0x18d2   : > { %v6386_v1 = vmul.f32 0.35355338, %v6382_v24  ;;  %v7815_v24 = vld [vmem:[%s10665_s23] ss:$0 sm:$0xff] }
0x18d3   : > { %v7598_v37 = vpop.f32.mrf.mxu1 }
0x18d4   : > { %v6483_v53 = vadd.f32 %v6481_v54, %v6386_v1 }
0x18d6   : > { %v6484_v11 = vsel %vm1814_vm5, %v6483_v53, -inf }
0x18d7   : > { %6485 = vmax.xlane.f32.xlu0 %v6484_v11 }
0x1960   : > { %v6486_v38 = vpop.xlane.xlu0 %6485 }
0x1961   : > { %v6487_v27 = vsub.f32 %v6483_v53, %v6486_v38 }
0x1963   : > { %v6488_v31 = vmul.f32 1.442695, %v6487_v27 }
0x1965   : > { %7772 = vpow2.f32 %v6488_v31 }
0x1972   : > { %v7773_v14 = vpop.eup %7772 }
0x1973   : > { %v6490_v26 = vsel %vm1814_vm5, %v7773_v14, 0.0 }
0x1974   : > { %6491 = vadd.xlane.f32.xlu0 %v6490_v26 }
0x1982   : > { %v6212_v55 = vpop.f32.mrf.mxu0 }
0x1983   : > { %v6216_v46 = vadd.f32 %v6212_v55, %v5783_v16 }
0x1984   : > { %v7593_v18 = vpop.f32.mrf.mxu0 }
0x1985   : > { %v7816_v18 = vld [vmem:[%s8208_s29] ss:$0 sm:$0xff] }
0x19fd   : > { %v6492_v44 = vpop.xlane.xlu0 %6491 }
0x19fe   : > { %7774 = vrcp.f32 %v6492_v44 }
0x1a0b   : > { %v7775_v9 = vpop.eup %7774 }
0x1a0c   : > { %v6494_v33 = vmul.f32 %v7775_v9, %v6492_v44 }
0x1a0e   : > { %v6495_v28 = vsub.f32 2.0, %v6494_v33 }
0x1a10   : > { %v6496_v63 = vmul.f32 %v7775_v9, %v6495_v28  ;;  %v7817_v9 = vld [vmem:[%s8214_s24] ss:$0 sm:$0xff] }
0x1a12   : > { %v6497_v39 = vmul.f32 %v7773_v14, %v6496_v63 }
0x1a14   : > { %7602 = vmatmul.mubr.msk.f32.vlgmr.msra.gmra.mxu0 %vm1814_vm5, %v6497_v39 }
0x1a15   : > { %7610 = vmatpush3.msra.mxu0 %v7798_v23  ;;  %7617 = vmatprep.mubr.msk.f32.mxu0 %vm7913_vm4, %v10666_v17 }
0x1a16   : > { %7611 = vmatprep.subr.mxu0 %v10666_v17 }
0x1a17   : > { %7612 = vmatpush3.msra.mxu0 %v7799_v61 }
0x1a18   : > { %7613 = vmatprep.subr.mxu0 %v10666_v17 }
0x1a19   : > { %7614 = vmatpush3.msra.mxu0 %v7800_v48 }
0x1a1a   : > { %7615 = vmatprep.subr.mxu0 %v10666_v17 }
0x1a1b   : > { %7616 = vmatpush3.msra.mxu0 %v7801_v22 }
0x1ad4   : > { %v6570_v62 = vpop.f32.mrf.mxu0 }
0x1ad5   : > { %7607 = vmatmul.mubr.msk.f32.vlgmr.msra.gmra.mxu1 %vm1943_vm6, %v6570_v62 }
0x1ad6   : > { %v7603_v30 = vpop.f32.mrf.mxu0  ;;  %7621 = vmatpush3.msra.mxu1 %v7802_v34  ;;  %7636 = vmatprep.mubr.msk.f32.mxu1 %vm7913_vm4, %v10666_v17 }
0x1ad7   : > { %7622 = vmatprep.subr.mxu1 %v10666_v17 }
0x1ad8   : > { %7623 = vmatpush3.msra.mxu1 %v7803_v59 }
0x1ad9   : > { %7624 = vmatprep.subr.mxu1 %v10666_v17 }
0x1ada   : > { %7625 = vmatpush3.msra.mxu1 %v7804_v0 }
0x1adb   : > { %7626 = vmatprep.subr.mxu1 %v10666_v17 }
0x1adc   : > { %7627 = vmatpush3.msra.mxu1 %v7805_v4 }
0x1add   : > { %7628 = vmatprep.subr.mxu1 %v10666_v17 }
0x1ade   : > { %7629 = vmatpush3.msra.mxu1 %v7806_v12 }
0x1adf   : > { %7630 = vmatprep.subr.mxu1 %v10666_v17 }
0x1ae0   : > { %7631 = vmatpush3.msra.mxu1 %v7807_v45 }
0x1ae1   : > { %7632 = vmatprep.subr.mxu1 %v10666_v17 }
0x1ae2   : > { %7633 = vmatpush3.msra.mxu1 %v7808_v43 }
0x1ae3   : > { %7634 = vmatprep.subr.mxu1 %v10666_v17 }
0x1ae4   : > { %7635 = vmatpush3.msra.mxu1 %v7809_v21 }
0x1b95   : > { %v6643_v25 = vpop.f32.mrf.mxu1 }
0x1b96   : > { %v6647_v20 = vadd.f32 %v6643_v25, %v6216_v46 }
0x1b97   : > { %v7608_v57 = vpop.f32.mrf.mxu1 }
0x1b98   : > { %v6648_v6 = vadd.f32 %v7810_v52, %v6647_v20 }
0x1b9a   : > { %v6649_v32 = vadd.f32 %v7811_v7, %v6648_v6 }
0x1b9c   : > { %v6650_v35 = vsel %vm1261_vm3, %v6649_v32, 0.0 }
0x1b9d   : > { %6651 = vadd.xlane.f32.xlu0 %v6650_v35 }
0x1c26   : > { %v6652_v49 = vpop.xlane.xlu0 %6651 }
0x1c27   : > { %v6653_v10 = vmul.f32 0.03125, %v6652_v49 }
0x1c29   : > { %v6654_v47 = vsub.f32 %v6649_v32, %v6653_v10 }
0x1c2b   : > { %v6655_v19 = vmul.f32 %v6654_v47, %v6654_v47 }
0x1c2d   : > { %v6656_v17 = vsel %vm1261_vm3, %v6655_v19, 0.0 }
0x1c2e   : > { %6657 = vadd.xlane.f32.xlu0 %v6656_v17 }
0x1cb7   : > { %v6658_v2 = vpop.xlane.xlu0 %6657 }
0x1cb8   : > { %v6659_v50 = vmul.f32 0.03125, %v6658_v2 }
0x1cba   : > { %v6660_v36 = vadd.f32 1e-05, %v6659_v50 }
0x1cbc   : > { %7776 = vrsqrt.f32 %v6660_v36 }
0x1cc9   : > { %v7777_v51 = vpop.eup %7776 }
0x1cca   : > { %v6662_v29 = vmul.f32 %v7777_v51, %v6654_v47 }
0x1ccc   : > { %v6663_v3 = vmul.f32 %v7812_v8, %v6662_v29 }
0x1cce   : > { %v6664_v15 = vadd.f32 %v7813_v13, %v6663_v3 }
0x1cd0   : > { %7618 = vmatmul.mubr.msk.f32.vlgmr.msra.gmra.mxu0 %vm1261_vm3, %v6664_v15 }
0x1d90   : > { %v6734_v60 = vpop.f32.mrf.mxu0 }
0x1d91   : > { %v6735_v56 = vadd.f32 %v7814_v42, %v6734_v60 }
0x1d92   : > { %v7619_v41 = vpop.f32.mrf.mxu0 }
0x1d93   : > { %v6738_v58 = vmax.f32 %v6735_v56, 0.0 }
0x1d95   : > { %7637 = vmatmul.mubr.msk.f32.vlgmr.msra.gmra.mxu1 %vm4479_vm15, %v6738_v58 }
0x1e55   : > { %v6808_v40 = vpop.f32.mrf.mxu1 }
0x1e56   : > { %v6809_v5 = vadd.f32 %v7815_v24, %v6808_v40 }
0x1e57   : > { %v7638_v1 = vpop.f32.mrf.mxu1 }
0x1e58   : > { %v6812_v54 = vadd.f32 %v6809_v5, %v6664_v15 }
0x1e5a   : > { %v6813_v37 = vsel %vm1261_vm3, %v6812_v54, 0.0 }
0x1e5b   : > { %6814 = vadd.xlane.f32.xlu0 %v6813_v37 }
0x1ee4   : > { %v6815_v53 = vpop.xlane.xlu0 %6814 }
0x1ee5   : > { %v6816_v11 = vmul.f32 0.03125, %v6815_v53 }
0x1ee7   : > { %v6817_v38 = vsub.f32 %v6812_v54, %v6816_v11 }
0x1ee9   : > { %v6818_v27 = vmul.f32 %v6817_v38, %v6817_v38 }
0x1eeb   : > { %v6819_v31 = vsel %vm1261_vm3, %v6818_v27, 0.0 }
0x1eec   : > { %6820 = vadd.xlane.f32.xlu0 %v6819_v31 }
0x1f75   : > { %v6821_v14 = vpop.xlane.xlu0 %6820 }
0x1f76   : > { %v6822_v26 = vmul.f32 0.03125, %v6821_v14 }
0x1f78   : > { %v6823_v16 = vadd.f32 1e-05, %v6822_v26 }
0x1f7a   : > { %7778 = vrsqrt.f32 %v6823_v16 }
0x1f87   : > { %v7779_v55 = vpop.eup %7778 }
0x1f88   : > { %v6825_v46 = vmul.f32 %v7779_v55, %v6817_v38 }
0x1f8a   : > { %v6826_v44 = vmul.f32 %v7816_v18, %v6825_v46  ;;  %6834 = sbr.rel (%p7259_p1) target bundleno = 8080 (0x1f90), region = 112 }
0x1f8c   : > { %v6827_v33 = vadd.f32 %v7817_v9, %v6826_v44 }
0x1f8e   : > { %6830 = vst.msk [vmem:[#allocation3] sm:$0xff] %vm1261_vm3, %v6827_v33 }
0x1f8f   : > { %6835 = vst.msk [vmem:[%s921_s27] sm:$0xff] %vm1261_vm3, %v6827_v33 }
0x1f90 PF: > { %s10719_s25 = sld [smem:[#allocation11_spill]]  ;;  %s6850_s1 = sshll.u32 %s921_s27, 4  ;;  %s6851_s1 = int_to_ptr.vmem [resolvable:$true] %s6850_s1 }
0x1f91   : > { %s10720_s22 = sld [smem:[#allocation8_spill]]  ;;  %s7818_s30 = scalar_lea.vmem %s6851_s1, 128 }
0x1f92   : > { %s10722_s15 = sld [smem:[#allocation158_spill]]  ;;  %p7819_p2 = scmp.ne.s32.totalorder %s6851_s1, %s7818_s30 }
0x1f93   : > { %s7916_s17 = smov [#allocation4]  }
0x1f94   : > { %p7820_p4 = pnand %p7819_p2, %p8076_p3  ;;  %s7822_s29 = sshll.u32 %s7916_s17, 4  ;;  %s7823_s29 = int_to_ptr.vmem [resolvable:$false] %s7822_s29 }
0x1f95   : > { %s7824_s18 = scalar_lea.vmem %s7823_s29, 256  ;;  %p7825_p6 = scmp.lt.s32.totalorder %s6851_s1, %s7823_s29 }
0x1f96   : > { %s7261_s6 = sshll.u32 %s10719_s25, 7  ;;  %p7821_p5 = pneg %p7820_p4 }
0x1f97   : > { %s10723_s5 = sand.u32 1, %s10720_s22   ;;  %p7826_p7 = scmp.lt.s32.totalorder %s7824_s18, %s7818_s30 }
0x1f98   : > { %s6848_s8 = scalar_lea.hbm %s10722_s15, %s7261_s6  ;;  %s6837_s9 = scalar_lea.sflag [#allocation5], %s10723_s5 }
0x1f99   : > { %p7827_p8 = por %p7826_p7, %p7825_p6 }
0x1f9b   : > { %p7828_p10 = pnand %p7827_p8, %p7821_p5 }
0x1f9d   : > { %7831 = shalt.err (!%p7828_p10)
}
0x1f9e   : > { %s7832_s19 = scalar_lea.hbm %s6848_s8, 128  ;;  %s7836_s24 = scalar_lea.hbm %s10722_s15, 256 }
0x1f9f   : > { %p7833_p11 = scmp.ne.s32.totalorder %s6848_s8, %s7832_s19  ;;  %p7837_p0 = scmp.lt.s32.totalorder %s6848_s8, %s10722_s15 }
0x1fa0   : > { %p7838_p1 = scmp.lt.s32.totalorder %s7836_s24, %s7832_s19 }
0x1fa1   : > { %p7834_p12 = pnand %p7833_p11, %p8076_p3 }
0x1fa2   : > { %p7839_p2 = por %p7838_p1, %p7837_p0 }
0x1fa3   : > { %p7835_p13 = pneg %p7834_p12 }
0x1fa5   : > { %p7840_p4 = pnand %p7839_p2, %p7835_p13 }
0x1fa7   : > { %7843 = shalt.err (!%p7840_p4)
}
0x1fa8   : > { %7643 = dma.vmem_to_hbm [thread:$0]  (%p8076_p3), %s6851_s1, 128, %s6848_s8, %s6837_s9  }
0x1fa9 PF: > { %s10724_s13 = sld [smem:[#allocation14_spill]] }
0x1faa   : > { %s10725_s7 = sld [smem:[#allocation7_spill]] }
0x1faf   : > { %p7649_p5 = scmp.ge.s32.totalorder %s10724_s13, 2 }
0x1fb0   : > { %s6862_s16 = sand.u32 1, %s10725_s7  }
0x1fb1   : > { %p7646_p6 = pnand %p7649_p5, %p8086_p9  ;;  %s6863_s20 = scalar_lea.sflag [#allocation5], %s6862_s16 }
0x1fb3   : > { %p7647_p7 = pneg %p7646_p6 }
0x1fb5   : > { %7877 = dma.done.wait (%p7647_p7), %s6863_s20, 128  }
0x1fb6   : > { %7879 = vsyncadd (%p7647_p7), %s6863_s20, 4294967168  ;;  %s34_s0 = sadd.s32 1, %s10724_s13   ;;  %s10727_s2 = sld [smem:[#allocation8_spill]] }
0x1fb7   : > { %p31_p8 = scmp.ge.s32.totalorder %s34_s0, 6   ;;  %s10728_s25 = sld [smem:[#allocation9_spill]] }
0x1fb8   : > { %s10729_s26 = sld [smem:[#allocation19_spill]] }
0x1fb9   : > { %s10730_s27 = sld [smem:[#allocation12_spill]]  ;;  %33 = sbr.rel (!%p31_p8) target bundleno = 27 (0x1b), region = 207 }
0x1fba   : > { %s10731_s3 = sld [smem:[#allocation13_spill]] }
0x1fbb   : > { %s10732_s28 = sld [smem:[#allocation15_spill]] }
0x1fbc   : > { %s10733_s29 = sld [smem:[#allocation17_spill]] }
0x1fbe   :  { %6868 = vsyncpa [#allocation5], 1 }
0x1fbf   :  { %6870 = vsyncpa [#allocation5 + $0x1], 1 }

</bundles_post_ra>
